<compile_context>
chip_gen: v5e
topology: v5e:2x2
jax: 0.10.0
libtpu: 0.0.40
codegen_flags: <defaults>
</compile_context>

<pallas_src>
import functools

import jax
import jax.numpy as jnp
from jax import lax
from jax.experimental import pallas as pl
from jax.experimental.pallas import tpu as pltpu


def _round_up(x, m):
    return (x + m - 1) // m * m


def _lstm_recurrence_kernel(xproj_ref, whh_ref, out_ref, h_scr, c_scr, *,
                            hp, tc, t_valid, guard_tail, unroll):
    """One grid step processes a chunk of `tc` timesteps.

    xproj_ref : (tc, Bp, 4*Hp)  precomputed x@W_ih^T + bias, gate order (i,f,o,g)
    whh_ref   : (Hp, 4*Hp)      W_hh^T, gate order (i,f,o,g), zero-padded
    out_ref   : (tc, Bp, Hp)    hidden states for this chunk
    h_scr/c_scr : (Bp, Hp) f32  recurrent state, persists across grid steps
    """
    @pl.when(pl.program_id(0) == 0)
    def _():
        h_scr[...] = jnp.zeros_like(h_scr)
        c_scr[...] = jnp.zeros_like(c_scr)

    chunk_start = pl.program_id(0) * tc

    def step(t, carry):
        def body():
            # Only this small matmul is on the serial (per-timestep) path.
            gates = xproj_ref[t] + jnp.dot(
                h_scr[...], whh_ref[...], preferred_element_type=jnp.float32)
            # Gate order (i, f, o, g); every slice lands on a 128-lane boundary
            # because Hp is a multiple of 128.
            # c-critical path first: one sigmoid over the contiguous (Bp, 2*Hp)
            # i|f slab and one tanh over g.
            sig_if = jax.nn.sigmoid(gates[:, :2 * hp])
            g = jnp.tanh(gates[:, 3 * hp:])
            c = sig_if[:, hp:2 * hp] * c_scr[...] + sig_if[:, :hp] * g
            # o's sigmoid is only needed for the final h multiply -> issued
            # after the cell update (off the c chain).
            o = jax.nn.sigmoid(gates[:, 2 * hp:3 * hp])
            h = o * jnp.tanh(c)
            c_scr[...] = c
            h_scr[...] = h
            out_ref[t] = h.astype(out_ref.dtype)   # lane-dense (Bp, Hp) store

        if guard_tail:
            # Skip padded tail timesteps entirely (no matmul / EUP work).
            pl.when(chunk_start + t < t_valid)(body)
        else:
            body()
        return carry

    lax.fori_loop(0, tc, step, 0, unroll=unroll)


def _permute_pad_gates(w, H, Hp):
    """Rows in PyTorch (i,f,g,o) order -> (i,f,o,g) order, each gate block
    zero-padded from H to Hp rows.  Works for (4H,) and (4H, X)."""
    i, f, g, o = w[0:H], w[H:2 * H], w[2 * H:3 * H], w[3 * H:4 * H]
    blocks = (i, f, o, g)
    if w.ndim == 1:
        out = jnp.zeros((4 * Hp,), w.dtype)
        for k, blk in enumerate(blocks):
            out = out.at[k * Hp:k * Hp + H].set(blk)
    else:
        out = jnp.zeros((4 * Hp, w.shape[1]), w.dtype)
        for k, blk in enumerate(blocks):
            out = out.at[k * Hp:k * Hp + H, :].set(blk)
    return out


def lstm_pallas(x, w_ih, w_hh, b_ih, b_hh, *, time_chunk=64, trim=True):
    """Single-layer LSTM.  x: (T, B, I); PyTorch weight shapes:
    w_ih: (4H, I), w_hh: (4H, H), biases: (4H,).  Returns output (T, B, H)
    (or the padded (Tp, Bp, Hp) buffer if trim=False, skipping the post-slice
    HBM copy).  h_n, c_n are intentionally not materialized: TakeFromTuple
    discards them."""
    T, B, I = x.shape
    H = w_hh.shape[1]

    Bp = _round_up(max(B, 8), 8)       # >= 8 f32 sublanes
    Hp = _round_up(max(H, 128), 128)   # lane-dense gate slices & output stores

    # --- Pick Tc against an explicit VMEM budget (re-derived for v7x 64 MiB).
    def _pipeline_bytes(tc):
        xproj_buf = 2 * tc * Bp * 4 * Hp * 4   # double-buffered input chunk
        out_buf = 2 * tc * Bp * Hp * 4         # double-buffered output chunk
        w_buf = 2 * Hp * 4 * Hp * 4            # worst case (double-buffered)
        scratch = 2 * Bp * Hp * 4              # h, c state
        return xproj_buf + out_buf + w_buf + scratch

    VMEM_BUDGET = 24 * 2**20                   # conservative: fits v7x w/ headroom
    Tc = max(1, min(time_chunk, T))
    while Tc > 1 and _pipeline_bytes(Tc) > VMEM_BUDGET:
        Tc //= 2
    Tp = _round_up(T, Tc)
    vmem_limit = int(min(64 * 2**20, max(32 * 2**20, 2 * _pipeline_bytes(Tc))))

    # Gate permutation (i,f,g,o)->(i,f,o,g) + zero-pad H -> Hp.  Zero padding is
    # self-consistent: padded gates get bias 0 -> c_pad stays 0, h_pad stays 0,
    # and zeroed W_hh^T rows mean padded state never feeds real gates.
    wih_p = _permute_pad_gates(w_ih.astype(jnp.float32), H, Hp)            # (4Hp, I)
    whh_p = _permute_pad_gates(w_hh.astype(jnp.float32), H, Hp)            # (4Hp, H)
    whh_p = jnp.pad(whh_p, ((0, 0), (0, Hp - H)))                          # (4Hp, Hp)
    bias_p = _permute_pad_gates((b_ih + b_hh).astype(jnp.float32), H, Hp)  # (4Hp,)
    whh_t = whh_p.T                                                        # (Hp, 4Hp)

    # Hoisted input projection: one big (Tp*Bp, I) x (I, 4Hp) matmul with the
    # bias folded in.  Non-recurrent, so plain XLA handles it optimally.
    x_p = jnp.pad(x.astype(jnp.float32), ((0, Tp - T), (0, Bp - B), (0, 0)))
    xproj = (x_p.reshape(Tp * Bp, I) @ wih_p.T + bias_p).reshape(Tp, Bp, 4 * Hp)

    kernel = functools.partial(
        _lstm_recurrence_kernel,
        hp=Hp, tc=Tc, t_valid=T, guard_tail=(Tp > T),
        unroll=min(Tc, 8),                     # partial unroll: LLO visibility
    )                                          # without code / vreg blowup

    def run(weight_spec):
        return pl.pallas_call(
            kernel,
            out_shape=jax.ShapeDtypeStruct((Tp, Bp, Hp), x.dtype),
            grid_spec=pltpu.PrefetchScalarGridSpec(
                num_scalar_prefetch=0,
                grid=(Tp // Tc,),
                in_specs=[
                    # per-chunk precomputed gates (pipelined across chunks)
                    pl.BlockSpec((Tc, Bp, 4 * Hp), lambda n: (n, 0, 0)),
                    # recurrent weights, grid-invariant
                    weight_spec,
                ],
                out_specs=pl.BlockSpec((Tc, Bp, Hp), lambda n: (n, 0, 0)),
                scratch_shapes=[
                    pltpu.VMEM((Bp, Hp), jnp.float32),   # h state (carried)
                    pltpu.VMEM((Bp, Hp), jnp.float32),   # c state (carried)
                ],
            ),
            # Time is inherently serial -> "arbitrary".  (A batch-parallel
            # outer axis for v7x megacore only pays off at B >= ~16.)
            compiler_params=pltpu.CompilerParams(
                dimension_semantics=("arbitrary",),
                vmem_limit_bytes=vmem_limit,
            ),
        )(xproj, whh_t)

    try:
        # Grid-invariant weight block: single-buffer it to free VMEM headroom.
        out = run(pl.BlockSpec((Hp, 4 * Hp), lambda n: (0, 0),
                               pipeline_mode=pl.Buffered(1)))
        out = jax.block_until_ready(out)
    except Exception:
        # Some Pallas versions don't honor pipeline_mode on top-level
        # pallas_call BlockSpecs; fall back to the default double-buffered spec.
        out = run(pl.BlockSpec((Hp, 4 * Hp), lambda n: (0, 0)))

    if trim:
        return out[:T, :B, :H]
    return out


class TakeFromTuple:
    """JAX/Pallas equivalent of the PyTorch TakeFromTuple wrapper."""

    def __init__(self, moduletowrap, which=0):
        self.module = moduletowrap

    def __call__(self, vals):
        ret = self.module(vals)
        if isinstance(ret, tuple):
            return ret[0]
        return ret


def _lstm_ref(x, w_ih, w_hh, b_ih, b_hh):
    """Pure-JAX reference for correctness checking (PyTorch gate order i,f,g,o)."""
    T, B, I = x.shape
    H = w_hh.shape[1]
    h = jnp.zeros((B, H), jnp.float32)
    c = jnp.zeros((B, H), jnp.float32)
    outs = []
    for t in range(T):
        gates = x[t].astype(jnp.float32) @ w_ih.T + h @ w_hh.T + b_ih + b_hh
        i = jax.nn.sigmoid(gates[:, 0 * H:1 * H])
        f = jax.nn.sigmoid(gates[:, 1 * H:2 * H])
        g = jnp.tanh(gates[:, 2 * H:3 * H])
        o = jax.nn.sigmoid(gates[:, 3 * H:4 * H])
        c = f * c + i * g
        h = o * jnp.tanh(c)
        outs.append(h)
    return jnp.stack(outs, axis=0)


if __name__ == "__main__":
    T, B, I, H = 8, 2, 32, 32
    key = jax.random.PRNGKey(0)
    kx, k1, k2, k3, k4 = jax.random.split(key, 5)

    x = jax.random.normal(kx, (T, B, I), dtype=jnp.float32)
    bound = 1.0 / jnp.sqrt(H)
    w_ih = jax.random.uniform(k1, (4 * H, I), jnp.float32, -bound, bound)
    w_hh = jax.random.uniform(k2, (4 * H, H), jnp.float32, -bound, bound)
    b_ih = jax.random.uniform(k3, (4 * H,), jnp.float32, -bound, bound)
    b_hh = jax.random.uniform(k4, (4 * H,), jnp.float32, -bound, bound)

    # The wrapped "LSTM module" returns a tuple; element 0 is the output
    # sequence.  h_n/c_n are not materialized (TakeFromTuple discards them).
    wrapped = lambda v: (lstm_pallas(v, w_ih, w_hh, b_ih, b_hh), None)
    model = TakeFromTuple(wrapped, which=0)

    out = model(x)
    out = jax.block_until_ready(out)

    ref = _lstm_ref(x, w_ih, w_hh, b_ih, b_hh)
    assert out.shape == (T, B, H)
    assert jnp.allclose(out, ref, atol=1e-4, rtol=1e-4)

    print("KERNEL_OK")
</pallas_src>

<mosaic_0001>
module attributes {stable_mosaic.version = 11 : i64} {
  func.func @_lstm_recurrence_kernel(%arg0: i32, %arg1: memref<8x8x512xf32, #tpu.memory_space<vmem>>, %arg2: memref<128x512xf32, #tpu.memory_space<vmem>>, %arg3: memref<8x8x128xf32, #tpu.memory_space<vmem>>, %arg4: memref<8x128xf32, #tpu.memory_space<vmem>>, %arg5: memref<8x128xf32, #tpu.memory_space<vmem>>) attributes {dimension_semantics = [#tpu.dimension_semantics<arbitrary>], iteration_bounds = array<i64: 1>, scalar_prefetch = 0 : i64, scratch_operands = 2 : i64, tpu.core_type = #tpu.core_type<tc>, window_params = [{transform_indices = @transform_0, window_bounds = array<i64: 8, 8, 512>}, {pipeline_mode = #tpu.pipeline_mode<synchronous>, transform_indices = @transform_1, window_bounds = array<i64: 128, 512>}, {transform_indices = @transform_2, window_bounds = array<i64: 8, 8, 128>}]} {
    %c0_i32 = arith.constant 0 : i32
    %0 = arith.cmpi eq, %arg0, %c0_i32 : i32
    %1 = arith.extui %0 : i1 to i32
    %c0_i32_0 = arith.constant 0 : i32
    %2 = arith.cmpi ne, %1, %c0_i32_0 : i32
    scf.if %2 {
      %cst_136 = arith.constant 0.000000e+00 : f32
      %283 = vector.broadcast %cst_136 : f32 to vector<8x128xf32>
      %c0_137 = arith.constant 0 : index
      %c0_138 = arith.constant 0 : index
      %284 = vector.load %arg4[%c0_137, %c0_138] : memref<8x128xf32, #tpu.memory_space<vmem>>, vector<8x128xf32>
      tpu.vector_store %arg4[%c0_137, %c0_138], %283 {strides = array<i32>} : memref<8x128xf32, #tpu.memory_space<vmem>>, vector<8x128xf32>,
      %cst_139 = arith.constant 0.000000e+00 : f32
      %285 = vector.broadcast %cst_139 : f32 to vector<8x128xf32>
      %c0_140 = arith.constant 0 : index
      %c0_141 = arith.constant 0 : index
      %286 = vector.load %arg5[%c0_140, %c0_141] : memref<8x128xf32, #tpu.memory_space<vmem>>, vector<8x128xf32>
      tpu.vector_store %arg5[%c0_140, %c0_141], %285 {strides = array<i32>} : memref<8x128xf32, #tpu.memory_space<vmem>>, vector<8x128xf32>,
    } else {
    }
    %c0_i32_1 = arith.constant 0 : i32
    %3 = arith.index_cast %c0_i32_1 : i32 to index
    %c0 = arith.constant 0 : index
    %c0_2 = arith.constant 0 : index
    %4 = vector.load %arg1[%3, %c0, %c0_2] : memref<8x8x512xf32, #tpu.memory_space<vmem>>, vector<1x8x512xf32>
    %5 = vector.shape_cast %4 : vector<1x8x512xf32> to vector<8x512xf32>
    %c0_3 = arith.constant 0 : index
    %c0_4 = arith.constant 0 : index
    %6 = vector.load %arg4[%c0_3, %c0_4] : memref<8x128xf32, #tpu.memory_space<vmem>>, vector<8x128xf32>
    %c0_5 = arith.constant 0 : index
    %c0_6 = arith.constant 0 : index
    %7 = vector.load %arg2[%c0_5, %c0_6] : memref<128x512xf32, #tpu.memory_space<vmem>>, vector<128x512xf32>
    %cst = arith.constant dense<0.000000e+00> : vector<8x512xf32>
    %8 = tpu.matmul %6, %7, %cst {dimension_numbers = #tpu.dot_dimension_numbers<[1], [0], [0], [1], [0, 0, 1, 1], [], []>} : vector<8x128xf32>, vector<128x512xf32>, vector<8x512xf32> -> vector<8x512xf32>
    %9 = arith.addf %5, %8 : vector<8x512xf32>
    %10 = vector.extract_strided_slice %9 {offsets = [0, 0], sizes = [8, 256], strides = [1, 1]} : vector<8x512xf32> to vector<8x256xf32>
    %11 = arith.negf %10 : vector<8x256xf32>
    %12 = math.exp %11 : vector<8x256xf32>
    %cst_7 = arith.constant 1.000000e+00 : f32
    %13 = vector.broadcast %cst_7 : f32 to vector<8x256xf32>
    %14 = arith.addf %13, %12 : vector<8x256xf32>
    %15 = arith.divf %13, %14 : vector<8x256xf32>
    %16 = vector.extract_strided_slice %9 {offsets = [0, 384], sizes = [8, 128], strides = [1, 1]} : vector<8x512xf32> to vector<8x128xf32>
    %17 = math.tanh %16 : vector<8x128xf32>
    %18 = vector.extract_strided_slice %15 {offsets = [0, 128], sizes = [8, 128], strides = [1, 1]} : vector<8x256xf32> to vector<8x128xf32>
    %c0_8 = arith.constant 0 : index
    %c0_9 = arith.constant 0 : index
    %19 = vector.load %arg5[%c0_8, %c0_9] : memref<8x128xf32, #tpu.memory_space<vmem>>, vector<8x128xf32>
    %20 = arith.mulf %18, %19 : vector<8x128xf32>
    %21 = vector.extract_strided_slice %15 {offsets = [0, 0], sizes = [8, 128], strides = [1, 1]} : vector<8x256xf32> to vector<8x128xf32>
    %22 = arith.mulf %21, %17 : vector<8x128xf32>
    %23 = arith.addf %20, %22 : vector<8x128xf32>
    %24 = vector.extract_strided_slice %9 {offsets = [0, 256], sizes = [8, 128], strides = [1, 1]} : vector<8x512xf32> to vector<8x128xf32>
    %25 = arith.negf %24 : vector<8x128xf32>
    %26 = math.exp %25 : vector<8x128xf32>
    %cst_10 = arith.constant 1.000000e+00 : f32
    %27 = vector.broadcast %cst_10 : f32 to vector<8x128xf32>
    %28 = arith.addf %27, %26 : vector<8x128xf32>
    %29 = arith.divf %27, %28 : vector<8x128xf32>
    %30 = math.tanh %23 : vector<8x128xf32>
    %31 = arith.mulf %29, %30 : vector<8x128xf32>
    %c0_11 = arith.constant 0 : index
    %c0_12 = arith.constant 0 : index
    %32 = vector.load %arg5[%c0_11, %c0_12] : memref<8x128xf32, #tpu.memory_space<vmem>>, vector<8x128xf32>
    tpu.vector_store %arg5[%c0_11, %c0_12], %23 {strides = array<i32>} : memref<8x128xf32, #tpu.memory_space<vmem>>, vector<8x128xf32>,
    %c0_13 = arith.constant 0 : index
    %c0_14 = arith.constant 0 : index
    %33 = vector.load %arg4[%c0_13, %c0_14] : memref<8x128xf32, #tpu.memory_space<vmem>>, vector<8x128xf32>
    tpu.vector_store %arg4[%c0_13, %c0_14], %31 {strides = array<i32>} : memref<8x128xf32, #tpu.memory_space<vmem>>, vector<8x128xf32>,
    %34 = arith.index_cast %c0_i32_1 : i32 to index
    %c0_15 = arith.constant 0 : index
    %c0_16 = arith.constant 0 : index
    %35 = vector.load %arg3[%34, %c0_15, %c0_16] : memref<8x8x128xf32, #tpu.memory_space<vmem>>, vector<1x8x128xf32>
    %36 = vector.shape_cast %35 : vector<1x8x128xf32> to vector<8x128xf32>
    %37 = vector.shape_cast %31 : vector<8x128xf32> to vector<1x8x128xf32>
    tpu.vector_store %arg3[%34, %c0_15, %c0_16], %37 {strides = array<i32>} : memref<8x8x128xf32, #tpu.memory_space<vmem>>, vector<1x8x128xf32>,
    %c1_i32 = arith.constant 1 : i32
    %38 = arith.index_cast %c1_i32 : i32 to index
    %c0_17 = arith.constant 0 : index
    %c0_18 = arith.constant 0 : index
    %39 = vector.load %arg1[%38, %c0_17, %c0_18] : memref<8x8x512xf32, #tpu.memory_space<vmem>>, vector<1x8x512xf32>
    %40 = vector.shape_cast %39 : vector<1x8x512xf32> to vector<8x512xf32>
    %c0_19 = arith.constant 0 : index
    %c0_20 = arith.constant 0 : index
    %41 = vector.load %arg4[%c0_19, %c0_20] : memref<8x128xf32, #tpu.memory_space<vmem>>, vector<8x128xf32>
    %c0_21 = arith.constant 0 : index
    %c0_22 = arith.constant 0 : index
    %42 = vector.load %arg2[%c0_21, %c0_22] : memref<128x512xf32, #tpu.memory_space<vmem>>, vector<128x512xf32>
    %cst_23 = arith.constant dense<0.000000e+00> : vector<8x512xf32>
    %43 = tpu.matmul %41, %42, %cst_23 {dimension_numbers = #tpu.dot_dimension_numbers<[1], [0], [0], [1], [0, 0, 1, 1], [], []>} : vector<8x128xf32>, vector<128x512xf32>, vector<8x512xf32> -> vector<8x512xf32>
    %44 = arith.addf %40, %43 : vector<8x512xf32>
    %45 = vector.extract_strided_slice %44 {offsets = [0, 0], sizes = [8, 256], strides = [1, 1]} : vector<8x512xf32> to vector<8x256xf32>
    %46 = arith.negf %45 : vector<8x256xf32>
    %47 = math.exp %46 : vector<8x256xf32>
    %cst_24 = arith.constant 1.000000e+00 : f32
    %48 = vector.broadcast %cst_24 : f32 to vector<8x256xf32>
    %49 = arith.addf %48, %47 : vector<8x256xf32>
    %50 = arith.divf %48, %49 : vector<8x256xf32>
    %51 = vector.extract_strided_slice %44 {offsets = [0, 384], sizes = [8, 128], strides = [1, 1]} : vector<8x512xf32> to vector<8x128xf32>
    %52 = math.tanh %51 : vector<8x128xf32>
    %53 = vector.extract_strided_slice %50 {offsets = [0, 128], sizes = [8, 128], strides = [1, 1]} : vector<8x256xf32> to vector<8x128xf32>
    %c0_25 = arith.constant 0 : index
    %c0_26 = arith.constant 0 : index
    %54 = vector.load %arg5[%c0_25, %c0_26] : memref<8x128xf32, #tpu.memory_space<vmem>>, vector<8x128xf32>
    %55 = arith.mulf %53, %54 : vector<8x128xf32>
    %56 = vector.extract_strided_slice %50 {offsets = [0, 0], sizes = [8, 128], strides = [1, 1]} : vector<8x256xf32> to vector<8x128xf32>
    %57 = arith.mulf %56, %52 : vector<8x128xf32>
    %58 = arith.addf %55, %57 : vector<8x128xf32>
    %59 = vector.extract_strided_slice %44 {offsets = [0, 256], sizes = [8, 128], strides = [1, 1]} : vector<8x512xf32> to vector<8x128xf32>
    %60 = arith.negf %59 : vector<8x128xf32>
    %61 = math.exp %60 : vector<8x128xf32>
    %cst_27 = arith.constant 1.000000e+00 : f32
    %62 = vector.broadcast %cst_27 : f32 to vector<8x128xf32>
    %63 = arith.addf %62, %61 : vector<8x128xf32>
    %64 = arith.divf %62, %63 : vector<8x128xf32>
    %65 = math.tanh %58 : vector<8x128xf32>
    %66 = arith.mulf %64, %65 : vector<8x128xf32>
    %c0_28 = arith.constant 0 : index
    %c0_29 = arith.constant 0 : index
    %67 = vector.load %arg5[%c0_28, %c0_29] : memref<8x128xf32, #tpu.memory_space<vmem>>, vector<8x128xf32>
    tpu.vector_store %arg5[%c0_28, %c0_29], %58 {strides = array<i32>} : memref<8x128xf32, #tpu.memory_space<vmem>>, vector<8x128xf32>,
    %c0_30 = arith.constant 0 : index
    %c0_31 = arith.constant 0 : index
    %68 = vector.load %arg4[%c0_30, %c0_31] : memref<8x128xf32, #tpu.memory_space<vmem>>, vector<8x128xf32>
    tpu.vector_store %arg4[%c0_30, %c0_31], %66 {strides = array<i32>} : memref<8x128xf32, #tpu.memory_space<vmem>>, vector<8x128xf32>,
    %69 = arith.index_cast %c1_i32 : i32 to index
    %c0_32 = arith.constant 0 : index
    %c0_33 = arith.constant 0 : index
    %70 = vector.load %arg3[%69, %c0_32, %c0_33] : memref<8x8x128xf32, #tpu.memory_space<vmem>>, vector<1x8x128xf32>
    %71 = vector.shape_cast %70 : vector<1x8x128xf32> to vector<8x128xf32>
    %72 = vector.shape_cast %66 : vector<8x128xf32> to vector<1x8x128xf32>
    tpu.vector_store %arg3[%69, %c0_32, %c0_33], %72 {strides = array<i32>} : memref<8x8x128xf32, #tpu.memory_space<vmem>>, vector<1x8x128xf32>,
    %c2_i32 = arith.constant 2 : i32
    %73 = arith.index_cast %c2_i32 : i32 to index
    %c0_34 = arith.constant 0 : index
    %c0_35 = arith.constant 0 : index
    %74 = vector.load %arg1[%73, %c0_34, %c0_35] : memref<8x8x512xf32, #tpu.memory_space<vmem>>, vector<1x8x512xf32>
    %75 = vector.shape_cast %74 : vector<1x8x512xf32> to vector<8x512xf32>
    %c0_36 = arith.constant 0 : index
    %c0_37 = arith.constant 0 : index
    %76 = vector.load %arg4[%c0_36, %c0_37] : memref<8x128xf32, #tpu.memory_space<vmem>>, vector<8x128xf32>
    %c0_38 = arith.constant 0 : index
    %c0_39 = arith.constant 0 : index
    %77 = vector.load %arg2[%c0_38, %c0_39] : memref<128x512xf32, #tpu.memory_space<vmem>>, vector<128x512xf32>
    %cst_40 = arith.constant dense<0.000000e+00> : vector<8x512xf32>
    %78 = tpu.matmul %76, %77, %cst_40 {dimension_numbers = #tpu.dot_dimension_numbers<[1], [0], [0], [1], [0, 0, 1, 1], [], []>} : vector<8x128xf32>, vector<128x512xf32>, vector<8x512xf32> -> vector<8x512xf32>
    %79 = arith.addf %75, %78 : vector<8x512xf32>
    %80 = vector.extract_strided_slice %79 {offsets = [0, 0], sizes = [8, 256], strides = [1, 1]} : vector<8x512xf32> to vector<8x256xf32>
    %81 = arith.negf %80 : vector<8x256xf32>
    %82 = math.exp %81 : vector<8x256xf32>
    %cst_41 = arith.constant 1.000000e+00 : f32
    %83 = vector.broadcast %cst_41 : f32 to vector<8x256xf32>
    %84 = arith.addf %83, %82 : vector<8x256xf32>
    %85 = arith.divf %83, %84 : vector<8x256xf32>
    %86 = vector.extract_strided_slice %79 {offsets = [0, 384], sizes = [8, 128], strides = [1, 1]} : vector<8x512xf32> to vector<8x128xf32>
    %87 = math.tanh %86 : vector<8x128xf32>
    %88 = vector.extract_strided_slice %85 {offsets = [0, 128], sizes = [8, 128], strides = [1, 1]} : vector<8x256xf32> to vector<8x128xf32>
    %c0_42 = arith.constant 0 : index
    %c0_43 = arith.constant 0 : index
    %89 = vector.load %arg5[%c0_42, %c0_43] : memref<8x128xf32, #tpu.memory_space<vmem>>, vector<8x128xf32>
    %90 = arith.mulf %88, %89 : vector<8x128xf32>
    %91 = vector.extract_strided_slice %85 {offsets = [0, 0], sizes = [8, 128], strides = [1, 1]} : vector<8x256xf32> to vector<8x128xf32>
    %92 = arith.mulf %91, %87 : vector<8x128xf32>
    %93 = arith.addf %90, %92 : vector<8x128xf32>
    %94 = vector.extract_strided_slice %79 {offsets = [0, 256], sizes = [8, 128], strides = [1, 1]} : vector<8x512xf32> to vector<8x128xf32>
    %95 = arith.negf %94 : vector<8x128xf32>
    %96 = math.exp %95 : vector<8x128xf32>
    %cst_44 = arith.constant 1.000000e+00 : f32
    %97 = vector.broadcast %cst_44 : f32 to vector<8x128xf32>
    %98 = arith.addf %97, %96 : vector<8x128xf32>
    %99 = arith.divf %97, %98 : vector<8x128xf32>
    %100 = math.tanh %93 : vector<8x128xf32>
    %101 = arith.mulf %99, %100 : vector<8x128xf32>
    %c0_45 = arith.constant 0 : index
    %c0_46 = arith.constant 0 : index
    %102 = vector.load %arg5[%c0_45, %c0_46] : memref<8x128xf32, #tpu.memory_space<vmem>>, vector<8x128xf32>
    tpu.vector_store %arg5[%c0_45, %c0_46], %93 {strides = array<i32>} : memref<8x128xf32, #tpu.memory_space<vmem>>, vector<8x128xf32>,
    %c0_47 = arith.constant 0 : index
    %c0_48 = arith.constant 0 : index
    %103 = vector.load %arg4[%c0_47, %c0_48] : memref<8x128xf32, #tpu.memory_space<vmem>>, vector<8x128xf32>
    tpu.vector_store %arg4[%c0_47, %c0_48], %101 {strides = array<i32>} : memref<8x128xf32, #tpu.memory_space<vmem>>, vector<8x128xf32>,
    %104 = arith.index_cast %c2_i32 : i32 to index
    %c0_49 = arith.constant 0 : index
    %c0_50 = arith.constant 0 : index
    %105 = vector.load %arg3[%104, %c0_49, %c0_50] : memref<8x8x128xf32, #tpu.memory_space<vmem>>, vector<1x8x128xf32>
    %106 = vector.shape_cast %105 : vector<1x8x128xf32> to vector<8x128xf32>
    %107 = vector.shape_cast %101 : vector<8x128xf32> to vector<1x8x128xf32>
    tpu.vector_store %arg3[%104, %c0_49, %c0_50], %107 {strides = array<i32>} : memref<8x8x128xf32, #tpu.memory_space<vmem>>, vector<1x8x128xf32>,
    %c3_i32 = arith.constant 3 : i32
    %108 = arith.index_cast %c3_i32 : i32 to index
    %c0_51 = arith.constant 0 : index
    %c0_52 = arith.constant 0 : index
    %109 = vector.load %arg1[%108, %c0_51, %c0_52] : memref<8x8x512xf32, #tpu.memory_space<vmem>>, vector<1x8x512xf32>
    %110 = vector.shape_cast %109 : vector<1x8x512xf32> to vector<8x512xf32>
    %c0_53 = arith.constant 0 : index
    %c0_54 = arith.constant 0 : index
    %111 = vector.load %arg4[%c0_53, %c0_54] : memref<8x128xf32, #tpu.memory_space<vmem>>, vector<8x128xf32>
    %c0_55 = arith.constant 0 : index
    %c0_56 = arith.constant 0 : index
    %112 = vector.load %arg2[%c0_55, %c0_56] : memref<128x512xf32, #tpu.memory_space<vmem>>, vector<128x512xf32>
    %cst_57 = arith.constant dense<0.000000e+00> : vector<8x512xf32>
    %113 = tpu.matmul %111, %112, %cst_57 {dimension_numbers = #tpu.dot_dimension_numbers<[1], [0], [0], [1], [0, 0, 1, 1], [], []>} : vector<8x128xf32>, vector<128x512xf32>, vector<8x512xf32> -> vector<8x512xf32>
    %114 = arith.addf %110, %113 : vector<8x512xf32>
    %115 = vector.extract_strided_slice %114 {offsets = [0, 0], sizes = [8, 256], strides = [1, 1]} : vector<8x512xf32> to vector<8x256xf32>
    %116 = arith.negf %115 : vector<8x256xf32>
    %117 = math.exp %116 : vector<8x256xf32>
    %cst_58 = arith.constant 1.000000e+00 : f32
    %118 = vector.broadcast %cst_58 : f32 to vector<8x256xf32>
    %119 = arith.addf %118, %117 : vector<8x256xf32>
    %120 = arith.divf %118, %119 : vector<8x256xf32>
    %121 = vector.extract_strided_slice %114 {offsets = [0, 384], sizes = [8, 128], strides = [1, 1]} : vector<8x512xf32> to vector<8x128xf32>
    %122 = math.tanh %121 : vector<8x128xf32>
    %123 = vector.extract_strided_slice %120 {offsets = [0, 128], sizes = [8, 128], strides = [1, 1]} : vector<8x256xf32> to vector<8x128xf32>
    %c0_59 = arith.constant 0 : index
    %c0_60 = arith.constant 0 : index
    %124 = vector.load %arg5[%c0_59, %c0_60] : memref<8x128xf32, #tpu.memory_space<vmem>>, vector<8x128xf32>
    %125 = arith.mulf %123, %124 : vector<8x128xf32>
    %126 = vector.extract_strided_slice %120 {offsets = [0, 0], sizes = [8, 128], strides = [1, 1]} : vector<8x256xf32> to vector<8x128xf32>
    %127 = arith.mulf %126, %122 : vector<8x128xf32>
    %128 = arith.addf %125, %127 : vector<8x128xf32>
    %129 = vector.extract_strided_slice %114 {offsets = [0, 256], sizes = [8, 128], strides = [1, 1]} : vector<8x512xf32> to vector<8x128xf32>
    %130 = arith.negf %129 : vector<8x128xf32>
    %131 = math.exp %130 : vector<8x128xf32>
    %cst_61 = arith.constant 1.000000e+00 : f32
    %132 = vector.broadcast %cst_61 : f32 to vector<8x128xf32>
    %133 = arith.addf %132, %131 : vector<8x128xf32>
    %134 = arith.divf %132, %133 : vector<8x128xf32>
    %135 = math.tanh %128 : vector<8x128xf32>
    %136 = arith.mulf %134, %135 : vector<8x128xf32>
    %c0_62 = arith.constant 0 : index
    %c0_63 = arith.constant 0 : index
    %137 = vector.load %arg5[%c0_62, %c0_63] : memref<8x128xf32, #tpu.memory_space<vmem>>, vector<8x128xf32>
    tpu.vector_store %arg5[%c0_62, %c0_63], %128 {strides = array<i32>} : memref<8x128xf32, #tpu.memory_space<vmem>>, vector<8x128xf32>,
    %c0_64 = arith.constant 0 : index
    %c0_65 = arith.constant 0 : index
    %138 = vector.load %arg4[%c0_64, %c0_65] : memref<8x128xf32, #tpu.memory_space<vmem>>, vector<8x128xf32>
    tpu.vector_store %arg4[%c0_64, %c0_65], %136 {strides = array<i32>} : memref<8x128xf32, #tpu.memory_space<vmem>>, vector<8x128xf32>,
    %139 = arith.index_cast %c3_i32 : i32 to index
    %c0_66 = arith.constant 0 : index
    %c0_67 = arith.constant 0 : index
    %140 = vector.load %arg3[%139, %c0_66, %c0_67] : memref<8x8x128xf32, #tpu.memory_space<vmem>>, vector<1x8x128xf32>
    %141 = vector.shape_cast %140 : vector<1x8x128xf32> to vector<8x128xf32>
    %142 = vector.shape_cast %136 : vector<8x128xf32> to vector<1x8x128xf32>
    tpu.vector_store %arg3[%139, %c0_66, %c0_67], %142 {strides = array<i32>} : memref<8x8x128xf32, #tpu.memory_space<vmem>>, vector<1x8x128xf32>,
    %c4_i32 = arith.constant 4 : i32
    %143 = arith.index_cast %c4_i32 : i32 to index
    %c0_68 = arith.constant 0 : index
    %c0_69 = arith.constant 0 : index
    %144 = vector.load %arg1[%143, %c0_68, %c0_69] : memref<8x8x512xf32, #tpu.memory_space<vmem>>, vector<1x8x512xf32>
    %145 = vector.shape_cast %144 : vector<1x8x512xf32> to vector<8x512xf32>
    %c0_70 = arith.constant 0 : index
    %c0_71 = arith.constant 0 : index
    %146 = vector.load %arg4[%c0_70, %c0_71] : memref<8x128xf32, #tpu.memory_space<vmem>>, vector<8x128xf32>
    %c0_72 = arith.constant 0 : index
    %c0_73 = arith.constant 0 : index
    %147 = vector.load %arg2[%c0_72, %c0_73] : memref<128x512xf32, #tpu.memory_space<vmem>>, vector<128x512xf32>
    %cst_74 = arith.constant dense<0.000000e+00> : vector<8x512xf32>
    %148 = tpu.matmul %146, %147, %cst_74 {dimension_numbers = #tpu.dot_dimension_numbers<[1], [0], [0], [1], [0, 0, 1, 1], [], []>} : vector<8x128xf32>, vector<128x512xf32>, vector<8x512xf32> -> vector<8x512xf32>
    %149 = arith.addf %145, %148 : vector<8x512xf32>
    %150 = vector.extract_strided_slice %149 {offsets = [0, 0], sizes = [8, 256], strides = [1, 1]} : vector<8x512xf32> to vector<8x256xf32>
    %151 = arith.negf %150 : vector<8x256xf32>
    %152 = math.exp %151 : vector<8x256xf32>
    %cst_75 = arith.constant 1.000000e+00 : f32
    %153 = vector.broadcast %cst_75 : f32 to vector<8x256xf32>
    %154 = arith.addf %153, %152 : vector<8x256xf32>
    %155 = arith.divf %153, %154 : vector<8x256xf32>
    %156 = vector.extract_strided_slice %149 {offsets = [0, 384], sizes = [8, 128], strides = [1, 1]} : vector<8x512xf32> to vector<8x128xf32>
    %157 = math.tanh %156 : vector<8x128xf32>
    %158 = vector.extract_strided_slice %155 {offsets = [0, 128], sizes = [8, 128], strides = [1, 1]} : vector<8x256xf32> to vector<8x128xf32>
    %c0_76 = arith.constant 0 : index
    %c0_77 = arith.constant 0 : index
    %159 = vector.load %arg5[%c0_76, %c0_77] : memref<8x128xf32, #tpu.memory_space<vmem>>, vector<8x128xf32>
    %160 = arith.mulf %158, %159 : vector<8x128xf32>
    %161 = vector.extract_strided_slice %155 {offsets = [0, 0], sizes = [8, 128], strides = [1, 1]} : vector<8x256xf32> to vector<8x128xf32>
    %162 = arith.mulf %161, %157 : vector<8x128xf32>
    %163 = arith.addf %160, %162 : vector<8x128xf32>
    %164 = vector.extract_strided_slice %149 {offsets = [0, 256], sizes = [8, 128], strides = [1, 1]} : vector<8x512xf32> to vector<8x128xf32>
    %165 = arith.negf %164 : vector<8x128xf32>
    %166 = math.exp %165 : vector<8x128xf32>
    %cst_78 = arith.constant 1.000000e+00 : f32
    %167 = vector.broadcast %cst_78 : f32 to vector<8x128xf32>
    %168 = arith.addf %167, %166 : vector<8x128xf32>
    %169 = arith.divf %167, %168 : vector<8x128xf32>
    %170 = math.tanh %163 : vector<8x128xf32>
    %171 = arith.mulf %169, %170 : vector<8x128xf32>
    %c0_79 = arith.constant 0 : index
    %c0_80 = arith.constant 0 : index
    %172 = vector.load %arg5[%c0_79, %c0_80] : memref<8x128xf32, #tpu.memory_space<vmem>>, vector<8x128xf32>
    tpu.vector_store %arg5[%c0_79, %c0_80], %163 {strides = array<i32>} : memref<8x128xf32, #tpu.memory_space<vmem>>, vector<8x128xf32>,
    %c0_81 = arith.constant 0 : index
    %c0_82 = arith.constant 0 : index
    %173 = vector.load %arg4[%c0_81, %c0_82] : memref<8x128xf32, #tpu.memory_space<vmem>>, vector<8x128xf32>
    tpu.vector_store %arg4[%c0_81, %c0_82], %171 {strides = array<i32>} : memref<8x128xf32, #tpu.memory_space<vmem>>, vector<8x128xf32>,
    %174 = arith.index_cast %c4_i32 : i32 to index
    %c0_83 = arith.constant 0 : index
    %c0_84 = arith.constant 0 : index
    %175 = vector.load %arg3[%174, %c0_83, %c0_84] : memref<8x8x128xf32, #tpu.memory_space<vmem>>, vector<1x8x128xf32>
    %176 = vector.shape_cast %175 : vector<1x8x128xf32> to vector<8x128xf32>
    %177 = vector.shape_cast %171 : vector<8x128xf32> to vector<1x8x128xf32>
    tpu.vector_store %arg3[%174, %c0_83, %c0_84], %177 {strides = array<i32>} : memref<8x8x128xf32, #tpu.memory_space<vmem>>, vector<1x8x128xf32>,
    %c5_i32 = arith.constant 5 : i32
    %178 = arith.index_cast %c5_i32 : i32 to index
    %c0_85 = arith.constant 0 : index
    %c0_86 = arith.constant 0 : index
    %179 = vector.load %arg1[%178, %c0_85, %c0_86] : memref<8x8x512xf32, #tpu.memory_space<vmem>>, vector<1x8x512xf32>
    %180 = vector.shape_cast %179 : vector<1x8x512xf32> to vector<8x512xf32>
    %c0_87 = arith.constant 0 : index
    %c0_88 = arith.constant 0 : index
    %181 = vector.load %arg4[%c0_87, %c0_88] : memref<8x128xf32, #tpu.memory_space<vmem>>, vector<8x128xf32>
    %c0_89 = arith.constant 0 : index
    %c0_90 = arith.constant 0 : index
    %182 = vector.load %arg2[%c0_89, %c0_90] : memref<128x512xf32, #tpu.memory_space<vmem>>, vector<128x512xf32>
    %cst_91 = arith.constant dense<0.000000e+00> : vector<8x512xf32>
    %183 = tpu.matmul %181, %182, %cst_91 {dimension_numbers = #tpu.dot_dimension_numbers<[1], [0], [0], [1], [0, 0, 1, 1], [], []>} : vector<8x128xf32>, vector<128x512xf32>, vector<8x512xf32> -> vector<8x512xf32>
    %184 = arith.addf %180, %183 : vector<8x512xf32>
    %185 = vector.extract_strided_slice %184 {offsets = [0, 0], sizes = [8, 256], strides = [1, 1]} : vector<8x512xf32> to vector<8x256xf32>
    %186 = arith.negf %185 : vector<8x256xf32>
    %187 = math.exp %186 : vector<8x256xf32>
    %cst_92 = arith.constant 1.000000e+00 : f32
    %188 = vector.broadcast %cst_92 : f32 to vector<8x256xf32>
    %189 = arith.addf %188, %187 : vector<8x256xf32>
    %190 = arith.divf %188, %189 : vector<8x256xf32>
    %191 = vector.extract_strided_slice %184 {offsets = [0, 384], sizes = [8, 128], strides = [1, 1]} : vector<8x512xf32> to vector<8x128xf32>
    %192 = math.tanh %191 : vector<8x128xf32>
    %193 = vector.extract_strided_slice %190 {offsets = [0, 128], sizes = [8, 128], strides = [1, 1]} : vector<8x256xf32> to vector<8x128xf32>
    %c0_93 = arith.constant 0 : index
    %c0_94 = arith.constant 0 : index
    %194 = vector.load %arg5[%c0_93, %c0_94] : memref<8x128xf32, #tpu.memory_space<vmem>>, vector<8x128xf32>
    %195 = arith.mulf %193, %194 : vector<8x128xf32>
    %196 = vector.extract_strided_slice %190 {offsets = [0, 0], sizes = [8, 128], strides = [1, 1]} : vector<8x256xf32> to vector<8x128xf32>
    %197 = arith.mulf %196, %192 : vector<8x128xf32>
    %198 = arith.addf %195, %197 : vector<8x128xf32>
    %199 = vector.extract_strided_slice %184 {offsets = [0, 256], sizes = [8, 128], strides = [1, 1]} : vector<8x512xf32> to vector<8x128xf32>
    %200 = arith.negf %199 : vector<8x128xf32>
    %201 = math.exp %200 : vector<8x128xf32>
    %cst_95 = arith.constant 1.000000e+00 : f32
    %202 = vector.broadcast %cst_95 : f32 to vector<8x128xf32>
    %203 = arith.addf %202, %201 : vector<8x128xf32>
    %204 = arith.divf %202, %203 : vector<8x128xf32>
    %205 = math.tanh %198 : vector<8x128xf32>
    %206 = arith.mulf %204, %205 : vector<8x128xf32>
    %c0_96 = arith.constant 0 : index
    %c0_97 = arith.constant 0 : index
    %207 = vector.load %arg5[%c0_96, %c0_97] : memref<8x128xf32, #tpu.memory_space<vmem>>, vector<8x128xf32>
    tpu.vector_store %arg5[%c0_96, %c0_97], %198 {strides = array<i32>} : memref<8x128xf32, #tpu.memory_space<vmem>>, vector<8x128xf32>,
    %c0_98 = arith.constant 0 : index
    %c0_99 = arith.constant 0 : index
    %208 = vector.load %arg4[%c0_98, %c0_99] : memref<8x128xf32, #tpu.memory_space<vmem>>, vector<8x128xf32>
    tpu.vector_store %arg4[%c0_98, %c0_99], %206 {strides = array<i32>} : memref<8x128xf32, #tpu.memory_space<vmem>>, vector<8x128xf32>,
    %209 = arith.index_cast %c5_i32 : i32 to index
    %c0_100 = arith.constant 0 : index
    %c0_101 = arith.constant 0 : index
    %210 = vector.load %arg3[%209, %c0_100, %c0_101] : memref<8x8x128xf32, #tpu.memory_space<vmem>>, vector<1x8x128xf32>
    %211 = vector.shape_cast %210 : vector<1x8x128xf32> to vector<8x128xf32>
    %212 = vector.shape_cast %206 : vector<8x128xf32> to vector<1x8x128xf32>
    tpu.vector_store %arg3[%209, %c0_100, %c0_101], %212 {strides = array<i32>} : memref<8x8x128xf32, #tpu.memory_space<vmem>>, vector<1x8x128xf32>,
    %c6_i32 = arith.constant 6 : i32
    %213 = arith.index_cast %c6_i32 : i32 to index
    %c0_102 = arith.constant 0 : index
    %c0_103 = arith.constant 0 : index
    %214 = vector.load %arg1[%213, %c0_102, %c0_103] : memref<8x8x512xf32, #tpu.memory_space<vmem>>, vector<1x8x512xf32>
    %215 = vector.shape_cast %214 : vector<1x8x512xf32> to vector<8x512xf32>
    %c0_104 = arith.constant 0 : index
    %c0_105 = arith.constant 0 : index
    %216 = vector.load %arg4[%c0_104, %c0_105] : memref<8x128xf32, #tpu.memory_space<vmem>>, vector<8x128xf32>
    %c0_106 = arith.constant 0 : index
    %c0_107 = arith.constant 0 : index
    %217 = vector.load %arg2[%c0_106, %c0_107] : memref<128x512xf32, #tpu.memory_space<vmem>>, vector<128x512xf32>
    %cst_108 = arith.constant dense<0.000000e+00> : vector<8x512xf32>
    %218 = tpu.matmul %216, %217, %cst_108 {dimension_numbers = #tpu.dot_dimension_numbers<[1], [0], [0], [1], [0, 0, 1, 1], [], []>} : vector<8x128xf32>, vector<128x512xf32>, vector<8x512xf32> -> vector<8x512xf32>
    %219 = arith.addf %215, %218 : vector<8x512xf32>
    %220 = vector.extract_strided_slice %219 {offsets = [0, 0], sizes = [8, 256], strides = [1, 1]} : vector<8x512xf32> to vector<8x256xf32>
    %221 = arith.negf %220 : vector<8x256xf32>
    %222 = math.exp %221 : vector<8x256xf32>
    %cst_109 = arith.constant 1.000000e+00 : f32
    %223 = vector.broadcast %cst_109 : f32 to vector<8x256xf32>
    %224 = arith.addf %223, %222 : vector<8x256xf32>
    %225 = arith.divf %223, %224 : vector<8x256xf32>
    %226 = vector.extract_strided_slice %219 {offsets = [0, 384], sizes = [8, 128], strides = [1, 1]} : vector<8x512xf32> to vector<8x128xf32>
    %227 = math.tanh %226 : vector<8x128xf32>
    %228 = vector.extract_strided_slice %225 {offsets = [0, 128], sizes = [8, 128], strides = [1, 1]} : vector<8x256xf32> to vector<8x128xf32>
    %c0_110 = arith.constant 0 : index
    %c0_111 = arith.constant 0 : index
    %229 = vector.load %arg5[%c0_110, %c0_111] : memref<8x128xf32, #tpu.memory_space<vmem>>, vector<8x128xf32>
    %230 = arith.mulf %228, %229 : vector<8x128xf32>
    %231 = vector.extract_strided_slice %225 {offsets = [0, 0], sizes = [8, 128], strides = [1, 1]} : vector<8x256xf32> to vector<8x128xf32>
    %232 = arith.mulf %231, %227 : vector<8x128xf32>
    %233 = arith.addf %230, %232 : vector<8x128xf32>
    %234 = vector.extract_strided_slice %219 {offsets = [0, 256], sizes = [8, 128], strides = [1, 1]} : vector<8x512xf32> to vector<8x128xf32>
    %235 = arith.negf %234 : vector<8x128xf32>
    %236 = math.exp %235 : vector<8x128xf32>
    %cst_112 = arith.constant 1.000000e+00 : f32
    %237 = vector.broadcast %cst_112 : f32 to vector<8x128xf32>
    %238 = arith.addf %237, %236 : vector<8x128xf32>
    %239 = arith.divf %237, %238 : vector<8x128xf32>
    %240 = math.tanh %233 : vector<8x128xf32>
    %241 = arith.mulf %239, %240 : vector<8x128xf32>
    %c0_113 = arith.constant 0 : index
    %c0_114 = arith.constant 0 : index
    %242 = vector.load %arg5[%c0_113, %c0_114] : memref<8x128xf32, #tpu.memory_space<vmem>>, vector<8x128xf32>
    tpu.vector_store %arg5[%c0_113, %c0_114], %233 {strides = array<i32>} : memref<8x128xf32, #tpu.memory_space<vmem>>, vector<8x128xf32>,
    %c0_115 = arith.constant 0 : index
    %c0_116 = arith.constant 0 : index
    %243 = vector.load %arg4[%c0_115, %c0_116] : memref<8x128xf32, #tpu.memory_space<vmem>>, vector<8x128xf32>
    tpu.vector_store %arg4[%c0_115, %c0_116], %241 {strides = array<i32>} : memref<8x128xf32, #tpu.memory_space<vmem>>, vector<8x128xf32>,
    %244 = arith.index_cast %c6_i32 : i32 to index
    %c0_117 = arith.constant 0 : index
    %c0_118 = arith.constant 0 : index
    %245 = vector.load %arg3[%244, %c0_117, %c0_118] : memref<8x8x128xf32, #tpu.memory_space<vmem>>, vector<1x8x128xf32>
    %246 = vector.shape_cast %245 : vector<1x8x128xf32> to vector<8x128xf32>
    %247 = vector.shape_cast %241 : vector<8x128xf32> to vector<1x8x128xf32>
    tpu.vector_store %arg3[%244, %c0_117, %c0_118], %247 {strides = array<i32>} : memref<8x8x128xf32, #tpu.memory_space<vmem>>, vector<1x8x128xf32>,
    %c7_i32 = arith.constant 7 : i32
    %248 = arith.index_cast %c7_i32 : i32 to index
    %c0_119 = arith.constant 0 : index
    %c0_120 = arith.constant 0 : index
    %249 = vector.load %arg1[%248, %c0_119, %c0_120] : memref<8x8x512xf32, #tpu.memory_space<vmem>>, vector<1x8x512xf32>
    %250 = vector.shape_cast %249 : vector<1x8x512xf32> to vector<8x512xf32>
    %c0_121 = arith.constant 0 : index
    %c0_122 = arith.constant 0 : index
    %251 = vector.load %arg4[%c0_121, %c0_122] : memref<8x128xf32, #tpu.memory_space<vmem>>, vector<8x128xf32>
    %c0_123 = arith.constant 0 : index
    %c0_124 = arith.constant 0 : index
    %252 = vector.load %arg2[%c0_123, %c0_124] : memref<128x512xf32, #tpu.memory_space<vmem>>, vector<128x512xf32>
    %cst_125 = arith.constant dense<0.000000e+00> : vector<8x512xf32>
    %253 = tpu.matmul %251, %252, %cst_125 {dimension_numbers = #tpu.dot_dimension_numbers<[1], [0], [0], [1], [0, 0, 1, 1], [], []>} : vector<8x128xf32>, vector<128x512xf32>, vector<8x512xf32> -> vector<8x512xf32>
    %254 = arith.addf %250, %253 : vector<8x512xf32>
    %255 = vector.extract_strided_slice %254 {offsets = [0, 0], sizes = [8, 256], strides = [1, 1]} : vector<8x512xf32> to vector<8x256xf32>
    %256 = arith.negf %255 : vector<8x256xf32>
    %257 = math.exp %256 : vector<8x256xf32>
    %cst_126 = arith.constant 1.000000e+00 : f32
    %258 = vector.broadcast %cst_126 : f32 to vector<8x256xf32>
    %259 = arith.addf %258, %257 : vector<8x256xf32>
    %260 = arith.divf %258, %259 : vector<8x256xf32>
    %261 = vector.extract_strided_slice %254 {offsets = [0, 384], sizes = [8, 128], strides = [1, 1]} : vector<8x512xf32> to vector<8x128xf32>
    %262 = math.tanh %261 : vector<8x128xf32>
    %263 = vector.extract_strided_slice %260 {offsets = [0, 128], sizes = [8, 128], strides = [1, 1]} : vector<8x256xf32> to vector<8x128xf32>
    %c0_127 = arith.constant 0 : index
    %c0_128 = arith.constant 0 : index
    %264 = vector.load %arg5[%c0_127, %c0_128] : memref<8x128xf32, #tpu.memory_space<vmem>>, vector<8x128xf32>
    %265 = arith.mulf %263, %264 : vector<8x128xf32>
    %266 = vector.extract_strided_slice %260 {offsets = [0, 0], sizes = [8, 128], strides = [1, 1]} : vector<8x256xf32> to vector<8x128xf32>
    %267 = arith.mulf %266, %262 : vector<8x128xf32>
    %268 = arith.addf %265, %267 : vector<8x128xf32>
    %269 = vector.extract_strided_slice %254 {offsets = [0, 256], sizes = [8, 128], strides = [1, 1]} : vector<8x512xf32> to vector<8x128xf32>
    %270 = arith.negf %269 : vector<8x128xf32>
    %271 = math.exp %270 : vector<8x128xf32>
    %cst_129 = arith.constant 1.000000e+00 : f32
    %272 = vector.broadcast %cst_129 : f32 to vector<8x128xf32>
    %273 = arith.addf %272, %271 : vector<8x128xf32>
    %274 = arith.divf %272, %273 : vector<8x128xf32>
    %275 = math.tanh %268 : vector<8x128xf32>
    %276 = arith.mulf %274, %275 : vector<8x128xf32>
    %c0_130 = arith.constant 0 : index
    %c0_131 = arith.constant 0 : index
    %277 = vector.load %arg5[%c0_130, %c0_131] : memref<8x128xf32, #tpu.memory_space<vmem>>, vector<8x128xf32>
    tpu.vector_store %arg5[%c0_130, %c0_131], %268 {strides = array<i32>} : memref<8x128xf32, #tpu.memory_space<vmem>>, vector<8x128xf32>,
    %c0_132 = arith.constant 0 : index
    %c0_133 = arith.constant 0 : index
    %278 = vector.load %arg4[%c0_132, %c0_133] : memref<8x128xf32, #tpu.memory_space<vmem>>, vector<8x128xf32>
    tpu.vector_store %arg4[%c0_132, %c0_133], %276 {strides = array<i32>} : memref<8x128xf32, #tpu.memory_space<vmem>>, vector<8x128xf32>,
    %279 = arith.index_cast %c7_i32 : i32 to index
    %c0_134 = arith.constant 0 : index
    %c0_135 = arith.constant 0 : index
    %280 = vector.load %arg3[%279, %c0_134, %c0_135] : memref<8x8x128xf32, #tpu.memory_space<vmem>>, vector<1x8x128xf32>
    %281 = vector.shape_cast %280 : vector<1x8x128xf32> to vector<8x128xf32>
    %282 = vector.shape_cast %276 : vector<8x128xf32> to vector<1x8x128xf32>
    tpu.vector_store %arg3[%279, %c0_134, %c0_135], %282 {strides = array<i32>} : memref<8x8x128xf32, #tpu.memory_space<vmem>>, vector<1x8x128xf32>,
    %c8_i32 = arith.constant 8 : i32
    return
  }
  func.func @transform_0(%arg0: i32) -> (i32, i32, i32) {
    %c0_i32 = arith.constant 0 : i32
    %c0_i32_0 = arith.constant 0 : i32
    %c0_i32_1 = arith.constant 0 : i32
    return %arg0, %c0_i32, %c0_i32_0 : i32, i32, i32
  }
  func.func @transform_1(%arg0: i32) -> (i32, i32) {
    %c0_i32 = arith.constant 0 : i32
    %c0_i32_0 = arith.constant 0 : i32
    %c0_i32_1 = arith.constant 0 : i32
    return %c0_i32, %c0_i32_0 : i32, i32
  }
  func.func @transform_2(%arg0: i32) -> (i32, i32, i32) {
    %c0_i32 = arith.constant 0 : i32
    %c0_i32_0 = arith.constant 0 : i32
    %c0_i32_1 = arith.constant 0 : i32
    return %arg0, %c0_i32, %c0_i32_0 : i32, i32, i32
  }
}

module attributes {stable_mosaic.version = 11 : i64} {
  func.func @_lstm_recurrence_kernel(%arg0: i32, %arg1: memref<8x8x512xf32, #tpu.memory_space<vmem>>, %arg2: memref<128x512xf32, #tpu.memory_space<vmem>>, %arg3: memref<8x8x128xf32, #tpu.memory_space<vmem>>, %arg4: memref<8x128xf32, #tpu.memory_space<vmem>>, %arg5: memref<8x128xf32, #tpu.memory_space<vmem>>) attributes {dimension_semantics = [#tpu.dimension_semantics<arbitrary>], iteration_bounds = array<i64: 1>, scalar_prefetch = 0 : i64, scratch_operands = 2 : i64, tpu.core_type = #tpu.core_type<tc>, window_params = [{transform_indices = @transform_0, window_bounds = array<i64: 8, 8, 512>}, {pipeline_mode = #tpu.pipeline_mode<synchronous>, transform_indices = @transform_1, window_bounds = array<i64: 128, 512>}, {transform_indices = @transform_2, window_bounds = array<i64: 8, 8, 128>}]} {
    %c0_i32 = arith.constant 0 : i32
    %0 = arith.cmpi eq, %arg0, %c0_i32 : i32
    %1 = arith.extui %0 : i1 to i32
    %c0_i32_0 = arith.constant 0 : i32
    %2 = arith.cmpi ne, %1, %c0_i32_0 : i32
    scf.if %2 {
      %cst_136 = arith.constant 0.000000e+00 : f32
      %283 = vector.broadcast %cst_136 : f32 to vector<8x128xf32>
      %c0_137 = arith.constant 0 : index
      %c0_138 = arith.constant 0 : index
      %284 = vector.load %arg4[%c0_137, %c0_138] : memref<8x128xf32, #tpu.memory_space<vmem>>, vector<8x128xf32>
      tpu.vector_store %arg4[%c0_137, %c0_138], %283 {strides = array<i32>} : memref<8x128xf32, #tpu.memory_space<vmem>>, vector<8x128xf32>,
      %cst_139 = arith.constant 0.000000e+00 : f32
      %285 = vector.broadcast %cst_139 : f32 to vector<8x128xf32>
      %c0_140 = arith.constant 0 : index
      %c0_141 = arith.constant 0 : index
      %286 = vector.load %arg5[%c0_140, %c0_141] : memref<8x128xf32, #tpu.memory_space<vmem>>, vector<8x128xf32>
      tpu.vector_store %arg5[%c0_140, %c0_141], %285 {strides = array<i32>} : memref<8x128xf32, #tpu.memory_space<vmem>>, vector<8x128xf32>,
    } else {
    }
    %c0_i32_1 = arith.constant 0 : i32
    %3 = arith.index_cast %c0_i32_1 : i32 to index
    %c0 = arith.constant 0 : index
    %c0_2 = arith.constant 0 : index
    %4 = vector.load %arg1[%3, %c0, %c0_2] : memref<8x8x512xf32, #tpu.memory_space<vmem>>, vector<1x8x512xf32>
    %5 = vector.shape_cast %4 : vector<1x8x512xf32> to vector<8x512xf32>
    %c0_3 = arith.constant 0 : index
    %c0_4 = arith.constant 0 : index
    %6 = vector.load %arg4[%c0_3, %c0_4] : memref<8x128xf32, #tpu.memory_space<vmem>>, vector<8x128xf32>
    %c0_5 = arith.constant 0 : index
    %c0_6 = arith.constant 0 : index
    %7 = vector.load %arg2[%c0_5, %c0_6] : memref<128x512xf32, #tpu.memory_space<vmem>>, vector<128x512xf32>
    %cst = arith.constant dense<0.000000e+00> : vector<8x512xf32>
    %8 = tpu.matmul %6, %7, %cst {dimension_numbers = #tpu.dot_dimension_numbers<[1], [0], [0], [1], [0, 0, 1, 1], [], []>} : vector<8x128xf32>, vector<128x512xf32>, vector<8x512xf32> -> vector<8x512xf32>
    %9 = arith.addf %5, %8 : vector<8x512xf32>
    %10 = vector.extract_strided_slice %9 {offsets = [0, 0], sizes = [8, 256], strides = [1, 1]} : vector<8x512xf32> to vector<8x256xf32>
    %11 = arith.negf %10 : vector<8x256xf32>
    %12 = math.exp %11 : vector<8x256xf32>
    %cst_7 = arith.constant 1.000000e+00 : f32
    %13 = vector.broadcast %cst_7 : f32 to vector<8x256xf32>
    %14 = arith.addf %13, %12 : vector<8x256xf32>
    %15 = arith.divf %13, %14 : vector<8x256xf32>
    %16 = vector.extract_strided_slice %9 {offsets = [0, 384], sizes = [8, 128], strides = [1, 1]} : vector<8x512xf32> to vector<8x128xf32>
    %17 = math.tanh %16 : vector<8x128xf32>
    %18 = vector.extract_strided_slice %15 {offsets = [0, 128], sizes = [8, 128], strides = [1, 1]} : vector<8x256xf32> to vector<8x128xf32>
    %c0_8 = arith.constant 0 : index
    %c0_9 = arith.constant 0 : index
    %19 = vector.load %arg5[%c0_8, %c0_9] : memref<8x128xf32, #tpu.memory_space<vmem>>, vector<8x128xf32>
    %20 = arith.mulf %18, %19 : vector<8x128xf32>
    %21 = vector.extract_strided_slice %15 {offsets = [0, 0], sizes = [8, 128], strides = [1, 1]} : vector<8x256xf32> to vector<8x128xf32>
    %22 = arith.mulf %21, %17 : vector<8x128xf32>
    %23 = arith.addf %20, %22 : vector<8x128xf32>
    %24 = vector.extract_strided_slice %9 {offsets = [0, 256], sizes = [8, 128], strides = [1, 1]} : vector<8x512xf32> to vector<8x128xf32>
    %25 = arith.negf %24 : vector<8x128xf32>
    %26 = math.exp %25 : vector<8x128xf32>
    %cst_10 = arith.constant 1.000000e+00 : f32
    %27 = vector.broadcast %cst_10 : f32 to vector<8x128xf32>
    %28 = arith.addf %27, %26 : vector<8x128xf32>
    %29 = arith.divf %27, %28 : vector<8x128xf32>
    %30 = math.tanh %23 : vector<8x128xf32>
    %31 = arith.mulf %29, %30 : vector<8x128xf32>
    %c0_11 = arith.constant 0 : index
    %c0_12 = arith.constant 0 : index
    %32 = vector.load %arg5[%c0_11, %c0_12] : memref<8x128xf32, #tpu.memory_space<vmem>>, vector<8x128xf32>
    tpu.vector_store %arg5[%c0_11, %c0_12], %23 {strides = array<i32>} : memref<8x128xf32, #tpu.memory_space<vmem>>, vector<8x128xf32>,
    %c0_13 = arith.constant 0 : index
    %c0_14 = arith.constant 0 : index
    %33 = vector.load %arg4[%c0_13, %c0_14] : memref<8x128xf32, #tpu.memory_space<vmem>>, vector<8x128xf32>
    tpu.vector_store %arg4[%c0_13, %c0_14], %31 {strides = array<i32>} : memref<8x128xf32, #tpu.memory_space<vmem>>, vector<8x128xf32>,
    %34 = arith.index_cast %c0_i32_1 : i32 to index
    %c0_15 = arith.constant 0 : index
    %c0_16 = arith.constant 0 : index
    %35 = vector.load %arg3[%34, %c0_15, %c0_16] : memref<8x8x128xf32, #tpu.memory_space<vmem>>, vector<1x8x128xf32>
    %36 = vector.shape_cast %35 : vector<1x8x128xf32> to vector<8x128xf32>
    %37 = vector.shape_cast %31 : vector<8x128xf32> to vector<1x8x128xf32>
    tpu.vector_store %arg3[%34, %c0_15, %c0_16], %37 {strides = array<i32>} : memref<8x8x128xf32, #tpu.memory_space<vmem>>, vector<1x8x128xf32>,
    %c1_i32 = arith.constant 1 : i32
    %38 = arith.index_cast %c1_i32 : i32 to index
    %c0_17 = arith.constant 0 : index
    %c0_18 = arith.constant 0 : index
    %39 = vector.load %arg1[%38, %c0_17, %c0_18] : memref<8x8x512xf32, #tpu.memory_space<vmem>>, vector<1x8x512xf32>
    %40 = vector.shape_cast %39 : vector<1x8x512xf32> to vector<8x512xf32>
    %c0_19 = arith.constant 0 : index
    %c0_20 = arith.constant 0 : index
    %41 = vector.load %arg4[%c0_19, %c0_20] : memref<8x128xf32, #tpu.memory_space<vmem>>, vector<8x128xf32>
    %c0_21 = arith.constant 0 : index
    %c0_22 = arith.constant 0 : index
    %42 = vector.load %arg2[%c0_21, %c0_22] : memref<128x512xf32, #tpu.memory_space<vmem>>, vector<128x512xf32>
    %cst_23 = arith.constant dense<0.000000e+00> : vector<8x512xf32>
    %43 = tpu.matmul %41, %42, %cst_23 {dimension_numbers = #tpu.dot_dimension_numbers<[1], [0], [0], [1], [0, 0, 1, 1], [], []>} : vector<8x128xf32>, vector<128x512xf32>, vector<8x512xf32> -> vector<8x512xf32>
    %44 = arith.addf %40, %43 : vector<8x512xf32>
    %45 = vector.extract_strided_slice %44 {offsets = [0, 0], sizes = [8, 256], strides = [1, 1]} : vector<8x512xf32> to vector<8x256xf32>
    %46 = arith.negf %45 : vector<8x256xf32>
    %47 = math.exp %46 : vector<8x256xf32>
    %cst_24 = arith.constant 1.000000e+00 : f32
    %48 = vector.broadcast %cst_24 : f32 to vector<8x256xf32>
    %49 = arith.addf %48, %47 : vector<8x256xf32>
    %50 = arith.divf %48, %49 : vector<8x256xf32>
    %51 = vector.extract_strided_slice %44 {offsets = [0, 384], sizes = [8, 128], strides = [1, 1]} : vector<8x512xf32> to vector<8x128xf32>
    %52 = math.tanh %51 : vector<8x128xf32>
    %53 = vector.extract_strided_slice %50 {offsets = [0, 128], sizes = [8, 128], strides = [1, 1]} : vector<8x256xf32> to vector<8x128xf32>
    %c0_25 = arith.constant 0 : index
    %c0_26 = arith.constant 0 : index
    %54 = vector.load %arg5[%c0_25, %c0_26] : memref<8x128xf32, #tpu.memory_space<vmem>>, vector<8x128xf32>
    %55 = arith.mulf %53, %54 : vector<8x128xf32>
    %56 = vector.extract_strided_slice %50 {offsets = [0, 0], sizes = [8, 128], strides = [1, 1]} : vector<8x256xf32> to vector<8x128xf32>
    %57 = arith.mulf %56, %52 : vector<8x128xf32>
    %58 = arith.addf %55, %57 : vector<8x128xf32>
    %59 = vector.extract_strided_slice %44 {offsets = [0, 256], sizes = [8, 128], strides = [1, 1]} : vector<8x512xf32> to vector<8x128xf32>
    %60 = arith.negf %59 : vector<8x128xf32>
    %61 = math.exp %60 : vector<8x128xf32>
    %cst_27 = arith.constant 1.000000e+00 : f32
    %62 = vector.broadcast %cst_27 : f32 to vector<8x128xf32>
    %63 = arith.addf %62, %61 : vector<8x128xf32>
    %64 = arith.divf %62, %63 : vector<8x128xf32>
    %65 = math.tanh %58 : vector<8x128xf32>
    %66 = arith.mulf %64, %65 : vector<8x128xf32>
    %c0_28 = arith.constant 0 : index
    %c0_29 = arith.constant 0 : index
    %67 = vector.load %arg5[%c0_28, %c0_29] : memref<8x128xf32, #tpu.memory_space<vmem>>, vector<8x128xf32>
    tpu.vector_store %arg5[%c0_28, %c0_29], %58 {strides = array<i32>} : memref<8x128xf32, #tpu.memory_space<vmem>>, vector<8x128xf32>,
    %c0_30 = arith.constant 0 : index
    %c0_31 = arith.constant 0 : index
    %68 = vector.load %arg4[%c0_30, %c0_31] : memref<8x128xf32, #tpu.memory_space<vmem>>, vector<8x128xf32>
    tpu.vector_store %arg4[%c0_30, %c0_31], %66 {strides = array<i32>} : memref<8x128xf32, #tpu.memory_space<vmem>>, vector<8x128xf32>,
    %69 = arith.index_cast %c1_i32 : i32 to index
    %c0_32 = arith.constant 0 : index
    %c0_33 = arith.constant 0 : index
    %70 = vector.load %arg3[%69, %c0_32, %c0_33] : memref<8x8x128xf32, #tpu.memory_space<vmem>>, vector<1x8x128xf32>
    %71 = vector.shape_cast %70 : vector<1x8x128xf32> to vector<8x128xf32>
    %72 = vector.shape_cast %66 : vector<8x128xf32> to vector<1x8x128xf32>
    tpu.vector_store %arg3[%69, %c0_32, %c0_33], %72 {strides = array<i32>} : memref<8x8x128xf32, #tpu.memory_space<vmem>>, vector<1x8x128xf32>,
    %c2_i32 = arith.constant 2 : i32
    %73 = arith.index_cast %c2_i32 : i32 to index
    %c0_34 = arith.constant 0 : index
    %c0_35 = arith.constant 0 : index
    %74 = vector.load %arg1[%73, %c0_34, %c0_35] : memref<8x8x512xf32, #tpu.memory_space<vmem>>, vector<1x8x512xf32>
    %75 = vector.shape_cast %74 : vector<1x8x512xf32> to vector<8x512xf32>
    %c0_36 = arith.constant 0 : index
    %c0_37 = arith.constant 0 : index
    %76 = vector.load %arg4[%c0_36, %c0_37] : memref<8x128xf32, #tpu.memory_space<vmem>>, vector<8x128xf32>
    %c0_38 = arith.constant 0 : index
    %c0_39 = arith.constant 0 : index
    %77 = vector.load %arg2[%c0_38, %c0_39] : memref<128x512xf32, #tpu.memory_space<vmem>>, vector<128x512xf32>
    %cst_40 = arith.constant dense<0.000000e+00> : vector<8x512xf32>
    %78 = tpu.matmul %76, %77, %cst_40 {dimension_numbers = #tpu.dot_dimension_numbers<[1], [0], [0], [1], [0, 0, 1, 1], [], []>} : vector<8x128xf32>, vector<128x512xf32>, vector<8x512xf32> -> vector<8x512xf32>
    %79 = arith.addf %75, %78 : vector<8x512xf32>
    %80 = vector.extract_strided_slice %79 {offsets = [0, 0], sizes = [8, 256], strides = [1, 1]} : vector<8x512xf32> to vector<8x256xf32>
    %81 = arith.negf %80 : vector<8x256xf32>
    %82 = math.exp %81 : vector<8x256xf32>
    %cst_41 = arith.constant 1.000000e+00 : f32
    %83 = vector.broadcast %cst_41 : f32 to vector<8x256xf32>
    %84 = arith.addf %83, %82 : vector<8x256xf32>
    %85 = arith.divf %83, %84 : vector<8x256xf32>
    %86 = vector.extract_strided_slice %79 {offsets = [0, 384], sizes = [8, 128], strides = [1, 1]} : vector<8x512xf32> to vector<8x128xf32>
    %87 = math.tanh %86 : vector<8x128xf32>
    %88 = vector.extract_strided_slice %85 {offsets = [0, 128], sizes = [8, 128], strides = [1, 1]} : vector<8x256xf32> to vector<8x128xf32>
    %c0_42 = arith.constant 0 : index
    %c0_43 = arith.constant 0 : index
    %89 = vector.load %arg5[%c0_42, %c0_43] : memref<8x128xf32, #tpu.memory_space<vmem>>, vector<8x128xf32>
    %90 = arith.mulf %88, %89 : vector<8x128xf32>
    %91 = vector.extract_strided_slice %85 {offsets = [0, 0], sizes = [8, 128], strides = [1, 1]} : vector<8x256xf32> to vector<8x128xf32>
    %92 = arith.mulf %91, %87 : vector<8x128xf32>
    %93 = arith.addf %90, %92 : vector<8x128xf32>
    %94 = vector.extract_strided_slice %79 {offsets = [0, 256], sizes = [8, 128], strides = [1, 1]} : vector<8x512xf32> to vector<8x128xf32>
    %95 = arith.negf %94 : vector<8x128xf32>
    %96 = math.exp %95 : vector<8x128xf32>
    %cst_44 = arith.constant 1.000000e+00 : f32
    %97 = vector.broadcast %cst_44 : f32 to vector<8x128xf32>
    %98 = arith.addf %97, %96 : vector<8x128xf32>
    %99 = arith.divf %97, %98 : vector<8x128xf32>
    %100 = math.tanh %93 : vector<8x128xf32>
    %101 = arith.mulf %99, %100 : vector<8x128xf32>
    %c0_45 = arith.constant 0 : index
    %c0_46 = arith.constant 0 : index
    %102 = vector.load %arg5[%c0_45, %c0_46] : memref<8x128xf32, #tpu.memory_space<vmem>>, vector<8x128xf32>
    tpu.vector_store %arg5[%c0_45, %c0_46], %93 {strides = array<i32>} : memref<8x128xf32, #tpu.memory_space<vmem>>, vector<8x128xf32>,
    %c0_47 = arith.constant 0 : index
    %c0_48 = arith.constant 0 : index
    %103 = vector.load %arg4[%c0_47, %c0_48] : memref<8x128xf32, #tpu.memory_space<vmem>>, vector<8x128xf32>
    tpu.vector_store %arg4[%c0_47, %c0_48], %101 {strides = array<i32>} : memref<8x128xf32, #tpu.memory_space<vmem>>, vector<8x128xf32>,
    %104 = arith.index_cast %c2_i32 : i32 to index
    %c0_49 = arith.constant 0 : index
    %c0_50 = arith.constant 0 : index
    %105 = vector.load %arg3[%104, %c0_49, %c0_50] : memref<8x8x128xf32, #tpu.memory_space<vmem>>, vector<1x8x128xf32>
    %106 = vector.shape_cast %105 : vector<1x8x128xf32> to vector<8x128xf32>
    %107 = vector.shape_cast %101 : vector<8x128xf32> to vector<1x8x128xf32>
    tpu.vector_store %arg3[%104, %c0_49, %c0_50], %107 {strides = array<i32>} : memref<8x8x128xf32, #tpu.memory_space<vmem>>, vector<1x8x128xf32>,
    %c3_i32 = arith.constant 3 : i32
    %108 = arith.index_cast %c3_i32 : i32 to index
    %c0_51 = arith.constant 0 : index
    %c0_52 = arith.constant 0 : index
    %109 = vector.load %arg1[%108, %c0_51, %c0_52] : memref<8x8x512xf32, #tpu.memory_space<vmem>>, vector<1x8x512xf32>
    %110 = vector.shape_cast %109 : vector<1x8x512xf32> to vector<8x512xf32>
    %c0_53 = arith.constant 0 : index
    %c0_54 = arith.constant 0 : index
    %111 = vector.load %arg4[%c0_53, %c0_54] : memref<8x128xf32, #tpu.memory_space<vmem>>, vector<8x128xf32>
    %c0_55 = arith.constant 0 : index
    %c0_56 = arith.constant 0 : index
    %112 = vector.load %arg2[%c0_55, %c0_56] : memref<128x512xf32, #tpu.memory_space<vmem>>, vector<128x512xf32>
    %cst_57 = arith.constant dense<0.000000e+00> : vector<8x512xf32>
    %113 = tpu.matmul %111, %112, %cst_57 {dimension_numbers = #tpu.dot_dimension_numbers<[1], [0], [0], [1], [0, 0, 1, 1], [], []>} : vector<8x128xf32>, vector<128x512xf32>, vector<8x512xf32> -> vector<8x512xf32>
    %114 = arith.addf %110, %113 : vector<8x512xf32>
    %115 = vector.extract_strided_slice %114 {offsets = [0, 0], sizes = [8, 256], strides = [1, 1]} : vector<8x512xf32> to vector<8x256xf32>
    %116 = arith.negf %115 : vector<8x256xf32>
    %117 = math.exp %116 : vector<8x256xf32>
    %cst_58 = arith.constant 1.000000e+00 : f32
    %118 = vector.broadcast %cst_58 : f32 to vector<8x256xf32>
    %119 = arith.addf %118, %117 : vector<8x256xf32>
    %120 = arith.divf %118, %119 : vector<8x256xf32>
    %121 = vector.extract_strided_slice %114 {offsets = [0, 384], sizes = [8, 128], strides = [1, 1]} : vector<8x512xf32> to vector<8x128xf32>
    %122 = math.tanh %121 : vector<8x128xf32>
    %123 = vector.extract_strided_slice %120 {offsets = [0, 128], sizes = [8, 128], strides = [1, 1]} : vector<8x256xf32> to vector<8x128xf32>
    %c0_59 = arith.constant 0 : index
    %c0_60 = arith.constant 0 : index
    %124 = vector.load %arg5[%c0_59, %c0_60] : memref<8x128xf32, #tpu.memory_space<vmem>>, vector<8x128xf32>
    %125 = arith.mulf %123, %124 : vector<8x128xf32>
    %126 = vector.extract_strided_slice %120 {offsets = [0, 0], sizes = [8, 128], strides = [1, 1]} : vector<8x256xf32> to vector<8x128xf32>
    %127 = arith.mulf %126, %122 : vector<8x128xf32>
    %128 = arith.addf %125, %127 : vector<8x128xf32>
    %129 = vector.extract_strided_slice %114 {offsets = [0, 256], sizes = [8, 128], strides = [1, 1]} : vector<8x512xf32> to vector<8x128xf32>
    %130 = arith.negf %129 : vector<8x128xf32>
    %131 = math.exp %130 : vector<8x128xf32>
    %cst_61 = arith.constant 1.000000e+00 : f32
    %132 = vector.broadcast %cst_61 : f32 to vector<8x128xf32>
    %133 = arith.addf %132, %131 : vector<8x128xf32>
    %134 = arith.divf %132, %133 : vector<8x128xf32>
    %135 = math.tanh %128 : vector<8x128xf32>
    %136 = arith.mulf %134, %135 : vector<8x128xf32>
    %c0_62 = arith.constant 0 : index
    %c0_63 = arith.constant 0 : index
    %137 = vector.load %arg5[%c0_62, %c0_63] : memref<8x128xf32, #tpu.memory_space<vmem>>, vector<8x128xf32>
    tpu.vector_store %arg5[%c0_62, %c0_63], %128 {strides = array<i32>} : memref<8x128xf32, #tpu.memory_space<vmem>>, vector<8x128xf32>,
    %c0_64 = arith.constant 0 : index
    %c0_65 = arith.constant 0 : index
    %138 = vector.load %arg4[%c0_64, %c0_65] : memref<8x128xf32, #tpu.memory_space<vmem>>, vector<8x128xf32>
    tpu.vector_store %arg4[%c0_64, %c0_65], %136 {strides = array<i32>} : memref<8x128xf32, #tpu.memory_space<vmem>>, vector<8x128xf32>,
    %139 = arith.index_cast %c3_i32 : i32 to index
    %c0_66 = arith.constant 0 : index
    %c0_67 = arith.constant 0 : index
    %140 = vector.load %arg3[%139, %c0_66, %c0_67] : memref<8x8x128xf32, #tpu.memory_space<vmem>>, vector<1x8x128xf32>
    %141 = vector.shape_cast %140 : vector<1x8x128xf32> to vector<8x128xf32>
    %142 = vector.shape_cast %136 : vector<8x128xf32> to vector<1x8x128xf32>
    tpu.vector_store %arg3[%139, %c0_66, %c0_67], %142 {strides = array<i32>} : memref<8x8x128xf32, #tpu.memory_space<vmem>>, vector<1x8x128xf32>,
    %c4_i32 = arith.constant 4 : i32
    %143 = arith.index_cast %c4_i32 : i32 to index
    %c0_68 = arith.constant 0 : index
    %c0_69 = arith.constant 0 : index
    %144 = vector.load %arg1[%143, %c0_68, %c0_69] : memref<8x8x512xf32, #tpu.memory_space<vmem>>, vector<1x8x512xf32>
    %145 = vector.shape_cast %144 : vector<1x8x512xf32> to vector<8x512xf32>
    %c0_70 = arith.constant 0 : index
    %c0_71 = arith.constant 0 : index
    %146 = vector.load %arg4[%c0_70, %c0_71] : memref<8x128xf32, #tpu.memory_space<vmem>>, vector<8x128xf32>
    %c0_72 = arith.constant 0 : index
    %c0_73 = arith.constant 0 : index
    %147 = vector.load %arg2[%c0_72, %c0_73] : memref<128x512xf32, #tpu.memory_space<vmem>>, vector<128x512xf32>
    %cst_74 = arith.constant dense<0.000000e+00> : vector<8x512xf32>
    %148 = tpu.matmul %146, %147, %cst_74 {dimension_numbers = #tpu.dot_dimension_numbers<[1], [0], [0], [1], [0, 0, 1, 1], [], []>} : vector<8x128xf32>, vector<128x512xf32>, vector<8x512xf32> -> vector<8x512xf32>
    %149 = arith.addf %145, %148 : vector<8x512xf32>
    %150 = vector.extract_strided_slice %149 {offsets = [0, 0], sizes = [8, 256], strides = [1, 1]} : vector<8x512xf32> to vector<8x256xf32>
    %151 = arith.negf %150 : vector<8x256xf32>
    %152 = math.exp %151 : vector<8x256xf32>
    %cst_75 = arith.constant 1.000000e+00 : f32
    %153 = vector.broadcast %cst_75 : f32 to vector<8x256xf32>
    %154 = arith.addf %153, %152 : vector<8x256xf32>
    %155 = arith.divf %153, %154 : vector<8x256xf32>
    %156 = vector.extract_strided_slice %149 {offsets = [0, 384], sizes = [8, 128], strides = [1, 1]} : vector<8x512xf32> to vector<8x128xf32>
    %157 = math.tanh %156 : vector<8x128xf32>
    %158 = vector.extract_strided_slice %155 {offsets = [0, 128], sizes = [8, 128], strides = [1, 1]} : vector<8x256xf32> to vector<8x128xf32>
    %c0_76 = arith.constant 0 : index
    %c0_77 = arith.constant 0 : index
    %159 = vector.load %arg5[%c0_76, %c0_77] : memref<8x128xf32, #tpu.memory_space<vmem>>, vector<8x128xf32>
    %160 = arith.mulf %158, %159 : vector<8x128xf32>
    %161 = vector.extract_strided_slice %155 {offsets = [0, 0], sizes = [8, 128], strides = [1, 1]} : vector<8x256xf32> to vector<8x128xf32>
    %162 = arith.mulf %161, %157 : vector<8x128xf32>
    %163 = arith.addf %160, %162 : vector<8x128xf32>
    %164 = vector.extract_strided_slice %149 {offsets = [0, 256], sizes = [8, 128], strides = [1, 1]} : vector<8x512xf32> to vector<8x128xf32>
    %165 = arith.negf %164 : vector<8x128xf32>
    %166 = math.exp %165 : vector<8x128xf32>
    %cst_78 = arith.constant 1.000000e+00 : f32
    %167 = vector.broadcast %cst_78 : f32 to vector<8x128xf32>
    %168 = arith.addf %167, %166 : vector<8x128xf32>
    %169 = arith.divf %167, %168 : vector<8x128xf32>
    %170 = math.tanh %163 : vector<8x128xf32>
    %171 = arith.mulf %169, %170 : vector<8x128xf32>
    %c0_79 = arith.constant 0 : index
    %c0_80 = arith.constant 0 : index
    %172 = vector.load %arg5[%c0_79, %c0_80] : memref<8x128xf32, #tpu.memory_space<vmem>>, vector<8x128xf32>
    tpu.vector_store %arg5[%c0_79, %c0_80], %163 {strides = array<i32>} : memref<8x128xf32, #tpu.memory_space<vmem>>, vector<8x128xf32>,
    %c0_81 = arith.constant 0 : index
    %c0_82 = arith.constant 0 : index
    %173 = vector.load %arg4[%c0_81, %c0_82] : memref<8x128xf32, #tpu.memory_space<vmem>>, vector<8x128xf32>
    tpu.vector_store %arg4[%c0_81, %c0_82], %171 {strides = array<i32>} : memref<8x128xf32, #tpu.memory_space<vmem>>, vector<8x128xf32>,
    %174 = arith.index_cast %c4_i32 : i32 to index
    %c0_83 = arith.constant 0 : index
    %c0_84 = arith.constant 0 : index
    %175 = vector.load %arg3[%174, %c0_83, %c0_84] : memref<8x8x128xf32, #tpu.memory_space<vmem>>, vector<1x8x128xf32>
    %176 = vector.shape_cast %175 : vector<1x8x128xf32> to vector<8x128xf32>
    %177 = vector.shape_cast %171 : vector<8x128xf32> to vector<1x8x128xf32>
    tpu.vector_store %arg3[%174, %c0_83, %c0_84], %177 {strides = array<i32>} : memref<8x8x128xf32, #tpu.memory_space<vmem>>, vector<1x8x128xf32>,
    %c5_i32 = arith.constant 5 : i32
    %178 = arith.index_cast %c5_i32 : i32 to index
    %c0_85 = arith.constant 0 : index
    %c0_86 = arith.constant 0 : index
    %179 = vector.load %arg1[%178, %c0_85, %c0_86] : memref<8x8x512xf32, #tpu.memory_space<vmem>>, vector<1x8x512xf32>
    %180 = vector.shape_cast %179 : vector<1x8x512xf32> to vector<8x512xf32>
    %c0_87 = arith.constant 0 : index
    %c0_88 = arith.constant 0 : index
    %181 = vector.load %arg4[%c0_87, %c0_88] : memref<8x128xf32, #tpu.memory_space<vmem>>, vector<8x128xf32>
    %c0_89 = arith.constant 0 : index
    %c0_90 = arith.constant 0 : index
    %182 = vector.load %arg2[%c0_89, %c0_90] : memref<128x512xf32, #tpu.memory_space<vmem>>, vector<128x512xf32>
    %cst_91 = arith.constant dense<0.000000e+00> : vector<8x512xf32>
    %183 = tpu.matmul %181, %182, %cst_91 {dimension_numbers = #tpu.dot_dimension_numbers<[1], [0], [0], [1], [0, 0, 1, 1], [], []>} : vector<8x128xf32>, vector<128x512xf32>, vector<8x512xf32> -> vector<8x512xf32>
    %184 = arith.addf %180, %183 : vector<8x512xf32>
    %185 = vector.extract_strided_slice %184 {offsets = [0, 0], sizes = [8, 256], strides = [1, 1]} : vector<8x512xf32> to vector<8x256xf32>
    %186 = arith.negf %185 : vector<8x256xf32>
    %187 = math.exp %186 : vector<8x256xf32>
    %cst_92 = arith.constant 1.000000e+00 : f32
    %188 = vector.broadcast %cst_92 : f32 to vector<8x256xf32>
    %189 = arith.addf %188, %187 : vector<8x256xf32>
    %190 = arith.divf %188, %189 : vector<8x256xf32>
    %191 = vector.extract_strided_slice %184 {offsets = [0, 384], sizes = [8, 128], strides = [1, 1]} : vector<8x512xf32> to vector<8x128xf32>
    %192 = math.tanh %191 : vector<8x128xf32>
    %193 = vector.extract_strided_slice %190 {offsets = [0, 128], sizes = [8, 128], strides = [1, 1]} : vector<8x256xf32> to vector<8x128xf32>
    %c0_93 = arith.constant 0 : index
    %c0_94 = arith.constant 0 : index
    %194 = vector.load %arg5[%c0_93, %c0_94] : memref<8x128xf32, #tpu.memory_space<vmem>>, vector<8x128xf32>
    %195 = arith.mulf %193, %194 : vector<8x128xf32>
    %196 = vector.extract_strided_slice %190 {offsets = [0, 0], sizes = [8, 128], strides = [1, 1]} : vector<8x256xf32> to vector<8x128xf32>
    %197 = arith.mulf %196, %192 : vector<8x128xf32>
    %198 = arith.addf %195, %197 : vector<8x128xf32>
    %199 = vector.extract_strided_slice %184 {offsets = [0, 256], sizes = [8, 128], strides = [1, 1]} : vector<8x512xf32> to vector<8x128xf32>
    %200 = arith.negf %199 : vector<8x128xf32>
    %201 = math.exp %200 : vector<8x128xf32>
    %cst_95 = arith.constant 1.000000e+00 : f32
    %202 = vector.broadcast %cst_95 : f32 to vector<8x128xf32>
    %203 = arith.addf %202, %201 : vector<8x128xf32>
    %204 = arith.divf %202, %203 : vector<8x128xf32>
    %205 = math.tanh %198 : vector<8x128xf32>
    %206 = arith.mulf %204, %205 : vector<8x128xf32>
    %c0_96 = arith.constant 0 : index
    %c0_97 = arith.constant 0 : index
    %207 = vector.load %arg5[%c0_96, %c0_97] : memref<8x128xf32, #tpu.memory_space<vmem>>, vector<8x128xf32>
    tpu.vector_store %arg5[%c0_96, %c0_97], %198 {strides = array<i32>} : memref<8x128xf32, #tpu.memory_space<vmem>>, vector<8x128xf32>,
    %c0_98 = arith.constant 0 : index
    %c0_99 = arith.constant 0 : index
    %208 = vector.load %arg4[%c0_98, %c0_99] : memref<8x128xf32, #tpu.memory_space<vmem>>, vector<8x128xf32>
    tpu.vector_store %arg4[%c0_98, %c0_99], %206 {strides = array<i32>} : memref<8x128xf32, #tpu.memory_space<vmem>>, vector<8x128xf32>,
    %209 = arith.index_cast %c5_i32 : i32 to index
    %c0_100 = arith.constant 0 : index
    %c0_101 = arith.constant 0 : index
    %210 = vector.load %arg3[%209, %c0_100, %c0_101] : memref<8x8x128xf32, #tpu.memory_space<vmem>>, vector<1x8x128xf32>
    %211 = vector.shape_cast %210 : vector<1x8x128xf32> to vector<8x128xf32>
    %212 = vector.shape_cast %206 : vector<8x128xf32> to vector<1x8x128xf32>
    tpu.vector_store %arg3[%209, %c0_100, %c0_101], %212 {strides = array<i32>} : memref<8x8x128xf32, #tpu.memory_space<vmem>>, vector<1x8x128xf32>,
    %c6_i32 = arith.constant 6 : i32
    %213 = arith.index_cast %c6_i32 : i32 to index
    %c0_102 = arith.constant 0 : index
    %c0_103 = arith.constant 0 : index
    %214 = vector.load %arg1[%213, %c0_102, %c0_103] : memref<8x8x512xf32, #tpu.memory_space<vmem>>, vector<1x8x512xf32>
    %215 = vector.shape_cast %214 : vector<1x8x512xf32> to vector<8x512xf32>
    %c0_104 = arith.constant 0 : index
    %c0_105 = arith.constant 0 : index
    %216 = vector.load %arg4[%c0_104, %c0_105] : memref<8x128xf32, #tpu.memory_space<vmem>>, vector<8x128xf32>
    %c0_106 = arith.constant 0 : index
    %c0_107 = arith.constant 0 : index
    %217 = vector.load %arg2[%c0_106, %c0_107] : memref<128x512xf32, #tpu.memory_space<vmem>>, vector<128x512xf32>
    %cst_108 = arith.constant dense<0.000000e+00> : vector<8x512xf32>
    %218 = tpu.matmul %216, %217, %cst_108 {dimension_numbers = #tpu.dot_dimension_numbers<[1], [0], [0], [1], [0, 0, 1, 1], [], []>} : vector<8x128xf32>, vector<128x512xf32>, vector<8x512xf32> -> vector<8x512xf32>
    %219 = arith.addf %215, %218 : vector<8x512xf32>
    %220 = vector.extract_strided_slice %219 {offsets = [0, 0], sizes = [8, 256], strides = [1, 1]} : vector<8x512xf32> to vector<8x256xf32>
    %221 = arith.negf %220 : vector<8x256xf32>
    %222 = math.exp %221 : vector<8x256xf32>
    %cst_109 = arith.constant 1.000000e+00 : f32
    %223 = vector.broadcast %cst_109 : f32 to vector<8x256xf32>
    %224 = arith.addf %223, %222 : vector<8x256xf32>
    %225 = arith.divf %223, %224 : vector<8x256xf32>
    %226 = vector.extract_strided_slice %219 {offsets = [0, 384], sizes = [8, 128], strides = [1, 1]} : vector<8x512xf32> to vector<8x128xf32>
    %227 = math.tanh %226 : vector<8x128xf32>
    %228 = vector.extract_strided_slice %225 {offsets = [0, 128], sizes = [8, 128], strides = [1, 1]} : vector<8x256xf32> to vector<8x128xf32>
    %c0_110 = arith.constant 0 : index
    %c0_111 = arith.constant 0 : index
    %229 = vector.load %arg5[%c0_110, %c0_111] : memref<8x128xf32, #tpu.memory_space<vmem>>, vector<8x128xf32>
    %230 = arith.mulf %228, %229 : vector<8x128xf32>
    %231 = vector.extract_strided_slice %225 {offsets = [0, 0], sizes = [8, 128], strides = [1, 1]} : vector<8x256xf32> to vector<8x128xf32>
    %232 = arith.mulf %231, %227 : vector<8x128xf32>
    %233 = arith.addf %230, %232 : vector<8x128xf32>
    %234 = vector.extract_strided_slice %219 {offsets = [0, 256], sizes = [8, 128], strides = [1, 1]} : vector<8x512xf32> to vector<8x128xf32>
    %235 = arith.negf %234 : vector<8x128xf32>
    %236 = math.exp %235 : vector<8x128xf32>
    %cst_112 = arith.constant 1.000000e+00 : f32
    %237 = vector.broadcast %cst_112 : f32 to vector<8x128xf32>
    %238 = arith.addf %237, %236 : vector<8x128xf32>
    %239 = arith.divf %237, %238 : vector<8x128xf32>
    %240 = math.tanh %233 : vector<8x128xf32>
    %241 = arith.mulf %239, %240 : vector<8x128xf32>
    %c0_113 = arith.constant 0 : index
    %c0_114 = arith.constant 0 : index
    %242 = vector.load %arg5[%c0_113, %c0_114] : memref<8x128xf32, #tpu.memory_space<vmem>>, vector<8x128xf32>
    tpu.vector_store %arg5[%c0_113, %c0_114], %233 {strides = array<i32>} : memref<8x128xf32, #tpu.memory_space<vmem>>, vector<8x128xf32>,
    %c0_115 = arith.constant 0 : index
    %c0_116 = arith.constant 0 : index
    %243 = vector.load %arg4[%c0_115, %c0_116] : memref<8x128xf32, #tpu.memory_space<vmem>>, vector<8x128xf32>
    tpu.vector_store %arg4[%c0_115, %c0_116], %241 {strides = array<i32>} : memref<8x128xf32, #tpu.memory_space<vmem>>, vector<8x128xf32>,
    %244 = arith.index_cast %c6_i32 : i32 to index
    %c0_117 = arith.constant 0 : index
    %c0_118 = arith.constant 0 : index
    %245 = vector.load %arg3[%244, %c0_117, %c0_118] : memref<8x8x128xf32, #tpu.memory_space<vmem>>, vector<1x8x128xf32>
    %246 = vector.shape_cast %245 : vector<1x8x128xf32> to vector<8x128xf32>
    %247 = vector.shape_cast %241 : vector<8x128xf32> to vector<1x8x128xf32>
    tpu.vector_store %arg3[%244, %c0_117, %c0_118], %247 {strides = array<i32>} : memref<8x8x128xf32, #tpu.memory_space<vmem>>, vector<1x8x128xf32>,
    %c7_i32 = arith.constant 7 : i32
    %248 = arith.index_cast %c7_i32 : i32 to index
    %c0_119 = arith.constant 0 : index
    %c0_120 = arith.constant 0 : index
    %249 = vector.load %arg1[%248, %c0_119, %c0_120] : memref<8x8x512xf32, #tpu.memory_space<vmem>>, vector<1x8x512xf32>
    %250 = vector.shape_cast %249 : vector<1x8x512xf32> to vector<8x512xf32>
    %c0_121 = arith.constant 0 : index
    %c0_122 = arith.constant 0 : index
    %251 = vector.load %arg4[%c0_121, %c0_122] : memref<8x128xf32, #tpu.memory_space<vmem>>, vector<8x128xf32>
    %c0_123 = arith.constant 0 : index
    %c0_124 = arith.constant 0 : index
    %252 = vector.load %arg2[%c0_123, %c0_124] : memref<128x512xf32, #tpu.memory_space<vmem>>, vector<128x512xf32>
    %cst_125 = arith.constant dense<0.000000e+00> : vector<8x512xf32>
    %253 = tpu.matmul %251, %252, %cst_125 {dimension_numbers = #tpu.dot_dimension_numbers<[1], [0], [0], [1], [0, 0, 1, 1], [], []>} : vector<8x128xf32>, vector<128x512xf32>, vector<8x512xf32> -> vector<8x512xf32>
    %254 = arith.addf %250, %253 : vector<8x512xf32>
    %255 = vector.extract_strided_slice %254 {offsets = [0, 0], sizes = [8, 256], strides = [1, 1]} : vector<8x512xf32> to vector<8x256xf32>
    %256 = arith.negf %255 : vector<8x256xf32>
    %257 = math.exp %256 : vector<8x256xf32>
    %cst_126 = arith.constant 1.000000e+00 : f32
    %258 = vector.broadcast %cst_126 : f32 to vector<8x256xf32>
    %259 = arith.addf %258, %257 : vector<8x256xf32>
    %260 = arith.divf %258, %259 : vector<8x256xf32>
    %261 = vector.extract_strided_slice %254 {offsets = [0, 384], sizes = [8, 128], strides = [1, 1]} : vector<8x512xf32> to vector<8x128xf32>
    %262 = math.tanh %261 : vector<8x128xf32>
    %263 = vector.extract_strided_slice %260 {offsets = [0, 128], sizes = [8, 128], strides = [1, 1]} : vector<8x256xf32> to vector<8x128xf32>
    %c0_127 = arith.constant 0 : index
    %c0_128 = arith.constant 0 : index
    %264 = vector.load %arg5[%c0_127, %c0_128] : memref<8x128xf32, #tpu.memory_space<vmem>>, vector<8x128xf32>
    %265 = arith.mulf %263, %264 : vector<8x128xf32>
    %266 = vector.extract_strided_slice %260 {offsets = [0, 0], sizes = [8, 128], strides = [1, 1]} : vector<8x256xf32> to vector<8x128xf32>
    %267 = arith.mulf %266, %262 : vector<8x128xf32>
    %268 = arith.addf %265, %267 : vector<8x128xf32>
    %269 = vector.extract_strided_slice %254 {offsets = [0, 256], sizes = [8, 128], strides = [1, 1]} : vector<8x512xf32> to vector<8x128xf32>
    %270 = arith.negf %269 : vector<8x128xf32>
    %271 = math.exp %270 : vector<8x128xf32>
    %cst_129 = arith.constant 1.000000e+00 : f32
    %272 = vector.broadcast %cst_129 : f32 to vector<8x128xf32>
    %273 = arith.addf %272, %271 : vector<8x128xf32>
    %274 = arith.divf %272, %273 : vector<8x128xf32>
    %275 = math.tanh %268 : vector<8x128xf32>
    %276 = arith.mulf %274, %275 : vector<8x128xf32>
    %c0_130 = arith.constant 0 : index
    %c0_131 = arith.constant 0 : index
    %277 = vector.load %arg5[%c0_130, %c0_131] : memref<8x128xf32, #tpu.memory_space<vmem>>, vector<8x128xf32>
    tpu.vector_store %arg5[%c0_130, %c0_131], %268 {strides = array<i32>} : memref<8x128xf32, #tpu.memory_space<vmem>>, vector<8x128xf32>,
    %c0_132 = arith.constant 0 : index
    %c0_133 = arith.constant 0 : index
    %278 = vector.load %arg4[%c0_132, %c0_133] : memref<8x128xf32, #tpu.memory_space<vmem>>, vector<8x128xf32>
    tpu.vector_store %arg4[%c0_132, %c0_133], %276 {strides = array<i32>} : memref<8x128xf32, #tpu.memory_space<vmem>>, vector<8x128xf32>,
    %279 = arith.index_cast %c7_i32 : i32 to index
    %c0_134 = arith.constant 0 : index
    %c0_135 = arith.constant 0 : index
    %280 = vector.load %arg3[%279, %c0_134, %c0_135] : memref<8x8x128xf32, #tpu.memory_space<vmem>>, vector<1x8x128xf32>
    %281 = vector.shape_cast %280 : vector<1x8x128xf32> to vector<8x128xf32>
    %282 = vector.shape_cast %276 : vector<8x128xf32> to vector<1x8x128xf32>
    tpu.vector_store %arg3[%279, %c0_134, %c0_135], %282 {strides = array<i32>} : memref<8x8x128xf32, #tpu.memory_space<vmem>>, vector<1x8x128xf32>,
    %c8_i32 = arith.constant 8 : i32
    return
  }
  func.func @transform_0(%arg0: i32) -> (i32, i32, i32) {
    %c0_i32 = arith.constant 0 : i32
    %c0_i32_0 = arith.constant 0 : i32
    %c0_i32_1 = arith.constant 0 : i32
    return %arg0, %c0_i32, %c0_i32_0 : i32, i32, i32
  }
  func.func @transform_1(%arg0: i32) -> (i32, i32) {
    %c0_i32 = arith.constant 0 : i32
    %c0_i32_0 = arith.constant 0 : i32
    %c0_i32_1 = arith.constant 0 : i32
    return %c0_i32, %c0_i32_0 : i32, i32
  }
  func.func @transform_2(%arg0: i32) -> (i32, i32, i32) {
    %c0_i32 = arith.constant 0 : i32
    %c0_i32_0 = arith.constant 0 : i32
    %c0_i32_1 = arith.constant 0 : i32
    return %arg0, %c0_i32, %c0_i32_0 : i32, i32, i32
  }
}

</mosaic_0001>

<bundles_post_ra>
// kernel: tpu_custom_call.1
= control target key start
LH: loop header
LB: loop body
LE: loop exit
PB: predicated region body
PF: predicated region fallthrough
CT: control target
= control target key end

     0   :  { %7 = vsyncpa [#allocation5], 0  ;;  %s3098_s0 = inlined_call_operand.hbm [shape: f32[8,8,512], index: 0, kind: input, shape index: {}]   ;;  %s3099_s1 = inlined_call_operand.hbm [shape: f32[128,512], index: 1, kind: input, shape index: {}]   ;;  %s3100_s2 = inlined_call_operand.hbm [shape: f32[8,8,128], index: 2, kind: output, shape index: {}]  }
   0x1   :  { %8 = vsyncpa [#allocation8], 0 }
   0x2   :  { %9 = vsyncpa [#allocation6], 0  ;;  %s14_s11 = sshll.u32 %s3098_s0, 4  ;;  %s2082_s12 = smov [#allocation4]   ;;  %s15_s11 = int_to_ptr.hbm [resolvable:$true] %s14_s11 }
   0x3   :  { %s16_s13 = sshll.u32 %s2082_s12, 4  ;;  %s27_s16 = sshll.u32 %s3099_s1, 4  ;;  %s17_s13 = int_to_ptr.vmem [resolvable:$true] %s16_s13  ;;  %s28_s16 = int_to_ptr.hbm [resolvable:$true] %s27_s16 }
   0x4   :  { %s2083_s17 = smov 512   ;;  %s2084_s18 = smov 32  }
   0x5   :  { %22 = dma.hbm_to_vmem [thread:$0]  %s15_s11, 4096, %s17_s13, [#allocation5], %s2083_s17, %s2083_s17, %s2084_s18  }
   0x6   :  { %s2085_s19 = smov [#allocation7]  }
   0x7   :  { %s29_s20 = sshll.u32 %s2085_s19, 4  ;;  %s30_s20 = int_to_ptr.vmem [resolvable:$true] %s29_s20 }
   0x8   :  { %35 = dma.hbm_to_vmem [thread:$0]  %s28_s16, 8192, %s30_s20, [#allocation8], %s2083_s17, %s2083_s17, %s2084_s18  }
   0x9   :  { %2076 = dma.done.wait [#allocation5], 4096  }
   0xa   :  { %2077 = vsyncadd [#allocation5], 4294963200 }
   0xb   :  { %2078 = dma.done.wait [#allocation8], 8192  }
   0xc   :  { %2079 = vsyncadd [#allocation8], 4294959104  ;;  %v2111_v0 = vld [vmem:[#allocation7 + $0x1e0] sm:$0xff]  ;;  %v2113_v1 = vld [vmem:[#allocation7 + $0x1e8] sm:$0xff]  ;;  %v2086_v60 = vmov 0.0   ;;  %s2087_s0 = smov [#allocation9]  }
   0xd   :  { %3136 = vst [vmem:[#allocation13_spill] sm:$0xff] %v2111_v0  ;;  %v2115_v2 = vld [vmem:[#allocation7 + $0x1f0] sm:$0xff]  ;;  %119 = vmatpush.msra.mxu0 %v2111_v0  ;;  %139 = vmatpush.msra.mxu1 %v2113_v1  ;;  %v2119_v3 = vld [vmem:[#allocation7 + $0x1c0] sm:$0xff]  ;;  %v2121_v4 = vld [vmem:[#allocation7 + $0x1c8] sm:$0xff]  ;;  %s1828_s1 = sshll.u32 %s2087_s0, 4  ;;  %s1830_s23 = sshll.u32 %s3100_s2, 4  ;;  %s1829_s1 = int_to_ptr.vmem [resolvable:$true] %s1828_s1  ;;  %s1831_s23 = int_to_ptr.hbm [resolvable:$true] %s1830_s23 }
   0xe   :  { %v2123_v5 = vld [vmem:[#allocation7 + $0x1d0] sm:$0xff]  ;;  %159 = vmatpush.msra.mxu2 %v2115_v2  ;;  %v2126_v6 = vld [vmem:[#allocation7 + $0x1a0] sm:$0xff]  ;;  %v2128_v7 = vld [vmem:[#allocation7 + $0x1a8] sm:$0xff]  ;;  %s2088_s24 = smov 128   ;;  %s2089_s25 = smov 8  }
   0xf   :  { %120 = vmatpush.msra.mxu0 %v2119_v3  ;;  %140 = vmatpush.msra.mxu1 %v2121_v4  ;;  %v2132_v8 = vld [vmem:[#allocation7 + $0x1b0] sm:$0xff]  ;;  %v2135_v9 = vld [vmem:[#allocation7 + $0x180] sm:$0xff]  ;;  %v2137_v10 = vld [vmem:[#allocation7 + $0x188] sm:$0xff] }
  0x10   :  { %160 = vmatpush.msra.mxu2 %v2123_v5  ;;  %v2141_v11 = vld [vmem:[#allocation7 + $0x190] sm:$0xff]  ;;  %v2144_v12 = vld [vmem:[#allocation7 + $0x160] sm:$0xff]  ;;  %v2146_v13 = vld [vmem:[#allocation7 + $0x168] sm:$0xff] }
  0x11   :  { %121 = vmatpush.msra.mxu0 %v2126_v6  ;;  %141 = vmatpush.msra.mxu1 %v2128_v7  ;;  %v2150_v14 = vld [vmem:[#allocation7 + $0x170] sm:$0xff]  ;;  %v2153_v15 = vld [vmem:[#allocation7 + $0x140] sm:$0xff]  ;;  %v2155_v16 = vld [vmem:[#allocation7 + $0x148] sm:$0xff] }
  0x12   :  { %161 = vmatpush.msra.mxu2 %v2132_v8  ;;  %v2157_v17 = vld [vmem:[#allocation7 + $0x1f8] sm:$0xff]  ;;  %v2161_v18 = vld [vmem:[#allocation7 + $0x150] sm:$0xff]  ;;  %v2166_v20 = vld [vmem:[#allocation7 + $0x120] sm:$0xff] }
  0x13   :  { %122 = vmatpush.msra.mxu0 %v2135_v9  ;;  %142 = vmatpush.msra.mxu1 %v2137_v10  ;;  %v2163_v19 = vld [vmem:[#allocation7 + $0x1d8] sm:$0xff]  ;;  %v2168_v21 = vld [vmem:[#allocation7 + $0x128] sm:$0xff]  ;;  %v2173_v22 = vld [vmem:[#allocation7 + $0x130] sm:$0xff] }
  0x14   :  { %162 = vmatpush.msra.mxu2 %v2141_v11  ;;  %179 = vmatpush.msra.mxu3 %v2157_v17  ;;  %v2175_v23 = vld [vmem:[#allocation7 + $0x1b8] sm:$0xff]  ;;  %v2178_v24 = vld [vmem:[#allocation7 + $0x100] sm:$0xff]  ;;  %v2180_v25 = vld [vmem:[#allocation7 + $0x108] sm:$0xff] }
  0x15   :  { %123 = vmatpush.msra.mxu0 %v2144_v12  ;;  %143 = vmatpush.msra.mxu1 %v2146_v13  ;;  %v2185_v26 = vld [vmem:[#allocation7 + $0x110] sm:$0xff]  ;;  %v2187_v27 = vld [vmem:[#allocation7 + $0x198] sm:$0xff]  ;;  %v2190_v28 = vld [vmem:[#allocation7 + $0xe0] sm:$0xff] }
  0x16   :  { %163 = vmatpush.msra.mxu2 %v2150_v14  ;;  %180 = vmatpush.msra.mxu3 %v2163_v19  ;;  %v2192_v29 = vld [vmem:[#allocation7 + $0xe8] sm:$0xff]  ;;  %v2197_v30 = vld [vmem:[#allocation7 + $0xf0] sm:$0xff]  ;;  %v2199_v31 = vld [vmem:[#allocation7 + $0x178] sm:$0xff] }
  0x17   :  { %124 = vmatpush.msra.mxu0 %v2153_v15  ;;  %144 = vmatpush.msra.mxu1 %v2155_v16  ;;  %v2202_v32 = vld [vmem:[#allocation7 + $0xc0] sm:$0xff]  ;;  %v2204_v33 = vld [vmem:[#allocation7 + $0xc8] sm:$0xff]  ;;  %v2209_v34 = vld [vmem:[#allocation7 + $0xd0] sm:$0xff] }
  0x18   :  { %164 = vmatpush.msra.mxu2 %v2161_v18  ;;  %181 = vmatpush.msra.mxu3 %v2175_v23  ;;  %v2211_v35 = vld [vmem:[#allocation7 + $0x158] sm:$0xff]  ;;  %v2214_v36 = vld [vmem:[#allocation7 + $0xa0] sm:$0xff]  ;;  %v2216_v37 = vld [vmem:[#allocation7 + $0xa8] sm:$0xff] }
  0x19   :  { %125 = vmatpush.msra.mxu0 %v2166_v20  ;;  %145 = vmatpush.msra.mxu1 %v2168_v21  ;;  %v2221_v38 = vld [vmem:[#allocation7 + $0xb0] sm:$0xff]  ;;  %v2223_v39 = vld [vmem:[#allocation7 + $0x138] sm:$0xff]  ;;  %v2226_v40 = vld [vmem:[#allocation7 + $0x80] sm:$0xff] }
  0x1a   :  { %165 = vmatpush.msra.mxu2 %v2173_v22  ;;  %182 = vmatpush.msra.mxu3 %v2187_v27  ;;  %v2228_v41 = vld [vmem:[#allocation7 + $0x88] sm:$0xff]  ;;  %v2233_v42 = vld [vmem:[#allocation7 + $0x90] sm:$0xff]  ;;  %v2235_v43 = vld [vmem:[#allocation7 + $0x118] sm:$0xff] }
  0x1b   :  { %126 = vmatpush.msra.mxu0 %v2178_v24  ;;  %146 = vmatpush.msra.mxu1 %v2180_v25  ;;  %v2238_v44 = vld [vmem:[#allocation7 + $0x60] sm:$0xff]  ;;  %v2240_v45 = vld [vmem:[#allocation7 + $0x68] sm:$0xff]  ;;  %v2245_v46 = vld [vmem:[#allocation7 + $0x70] sm:$0xff] }
  0x1c   :  { %166 = vmatpush.msra.mxu2 %v2185_v26  ;;  %183 = vmatpush.msra.mxu3 %v2199_v31  ;;  %v2247_v47 = vld [vmem:[#allocation7 + $0xf8] sm:$0xff]  ;;  %v2250_v48 = vld [vmem:[#allocation7 + $0x40] sm:$0xff]  ;;  %v2252_v49 = vld [vmem:[#allocation7 + $0x48] sm:$0xff] }
  0x1d   :  { %127 = vmatpush.msra.mxu0 %v2190_v28  ;;  %147 = vmatpush.msra.mxu1 %v2192_v29  ;;  %v2257_v50 = vld [vmem:[#allocation7 + $0x50] sm:$0xff]  ;;  %v2259_v51 = vld [vmem:[#allocation7 + $0xd8] sm:$0xff]  ;;  %v2262_v52 = vld [vmem:[#allocation7 + $0x20] sm:$0xff] }
  0x1e   :  { %167 = vmatpush.msra.mxu2 %v2197_v30  ;;  %184 = vmatpush.msra.mxu3 %v2211_v35  ;;  %v2264_v53 = vld [vmem:[#allocation7 + $0x28] sm:$0xff]  ;;  %v2269_v54 = vld [vmem:[#allocation7 + $0x30] sm:$0xff]  ;;  %v2271_v55 = vld [vmem:[#allocation7 + $0xb8] sm:$0xff] }
  0x1f   :  { %128 = vmatpush.msra.mxu0 %v2202_v32  ;;  %148 = vmatpush.msra.mxu1 %v2204_v33  ;;  %v2274_v56 = vld [vmem:[#allocation7] sm:$0xff]  ;;  %v2276_v57 = vld [vmem:[#allocation7 + $0x8] sm:$0xff]  ;;  %v2281_v58 = vld [vmem:[#allocation7 + $0x10] sm:$0xff] }
  0x20   :  { %168 = vmatpush.msra.mxu2 %v2209_v34  ;;  %185 = vmatpush.msra.mxu3 %v2223_v39  ;;  %v2287_v59 = vld [vmem:[#allocation7 + $0x98] sm:$0xff] }
  0x21   :  { %129 = vmatpush.msra.mxu0 %v2214_v36  ;;  %149 = vmatpush.msra.mxu1 %v2216_v37  ;;  %v2290_v61 = vld [vmem:[#allocation7 + $0x78] sm:$0xff] }
  0x22   :  { %169 = vmatpush.msra.mxu2 %v2221_v38  ;;  %186 = vmatpush.msra.mxu3 %v2235_v43  ;;  %v2294_v62 = vld [vmem:[#allocation7 + $0x58] sm:$0xff] }
  0x23   :  { %130 = vmatpush.msra.mxu0 %v2226_v40  ;;  %150 = vmatpush.msra.mxu1 %v2228_v41  ;;  %v2300_v63 = vld [vmem:[#allocation7 + $0x38] sm:$0xff] }
  0x24   :  { %170 = vmatpush.msra.mxu2 %v2233_v42  ;;  %187 = vmatpush.msra.mxu3 %v2247_v47 }
  0x25   :  { %131 = vmatpush.msra.mxu0 %v2238_v44  ;;  %151 = vmatpush.msra.mxu1 %v2240_v45 }
  0x26   :  { %171 = vmatpush.msra.mxu2 %v2245_v46  ;;  %188 = vmatpush.msra.mxu3 %v2259_v51 }
  0x27   :  { %132 = vmatpush.msra.mxu0 %v2250_v48  ;;  %152 = vmatpush.msra.mxu1 %v2252_v49 }
  0x28   :  { %172 = vmatpush.msra.mxu2 %v2257_v50  ;;  %189 = vmatpush.msra.mxu3 %v2271_v55 }
  0x29   :  { %133 = vmatpush.msra.mxu0 %v2262_v52  ;;  %153 = vmatpush.msra.mxu1 %v2264_v53 }
  0x2a   :  { %173 = vmatpush.msra.mxu2 %v2269_v54  ;;  %190 = vmatpush.msra.mxu3 %v2287_v59 }
  0x2b   :  { %134 = vmatpush.msra.mxu0 %v2274_v56  ;;  %154 = vmatpush.msra.mxu1 %v2276_v57 }
  0x2c   :  { %174 = vmatpush.msra.mxu2 %v2281_v58  ;;  %135 = vmatmul.f32.vlgmr.msra.gmra.mxu0 %v2086_v60 }
  0x2d   :  { %155 = vmatmul.f32.vlgmr.msra.gmra.mxu1 %v2086_v60  ;;  %175 = vmatmul.f32.vlgmr.msra.gmra.mxu2 %v2086_v60 }
  0x2e   :  { %340 = vmatpush.msrb.mxu0 %v2111_v0  ;;  %360 = vmatpush.msrb.mxu1 %v2113_v1  ;;  %v2306_v0 = vld [vmem:[#allocation7 + $0x18] sm:$0xff] }
  0x2f   :  { %380 = vmatpush.msrb.mxu2 %v2115_v2  ;;  %191 = vmatpush.msra.mxu3 %v2290_v61 }
  0x30   :  { %341 = vmatpush.msrb.mxu0 %v2119_v3  ;;  %361 = vmatpush.msrb.mxu1 %v2121_v4 }
  0x31   :  { %381 = vmatpush.msrb.mxu2 %v2123_v5  ;;  %192 = vmatpush.msra.mxu3 %v2294_v62 }
  0x32   :  { %342 = vmatpush.msrb.mxu0 %v2126_v6  ;;  %362 = vmatpush.msrb.mxu1 %v2128_v7 }
  0x33   :  { %382 = vmatpush.msrb.mxu2 %v2132_v8  ;;  %193 = vmatpush.msra.mxu3 %v2300_v63 }
  0x34   :  { %343 = vmatpush.msrb.mxu0 %v2135_v9  ;;  %363 = vmatpush.msrb.mxu1 %v2137_v10 }
  0x35   :  { %383 = vmatpush.msrb.mxu2 %v2141_v11  ;;  %194 = vmatpush.msra.mxu3 %v2306_v0 }
  0x36   :  { %344 = vmatpush.msrb.mxu0 %v2144_v12  ;;  %195 = vmatmul.f32.vlgmr.msra.gmra.mxu3 %v2086_v60  ;;  %v3137_v60 = vld [vmem:[#allocation13_spill] sm:$0xff] }
  0x37   :  { %364 = vmatpush.msrb.mxu1 %v2146_v13  ;;  %400 = vmatpush.msrb.mxu3 %v2157_v17 }
  0x38   :  { %384 = vmatpush.msrb.mxu2 %v2150_v14  ;;  %345 = vmatpush.msrb.mxu0 %v2153_v15 }
  0x39   :  { %365 = vmatpush.msrb.mxu1 %v2155_v16  ;;  %401 = vmatpush.msrb.mxu3 %v2163_v19 }
  0x3a   :  { %385 = vmatpush.msrb.mxu2 %v2161_v18  ;;  %346 = vmatpush.msrb.mxu0 %v2166_v20 }
  0x3b   :  { %366 = vmatpush.msrb.mxu1 %v2168_v21  ;;  %402 = vmatpush.msrb.mxu3 %v2175_v23 }
  0x3c   :  { %386 = vmatpush.msrb.mxu2 %v2173_v22  ;;  %347 = vmatpush.msrb.mxu0 %v2178_v24 }
  0x3d   :  { %367 = vmatpush.msrb.mxu1 %v2180_v25  ;;  %403 = vmatpush.msrb.mxu3 %v2187_v27 }
  0x3e   :  { %387 = vmatpush.msrb.mxu2 %v2185_v26  ;;  %348 = vmatpush.msrb.mxu0 %v2190_v28 }
  0x3f   :  { %368 = vmatpush.msrb.mxu1 %v2192_v29  ;;  %404 = vmatpush.msrb.mxu3 %v2199_v31 }
  0x40   :  { %388 = vmatpush.msrb.mxu2 %v2197_v30  ;;  %349 = vmatpush.msrb.mxu0 %v2202_v32 }
  0x41   :  { %369 = vmatpush.msrb.mxu1 %v2204_v33  ;;  %405 = vmatpush.msrb.mxu3 %v2211_v35 }
  0x42   :  { %389 = vmatpush.msrb.mxu2 %v2209_v34  ;;  %350 = vmatpush.msrb.mxu0 %v2214_v36 }
  0x43   :  { %370 = vmatpush.msrb.mxu1 %v2216_v37  ;;  %406 = vmatpush.msrb.mxu3 %v2223_v39 }
  0x44   :  { %390 = vmatpush.msrb.mxu2 %v2221_v38  ;;  %351 = vmatpush.msrb.mxu0 %v2226_v40 }
  0x45   :  { %371 = vmatpush.msrb.mxu1 %v2228_v41  ;;  %407 = vmatpush.msrb.mxu3 %v2235_v43 }
  0x46   :  { %391 = vmatpush.msrb.mxu2 %v2233_v42  ;;  %352 = vmatpush.msrb.mxu0 %v2238_v44 }
  0x47   :  { %372 = vmatpush.msrb.mxu1 %v2240_v45  ;;  %408 = vmatpush.msrb.mxu3 %v2247_v47 }
  0x48   :  { %392 = vmatpush.msrb.mxu2 %v2245_v46  ;;  %353 = vmatpush.msrb.mxu0 %v2250_v48 }
  0x49   :  { %373 = vmatpush.msrb.mxu1 %v2252_v49  ;;  %409 = vmatpush.msrb.mxu3 %v2259_v51 }
  0x4a   :  { %393 = vmatpush.msrb.mxu2 %v2257_v50  ;;  %354 = vmatpush.msrb.mxu0 %v2262_v52 }
  0x4b   :  { %374 = vmatpush.msrb.mxu1 %v2264_v53  ;;  %410 = vmatpush.msrb.mxu3 %v2271_v55 }
  0x4c   :  { %394 = vmatpush.msrb.mxu2 %v2269_v54  ;;  %355 = vmatpush.msrb.mxu0 %v2274_v56 }
  0x4d   :  { %375 = vmatpush.msrb.mxu1 %v2276_v57  ;;  %411 = vmatpush.msrb.mxu3 %v2287_v59 }
  0x4e   :  { %395 = vmatpush.msrb.mxu2 %v2281_v58  ;;  %562 = vmatpush.msra.mxu0 %v3137_v60 }
  0x4f   :  { %582 = vmatpush.msra.mxu1 %v2113_v1  ;;  %412 = vmatpush.msrb.mxu3 %v2290_v61  ;;  %v50_v1 = vld [vmem:[#allocation4] sm:$0xff] }
  0x50   :  { %602 = vmatpush.msra.mxu2 %v2115_v2  ;;  %563 = vmatpush.msra.mxu0 %v2119_v3  ;;  %v51_v2 = vld [vmem:[#allocation4 + $0x8] sm:$0xff] }
  0x51   :  { %583 = vmatpush.msra.mxu1 %v2121_v4  ;;  %413 = vmatpush.msrb.mxu3 %v2294_v62 }
  0x52   :  { %603 = vmatpush.msra.mxu2 %v2123_v5  ;;  %564 = vmatpush.msra.mxu0 %v2126_v6 }
  0x53   :  { %584 = vmatpush.msra.mxu1 %v2128_v7  ;;  %414 = vmatpush.msrb.mxu3 %v2300_v63 }
  0x54   :  { %604 = vmatpush.msra.mxu2 %v2132_v8  ;;  %565 = vmatpush.msra.mxu0 %v2135_v9  ;;  %v52_v9 = vld [vmem:[#allocation4 + $0x10] sm:$0xff] }
  0x55   :  { %585 = vmatpush.msra.mxu1 %v2137_v10  ;;  %415 = vmatpush.msrb.mxu3 %v2306_v0 }
  0x56   :  { %605 = vmatpush.msra.mxu2 %v2141_v11  ;;  %566 = vmatpush.msra.mxu0 %v2144_v12 }
  0x57   :  { %622 = vmatpush.msra.mxu3 %v2157_v17  ;;  %586 = vmatpush.msra.mxu1 %v2146_v13 }
  0x58   :  { %606 = vmatpush.msra.mxu2 %v2150_v14  ;;  %567 = vmatpush.msra.mxu0 %v2153_v15 }
  0x59   :  { %623 = vmatpush.msra.mxu3 %v2163_v19  ;;  %587 = vmatpush.msra.mxu1 %v2155_v16 }
  0x5a   :  { %607 = vmatpush.msra.mxu2 %v2161_v18  ;;  %568 = vmatpush.msra.mxu0 %v2166_v20 }
  0x5b   :  { %624 = vmatpush.msra.mxu3 %v2175_v23  ;;  %588 = vmatpush.msra.mxu1 %v2168_v21 }
  0x5c   :  { %608 = vmatpush.msra.mxu2 %v2173_v22  ;;  %569 = vmatpush.msra.mxu0 %v2178_v24 }
  0x5d   :  { %625 = vmatpush.msra.mxu3 %v2187_v27  ;;  %589 = vmatpush.msra.mxu1 %v2180_v25 }
  0x5e   :  { %609 = vmatpush.msra.mxu2 %v2185_v26  ;;  %570 = vmatpush.msra.mxu0 %v2190_v28 }
  0x5f   :  { %626 = vmatpush.msra.mxu3 %v2199_v31  ;;  %590 = vmatpush.msra.mxu1 %v2192_v29 }
  0x60   :  { %610 = vmatpush.msra.mxu2 %v2197_v30  ;;  %571 = vmatpush.msra.mxu0 %v2202_v32 }
  0x61   :  { %627 = vmatpush.msra.mxu3 %v2211_v35  ;;  %591 = vmatpush.msra.mxu1 %v2204_v33 }
  0x62   :  { %611 = vmatpush.msra.mxu2 %v2209_v34  ;;  %572 = vmatpush.msra.mxu0 %v2214_v36 }
  0x63   :  { %628 = vmatpush.msra.mxu3 %v2223_v39  ;;  %592 = vmatpush.msra.mxu1 %v2216_v37 }
  0x64   :  { %612 = vmatpush.msra.mxu2 %v2221_v38  ;;  %573 = vmatpush.msra.mxu0 %v2226_v40 }
  0x65   :  { %629 = vmatpush.msra.mxu3 %v2235_v43  ;;  %593 = vmatpush.msra.mxu1 %v2228_v41 }
  0x66   :  { %613 = vmatpush.msra.mxu2 %v2233_v42  ;;  %574 = vmatpush.msra.mxu0 %v2238_v44 }
  0x67   :  { %630 = vmatpush.msra.mxu3 %v2247_v47  ;;  %594 = vmatpush.msra.mxu1 %v2240_v45 }
  0x68   :  { %614 = vmatpush.msra.mxu2 %v2245_v46  ;;  %575 = vmatpush.msra.mxu0 %v2250_v48 }
  0x69   :  { %631 = vmatpush.msra.mxu3 %v2259_v51  ;;  %595 = vmatpush.msra.mxu1 %v2252_v49 }
  0x6a   :  { %615 = vmatpush.msra.mxu2 %v2257_v50  ;;  %576 = vmatpush.msra.mxu0 %v2262_v52 }
  0x6b   :  { %632 = vmatpush.msra.mxu3 %v2271_v55  ;;  %596 = vmatpush.msra.mxu1 %v2264_v53 }
  0x6c   :  { %616 = vmatpush.msra.mxu2 %v2269_v54  ;;  %577 = vmatpush.msra.mxu0 %v2274_v56 }
  0x6d   :  { %633 = vmatpush.msra.mxu3 %v2287_v59  ;;  %597 = vmatpush.msra.mxu1 %v2276_v57  ;;  %v271_v57 = vld [vmem:[#allocation4 + $0x20] sm:$0xff] }
  0x6e   :  { %617 = vmatpush.msra.mxu2 %v2281_v58  ;;  %v272_v58 = vld [vmem:[#allocation4 + $0x28] sm:$0xff] }
  0x6f   :  { %634 = vmatpush.msra.mxu3 %v2290_v61 }
  0x71   :  { %635 = vmatpush.msra.mxu3 %v2294_v62 }
  0x73   :  { %636 = vmatpush.msra.mxu3 %v2300_v63 }
  0x75   :  { %637 = vmatpush.msra.mxu3 %v2306_v0  ;;  %v53_v0 = vld [vmem:[#allocation4 + $0x18] sm:$0xff] }
  0xa9   :  { %v136_v3 = vpop.f32.mrf.mxu0 }
  0xaa   :  { %v199_v4 = vadd.f32 %v136_v3, %v50_v1  ;;  %v156_v5 = vpop.f32.mrf.mxu1 }
  0xab   :  { %v200_v6 = vadd.f32 %v156_v5, %v51_v2  ;;  %v273_v2 = vld [vmem:[#allocation4 + $0x30] sm:$0xff] }
  0xac   :  { %v1844_v7 = vmul.f32 -1.442695, %v199_v4 }
  0xad   :  { %v1845_v8 = vmul.f32 -1.442695, %v200_v6 }
  0xae   :  { %1876 = vpow2.f32 %v1844_v7 }
  0xaf   :  { %1878 = vpow2.f32 %v1845_v8 }
  0xb0   :  { %v176_v10 = vpop.f32.mrf.mxu2 }
  0xb1   :  { %v201_v11 = vadd.f32 %v176_v10, %v52_v9  ;;  %v274_v10 = vld [vmem:[#allocation4 + $0x38] sm:$0xff] }
  0xb3   :  { %v1846_v12 = vmul.f32 -1.442695, %v201_v11 }
  0xb4   :  { %v1877_v13 = vpop.eup %1876 }
  0xb5   :  { %v1879_v14 = vpop.eup %1878  ;;  %v209_v15 = vadd.f32 1.0, %v1877_v13  ;;  %1880 = vpow2.f32 %v1846_v12 }
  0xb6   :  { %v210_v16 = vadd.f32 1.0, %v1879_v14 }
  0xb7   :  { %1882 = vrcp.f32 %v209_v15  ;;  %v222_v27 = vand.u32 2147483648, %v209_v15  ;;  %v220_v30 = vand.u32 2147483647, %v209_v15  ;;  %vm216_vm2 = vweird.f32 %v209_v15 }
  0xb8   :  { %1884 = vrcp.f32 %v210_v16  ;;  %v237_v28 = vand.u32 2147483648, %v210_v16  ;;  %v235_v32 = vand.u32 2147483647, %v210_v16  ;;  %vm231_vm3 = vweird.f32 %v210_v16 }
  0xb9   :  { %v196_v17 = vpop.f32.mrf.mxu3  ;;  %v223_v37 = vor.u32 1.1754944e-38, %v222_v27  ;;  %vm221_vm5 = vcmp.eq.f32.partialorder %v220_v30, 8.507059e+37 }
  0xba   :  { %v202_v19 = vadd.f32 %v196_v17, %v53_v0  ;;  %v238_v39 = vor.u32 1.1754944e-38, %v237_v28  ;;  %vm236_vm7 = vcmp.eq.f32.partialorder %v235_v32, 8.507059e+37 }
  0xbb   :  { %v1881_v18 = vpop.eup %1880 }
  0xbc   :  { %v249_v20 = vadd.f32 1.0, %v1881_v18 }
  0xbd   :  { %v1883_v21 = vpop.eup %1882 }
  0xbe   :  { %v1885_v22 = vpop.eup %1884  ;;  %v212_v23 = vmul.f32 %v1883_v21, %v209_v15  ;;  %1886 = vrcp.f32 %v249_v20  ;;  %vm217_vm0 = vweird.f32 %v1883_v21  ;;  %v261_v50 = vand.u32 2147483648, %v249_v20 }
  0xbf   :  { %v227_v24 = vmul.f32 %v1885_v22, %v210_v16  ;;  %1888 = vtanh.f32 %v202_v19  ;;  %vm232_vm1 = vweird.f32 %v1885_v22  ;;  %vm218_vm4 = vmor %vm216_vm2, %vm217_vm0  ;;  %vm255_vm9 = vweird.f32 %v249_v20 }
  0xc0   :  { %v213_v25 = vsub.f32 1.0, %v212_v23  ;;  %vm233_vm6 = vmor %vm231_vm3, %vm232_vm1  ;;  %v259_v51 = vand.u32 2147483647, %v249_v20  ;;  %v262_v53 = vor.u32 1.1754944e-38, %v261_v50 }
  0xc1   :  { %v228_v26 = vsub.f32 1.0, %v227_v24 }
  0xc2   :  { %v214_v29 = vmul.f32 %v1883_v21, %v213_v25  ;;  %vm260_vm11 = vcmp.eq.f32.partialorder %v259_v51, 8.507059e+37  ;;  %v2440_v51 = vld [vmem:[#allocation7 + $0x1e8] sm:$0xff] }
  0xc3   :  { %v229_v31 = vmul.f32 %v1885_v22, %v228_v26  ;;  %3138 = vst [vmem:[#allocation13_spill] sm:$0xff] %v2440_v51 }
  0xc4   :  { %v1887_v33 = vpop.eup %1886  ;;  %v215_v34 = vadd.f32 %v1883_v21, %v214_v29 }
  0xc5   :  { %v1889_v35 = vpop.eup %1888  ;;  %v251_v36 = vmul.f32 %v1887_v33, %v249_v20  ;;  %v230_v38 = vadd.f32 %v1885_v22, %v229_v31  ;;  %vm256_vm8 = vweird.f32 %v1887_v33 }
  0xc6   :  { %v219_v40 = vsel %vm218_vm4, %v1883_v21, %v215_v34  ;;  %vm257_vm10 = vmor %vm255_vm9, %vm256_vm8 }
  0xc7   :  { %v252_v41 = vsub.f32 1.0, %v251_v36  ;;  %v224_v42 = vsel %vm221_vm5, %v223_v37, %v219_v40  ;;  %v234_v43 = vsel %vm233_vm6, %v1885_v22, %v230_v38 }
  0xc8   :  { %v239_v44 = vsel %vm236_vm7, %v238_v39, %v234_v43  ;;  %v244_v45 = vmul.f32 %v1889_v35, %v224_v42 }
  0xc9   :  { %v253_v46 = vmul.f32 %v1887_v33, %v252_v41  ;;  %v243_v47 = vmul.f32 0.0, %v239_v44 }
  0xcb   :  { %v2431_v48 = vadd.f32 %v244_v45, %v243_v47  ;;  %v254_v49 = vadd.f32 %v1887_v33, %v253_v46 }
  0xcd   :  { %1890 = vtanh.f32 %v2431_v48  ;;  %v258_v52 = vsel %vm257_vm10, %v1887_v33, %v254_v49 }
  0xce   :  { %v263_v55 = vsel %vm260_vm11, %v262_v53, %v258_v52  ;;  %v2442_v52 = vld [vmem:[#allocation7 + $0x1f0] sm:$0xff]  ;;  %v2446_v53 = vld [vmem:[#allocation7 + $0x1f8] sm:$0xff] }
  0xcf   :  { %3139 = vst [vmem:[#allocation14_spill] sm:$0xff] %v2442_v52 }
  0xd3   :  { %v1891_v54 = vpop.eup %1890 }
  0xd4   :  { %v266_v56 = vmul.f32 %v1891_v54, %v263_v55  ;;  %v2450_v54 = vld [vmem:[#allocation7 + $0x1c0] sm:$0xff]  ;;  %v2452_v55 = vld [vmem:[#allocation7 + $0x1c8] sm:$0xff] }
  0xd5   :  { %3140 = vst [vmem:[#allocation15_spill] sm:$0xff] %v2450_v54 }
  0xd6   :  { %269 = vst [vmem:[#allocation9] sm:$0xff] %v266_v56  ;;  %356 = vmatmul.f32.vlgmr.msrb.gmra.mxu0 %v266_v56  ;;  %376 = vmatmul.f32.vlgmr.msrb.gmra.mxu1 %v266_v56 }
  0xd7   :  { %396 = vmatmul.f32.vlgmr.msrb.gmra.mxu2 %v266_v56  ;;  %416 = vmatmul.f32.vlgmr.msrb.gmra.mxu3 %v266_v56  ;;  %3141 = vst [vmem:[#allocation16_spill] sm:$0xff] %v2452_v55  ;;  %v2454_v56 = vld [vmem:[#allocation7 + $0x1d0] sm:$0xff] }
  0xd8   :  { %804 = vmatpush.msrb.mxu1 %v2440_v51  ;;  %824 = vmatpush.msrb.mxu2 %v2442_v52 }
  0xd9   :  { %844 = vmatpush.msrb.mxu3 %v2446_v53 }
  0xda   :  { %805 = vmatpush.msrb.mxu1 %v2452_v55  ;;  %825 = vmatpush.msrb.mxu2 %v2454_v56 }
 0x153   :  { %v357_v59 = vpop.f32.mrf.mxu0  ;;  %v377_v61 = vpop.f32.mrf.mxu1 }
 0x154   :  { %v420_v62 = vadd.f32 %v357_v59, %v271_v57  ;;  %v421_v63 = vadd.f32 %v377_v61, %v272_v58  ;;  %v2458_v57 = vld [vmem:[#allocation7 + $0x1d8] sm:$0xff]  ;;  %v2462_v58 = vld [vmem:[#allocation7 + $0x1a0] sm:$0xff]  ;;  %v2464_v59 = vld [vmem:[#allocation7 + $0x1a8] sm:$0xff] }
 0x155   :  { %845 = vmatpush.msrb.mxu3 %v2458_v57  ;;  %v2466_v61 = vld [vmem:[#allocation7 + $0x1b0] sm:$0xff]  ;;  %806 = vmatpush.msrb.mxu1 %v2464_v59 }
 0x156   :  { %v1847_v60 = vmul.f32 -1.442695, %v420_v62  ;;  %v1848_v1 = vmul.f32 -1.442695, %v421_v63  ;;  %v2470_v62 = vld [vmem:[#allocation7 + $0x1b8] sm:$0xff]  ;;  %826 = vmatpush.msrb.mxu2 %v2466_v61  ;;  %v2474_v63 = vld [vmem:[#allocation7 + $0x180] sm:$0xff] }
 0x157   :  { %3142 = vst [vmem:[#allocation17_spill] sm:$0xff] %v2470_v62  ;;  %846 = vmatpush.msrb.mxu3 %v2470_v62 }
 0x158   :  { %1892 = vpow2.f32 %v1847_v60  ;;  %3143 = vst [vmem:[#allocation18_spill] sm:$0xff] %v2474_v63  ;;  %v2476_v60 = vld [vmem:[#allocation7 + $0x188] sm:$0xff] }
 0x159   :  { %1894 = vpow2.f32 %v1848_v1  ;;  %3144 = vst [vmem:[#allocation19_spill] sm:$0xff] %v2476_v60  ;;  %v2478_v1 = vld [vmem:[#allocation7 + $0x190] sm:$0xff]  ;;  %807 = vmatpush.msrb.mxu1 %v2476_v60 }
 0x15a   :  { %v397_v3 = vpop.f32.mrf.mxu2  ;;  %v417_v11 = vpop.f32.mrf.mxu3  ;;  %3145 = vst [vmem:[#allocation20_spill] sm:$0xff] %v2478_v1  ;;  %827 = vmatpush.msrb.mxu2 %v2478_v1 }
 0x15b   :  { %v422_v4 = vadd.f32 %v397_v3, %v273_v2  ;;  %v423_v15 = vadd.f32 %v417_v11, %v274_v10  ;;  %v2482_v2 = vld [vmem:[#allocation7 + $0x198] sm:$0xff]  ;;  %v2486_v3 = vld [vmem:[#allocation7 + $0x160] sm:$0xff] }
 0x15c   :  { %847 = vmatpush.msrb.mxu3 %v2482_v2  ;;  %v2506_v10 = vld [vmem:[#allocation7 + $0x158] sm:$0xff]  ;;  %v2510_v11 = vld [vmem:[#allocation7 + $0x120] sm:$0xff] }
 0x15d   :  { %v1849_v5 = vmul.f32 -1.442695, %v422_v4  ;;  %v2488_v4 = vld [vmem:[#allocation7 + $0x168] sm:$0xff]  ;;  %3148 = vst [vmem:[#allocation23_spill] sm:$0xff] %v2506_v10 }
 0x15e   :  { %v1893_v6 = vpop.eup %1892  ;;  %808 = vmatpush.msrb.mxu1 %v2488_v4  ;;  %3149 = vst [vmem:[#allocation24_spill] sm:$0xff] %v2510_v11 }
 0x15f   :  { %v1895_v7 = vpop.eup %1894  ;;  %v430_v8 = vadd.f32 1.0, %v1893_v6  ;;  %1896 = vpow2.f32 %v1849_v5  ;;  %v2490_v5 = vld [vmem:[#allocation7 + $0x170] sm:$0xff]  ;;  %v2494_v6 = vld [vmem:[#allocation7 + $0x178] sm:$0xff] }
 0x160   :  { %v431_v9 = vadd.f32 1.0, %v1895_v7  ;;  %3146 = vst [vmem:[#allocation21_spill] sm:$0xff] %v2494_v6  ;;  %828 = vmatpush.msrb.mxu2 %v2490_v5  ;;  %848 = vmatpush.msrb.mxu3 %v2494_v6  ;;  %v2498_v7 = vld [vmem:[#allocation7 + $0x140] sm:$0xff] }
 0x161   :  { %1898 = vrcp.f32 %v430_v8  ;;  %v443_v20 = vand.u32 2147483648, %v430_v8  ;;  %v441_v23 = vand.u32 2147483647, %v430_v8  ;;  %vm437_vm14 = vweird.f32 %v430_v8 }
 0x162   :  { %1900 = vrcp.f32 %v431_v9  ;;  %v458_v21 = vand.u32 2147483648, %v431_v9  ;;  %v456_v25 = vand.u32 2147483647, %v431_v9  ;;  %vm452_vm15 = vweird.f32 %v431_v9  ;;  %849 = vmatpush.msrb.mxu3 %v2506_v10 }
 0x163   :  { %v444_v29 = vor.u32 1.1754944e-38, %v443_v20  ;;  %vm442_vm2 = vcmp.eq.f32.partialorder %v441_v23, 8.507059e+37  ;;  %v2534_v20 = vld [vmem:[#allocation7 + $0xe0] sm:$0xff]  ;;  %v2542_v23 = vld [vmem:[#allocation7 + $0xf8] sm:$0xff] }
 0x164   :  { %v459_v31 = vor.u32 1.1754944e-38, %v458_v21  ;;  %vm457_vm3 = vcmp.eq.f32.partialorder %v456_v25, 8.507059e+37  ;;  %v2536_v21 = vld [vmem:[#allocation7 + $0xe8] sm:$0xff] }
 0x165   :  { %v1897_v12 = vpop.eup %1896 }
 0x166   :  { %v470_v13 = vadd.f32 1.0, %v1897_v12  ;;  %v2512_v12 = vld [vmem:[#allocation7 + $0x128] sm:$0xff] }
 0x167   :  { %v1899_v14 = vpop.eup %1898  ;;  %3150 = vst [vmem:[#allocation25_spill] sm:$0xff] %v2512_v12 }
 0x168   :  { %v1901_v16 = vpop.eup %1900  ;;  %v433_v0 = vmul.f32 %v1899_v14, %v430_v8  ;;  %1902 = vrcp.f32 %v470_v13  ;;  %vm438_vm12 = vweird.f32 %v1899_v14  ;;  %v482_v43 = vand.u32 2147483648, %v470_v13  ;;  %v2500_v8 = vld [vmem:[#allocation7 + $0x148] sm:$0xff] }
 0x169   :  { %v448_v17 = vmul.f32 %v1901_v16, %v431_v9  ;;  %1904 = vtanh.f32 %v423_v15  ;;  %vm453_vm13 = vweird.f32 %v1901_v16  ;;  %vm439_vm0 = vmor %vm437_vm14, %vm438_vm12  ;;  %vm476_vm5 = vweird.f32 %v470_v13  ;;  %v2502_v9 = vld [vmem:[#allocation7 + $0x150] sm:$0xff]  ;;  %809 = vmatpush.msrb.mxu1 %v2500_v8  ;;  %v2522_v15 = vld [vmem:[#allocation7 + $0x100] sm:$0xff] }
 0x16a   :  { %v434_v18 = vsub.f32 1.0, %v433_v0  ;;  %vm454_vm1 = vmor %vm452_vm15, %vm453_vm13  ;;  %v480_v44 = vand.u32 2147483647, %v470_v13  ;;  %v483_v46 = vor.u32 1.1754944e-38, %v482_v43  ;;  %3147 = vst [vmem:[#allocation22_spill] sm:$0xff] %v2502_v9  ;;  %829 = vmatpush.msrb.mxu2 %v2502_v9  ;;  %v2526_v0 = vld [vmem:[#allocation7 + $0x110] sm:$0xff] }
 0x16b   :  { %v449_v19 = vsub.f32 1.0, %v448_v17  ;;  %810 = vmatpush.msrb.mxu1 %v2512_v12  ;;  %v493_v17 = vld [vmem:[#allocation4 + $0x40] sm:$0xff]  ;;  %v2578_v43 = vld [vmem:[#allocation7 + $0x98] sm:$0xff] }
 0x16c   :  { %v435_v22 = vmul.f32 %v1899_v14, %v434_v18  ;;  %vm481_vm7 = vcmp.eq.f32.partialorder %v480_v44, 8.507059e+37  ;;  %v494_v18 = vld [vmem:[#allocation4 + $0x48] sm:$0xff]  ;;  %v2580_v44 = vld [vmem:[#allocation7 + $0x60] sm:$0xff] }
 0x16d   :  { %v450_v24 = vmul.f32 %v1901_v16, %v449_v19  ;;  %v2530_v19 = vld [vmem:[#allocation7 + $0x118] sm:$0xff]  ;;  %3151 = vst [vmem:[#allocation26_spill] sm:$0xff] %v2580_v44 }
 0x16e   :  { %v1903_v26 = vpop.eup %1902  ;;  %v436_v27 = vadd.f32 %v1899_v14, %v435_v22  ;;  %v2538_v22 = vld [vmem:[#allocation7 + $0xf0] sm:$0xff] }
 0x16f   :  { %v472_v28 = vmul.f32 %v1903_v26, %v470_v13  ;;  %v451_v30 = vadd.f32 %v1901_v16, %v450_v24  ;;  %v1905_v33 = vpop.eup %1904  ;;  %vm477_vm4 = vweird.f32 %v1903_v26  ;;  %v2514_v13 = vld [vmem:[#allocation7 + $0x130] sm:$0xff] }
 0x170   :  { %v440_v32 = vsel %vm439_vm0, %v1899_v14, %v436_v27  ;;  %vm478_vm6 = vmor %vm476_vm5, %vm477_vm4  ;;  %v2518_v14 = vld [vmem:[#allocation7 + $0x138] sm:$0xff]  ;;  %830 = vmatpush.msrb.mxu2 %v2514_v13  ;;  %v2548_v27 = vld [vmem:[#allocation7 + $0xc8] sm:$0xff] }
 0x171   :  { %v473_v34 = vsub.f32 1.0, %v472_v28  ;;  %v445_v35 = vsel %vm442_vm2, %v444_v29, %v440_v32  ;;  %v455_v36 = vsel %vm454_vm1, %v1901_v16, %v451_v30  ;;  %850 = vmatpush.msrb.mxu3 %v2518_v14  ;;  %v2524_v16 = vld [vmem:[#allocation7 + $0x108] sm:$0xff]  ;;  %v2550_v28 = vld [vmem:[#allocation7 + $0xd0] sm:$0xff]  ;;  %v2558_v32 = vld [vmem:[#allocation7 + $0xa0] sm:$0xff] }
 0x172   :  { %v460_v37 = vsel %vm457_vm3, %v459_v31, %v455_v36  ;;  %v465_v38 = vmul.f32 %v1905_v33, %v445_v35  ;;  %811 = vmatpush.msrb.mxu1 %v2524_v16  ;;  %831 = vmatpush.msrb.mxu2 %v2526_v0  ;;  %v2554_v31 = vld [vmem:[#allocation7 + $0xd8] sm:$0xff]  ;;  %v2560_v33 = vld [vmem:[#allocation7 + $0xa8] sm:$0xff] }
 0x173   :  { %v474_v39 = vmul.f32 %v1903_v26, %v473_v34  ;;  %v464_v40 = vmul.f32 %v460_v37, %v2431_v48  ;;  %v2438_v48 = vld [vmem:[#allocation7 + $0x1e0] sm:$0xff]  ;;  %851 = vmatpush.msrb.mxu3 %v2530_v19  ;;  %v2562_v34 = vld [vmem:[#allocation7 + $0xb0] sm:$0xff] }
 0x174   :  { %784 = vmatpush.msrb.mxu0 %v2438_v48  ;;  %812 = vmatpush.msrb.mxu1 %v2536_v21  ;;  %v495_v37 = vld [vmem:[#allocation4 + $0x50] sm:$0xff] }
 0x175   :  { %v2435_v41 = vadd.f32 %v465_v38, %v464_v40  ;;  %v475_v42 = vadd.f32 %v1903_v26, %v474_v39  ;;  %832 = vmatpush.msrb.mxu2 %v2538_v22  ;;  %852 = vmatpush.msrb.mxu3 %v2542_v23  ;;  %v2566_v38 = vld [vmem:[#allocation7 + $0xb8] sm:$0xff]  ;;  %v2570_v39 = vld [vmem:[#allocation7 + $0x80] sm:$0xff]  ;;  %v2572_v40 = vld [vmem:[#allocation7 + $0x88] sm:$0xff] }
 0x176   :  { %785 = vmatpush.msrb.mxu0 %v2450_v54  ;;  %813 = vmatpush.msrb.mxu1 %v2548_v27 }
 0x177   :  { %1906 = vtanh.f32 %v2435_v41  ;;  %v479_v45 = vsel %vm478_vm6, %v1903_v26, %v475_v42  ;;  %v2546_v26 = vld [vmem:[#allocation7 + $0xc0] sm:$0xff]  ;;  %833 = vmatpush.msrb.mxu2 %v2550_v28  ;;  %853 = vmatpush.msrb.mxu3 %v2554_v31  ;;  %v2574_v42 = vld [vmem:[#allocation7 + $0x90] sm:$0xff] }
 0x178   :  { %v484_v49 = vsel %vm481_vm7, %v483_v46, %v479_v45  ;;  %786 = vmatpush.msrb.mxu0 %v2462_v58  ;;  %814 = vmatpush.msrb.mxu1 %v2560_v33  ;;  %v2582_v45 = vld [vmem:[#allocation7 + $0x68] sm:$0xff]  ;;  %v2586_v46 = vld [vmem:[#allocation7 + $0x70] sm:$0xff] }
 0x179   :  { %834 = vmatpush.msrb.mxu2 %v2562_v34  ;;  %854 = vmatpush.msrb.mxu3 %v2566_v38  ;;  %3152 = vst [vmem:[#allocation27_spill] sm:$0xff] %v2582_v45 }
 0x17a   :  { %787 = vmatpush.msrb.mxu0 %v2474_v63  ;;  %815 = vmatpush.msrb.mxu1 %v2572_v40  ;;  %3153 = vst [vmem:[#allocation28_spill] sm:$0xff] %v2586_v46 }
 0x17b   :  { %835 = vmatpush.msrb.mxu2 %v2574_v42  ;;  %855 = vmatpush.msrb.mxu3 %v2578_v43 }
 0x17c   :  { %788 = vmatpush.msrb.mxu0 %v2486_v3  ;;  %816 = vmatpush.msrb.mxu1 %v2582_v45 }
 0x17d   :  { %v1907_v47 = vpop.eup %1906  ;;  %836 = vmatpush.msrb.mxu2 %v2586_v46 }
 0x17e   :  { %v487_v50 = vmul.f32 %v1907_v47, %v484_v49  ;;  %789 = vmatpush.msrb.mxu0 %v2498_v7  ;;  %v2588_v47 = vld [vmem:[#allocation7 + $0x78] sm:$0xff]  ;;  %v2590_v49 = vld [vmem:[#allocation7 + $0x40] sm:$0xff] }
 0x17f   :  { %3154 = vst [vmem:[#allocation29_spill] sm:$0xff] %v2588_v47  ;;  %856 = vmatpush.msrb.mxu3 %v2588_v47 }
 0x180   :  { %491 = vst [vmem:[#allocation9 + $0x8] sm:$0xff] %v487_v50  ;;  %578 = vmatmul.f32.vlgmr.msra.gmra.mxu0 %v487_v50  ;;  %598 = vmatmul.f32.vlgmr.msra.gmra.mxu1 %v487_v50 }
 0x181   :  { %618 = vmatmul.f32.vlgmr.msra.gmra.mxu2 %v487_v50  ;;  %638 = vmatmul.f32.vlgmr.msra.gmra.mxu3 %v487_v50  ;;  %3155 = vst [vmem:[#allocation30_spill] sm:$0xff] %v2590_v49 }
 0x182   :  { %790 = vmatpush.msrb.mxu0 %v2510_v11 }
 0x184   :  { %791 = vmatpush.msrb.mxu0 %v2522_v15 }
 0x186   :  { %792 = vmatpush.msrb.mxu0 %v2534_v20 }
 0x188   :  { %793 = vmatpush.msrb.mxu0 %v2546_v26 }
 0x18a   :  { %794 = vmatpush.msrb.mxu0 %v2558_v32 }
 0x18c   :  { %795 = vmatpush.msrb.mxu0 %v2570_v39 }
 0x18e   :  { %796 = vmatpush.msrb.mxu0 %v2580_v44 }
 0x190   :  { %797 = vmatpush.msrb.mxu0 %v2590_v49  ;;  %v2620_v49 = vld [vmem:[#allocation7 + $0x10] sm:$0xff] }
 0x1fd   :  { %v579_v24 = vpop.f32.mrf.mxu0  ;;  %v599_v25 = vpop.f32.mrf.mxu1 }
 0x1fe   :  { %v642_v29 = vadd.f32 %v579_v24, %v493_v17  ;;  %v643_v30 = vadd.f32 %v599_v25, %v494_v18  ;;  %v2594_v17 = vld [vmem:[#allocation7 + $0x48] sm:$0xff]  ;;  %v2596_v18 = vld [vmem:[#allocation7 + $0x50] sm:$0xff]  ;;  %v2598_v24 = vld [vmem:[#allocation7 + $0x58] sm:$0xff] }
 0x1ff   :  { %3156 = vst [vmem:[#allocation31_spill] sm:$0xff] %v2594_v17  ;;  %817 = vmatpush.msrb.mxu1 %v2594_v17  ;;  %837 = vmatpush.msrb.mxu2 %v2596_v18  ;;  %v2622_v17 = vld [vmem:[#allocation7 + $0x18] sm:$0xff] }
 0x200   :  { %v1850_v35 = vmul.f32 -1.442695, %v642_v29  ;;  %v1851_v36 = vmul.f32 -1.442695, %v643_v30  ;;  %v2602_v29 = vld [vmem:[#allocation7 + $0x20] sm:$0xff]  ;;  %v2604_v30 = vld [vmem:[#allocation7 + $0x28] sm:$0xff]  ;;  %857 = vmatpush.msrb.mxu3 %v2598_v24 }
 0x201   :  { %798 = vmatpush.msrb.mxu0 %v2602_v29  ;;  %818 = vmatpush.msrb.mxu1 %v2604_v30  ;;  %3157 = vst [vmem:[#allocation32_spill] sm:$0xff] %v2622_v17 }
 0x202   :  { %1908 = vpow2.f32 %v1850_v35  ;;  %v2608_v35 = vld [vmem:[#allocation7 + $0x30] sm:$0xff] }
 0x203   :  { %1910 = vpow2.f32 %v1851_v36  ;;  %v2610_v36 = vld [vmem:[#allocation7 + $0x38] sm:$0xff]  ;;  %838 = vmatpush.msrb.mxu2 %v2608_v35 }
 0x204   :  { %v619_v50 = vpop.f32.mrf.mxu2  ;;  %858 = vmatpush.msrb.mxu3 %v2610_v36 }
 0x205   :  { %v644_v25 = vadd.f32 %v619_v50, %v495_v37  ;;  %v2614_v37 = vld [vmem:[#allocation7] sm:$0xff]  ;;  %v2616_v50 = vld [vmem:[#allocation7 + $0x8] sm:$0xff]  ;;  %839 = vmatpush.msrb.mxu2 %v2620_v49 }
 0x206   :  { %799 = vmatpush.msrb.mxu0 %v2614_v37  ;;  %819 = vmatpush.msrb.mxu1 %v2616_v50 }
 0x207   :  { %v1852_v45 = vmul.f32 -1.442695, %v644_v25  ;;  %859 = vmatpush.msrb.mxu3 %v2622_v17  ;;  %1046 = vmatpush.msra.mxu2 %v2442_v52 }
 0x208   :  { %v1909_v47 = vpop.eup %1908  ;;  %1006 = vmatpush.msra.mxu0 %v2438_v48  ;;  %1026 = vmatpush.msra.mxu1 %v2440_v51 }
 0x209   :  { %v1911_v46 = vpop.eup %1910  ;;  %v2624_v44 = vadd.f32 1.0, %v1909_v47  ;;  %1912 = vpow2.f32 %v1852_v45  ;;  %1066 = vmatpush.msra.mxu3 %v2446_v53  ;;  %v496_v45 = vld [vmem:[#allocation4 + $0x58] sm:$0xff]  ;;  %1047 = vmatpush.msra.mxu2 %v2454_v56 }
 0x20a   :  { %v2628_v25 = vadd.f32 1.0, %v1911_v46  ;;  %v639_v46 = vpop.f32.mrf.mxu3  ;;  %1007 = vmatpush.msra.mxu0 %v2450_v54  ;;  %1027 = vmatpush.msra.mxu1 %v2452_v55 }
 0x20b   :  { %1914 = vrcp.f32 %v2624_v44  ;;  %1067 = vmatpush.msra.mxu3 %v2458_v57  ;;  %v645_v51 = vadd.f32 %v639_v46, %v496_v45  ;;  %1048 = vmatpush.msra.mxu2 %v2466_v61  ;;  %vm659_vm10 = vweird.f32 %v2624_v44 }
 0x20c   :  { %1916 = vrcp.f32 %v2628_v25  ;;  %1008 = vmatpush.msra.mxu0 %v2462_v58  ;;  %1028 = vmatpush.msra.mxu1 %v2464_v59  ;;  %vm674_vm11 = vweird.f32 %v2628_v25 }
 0x20d   :  { %1068 = vmatpush.msra.mxu3 %v2470_v62  ;;  %1049 = vmatpush.msra.mxu2 %v2478_v1  ;;  %v665_v62 = vand.u32 2147483648, %v2624_v44  ;;  %v663_v1 = vand.u32 2147483647, %v2624_v44 }
 0x20e   :  { %1009 = vmatpush.msra.mxu0 %v2474_v63  ;;  %1029 = vmatpush.msra.mxu1 %v2476_v60  ;;  %v680_v60 = vand.u32 2147483648, %v2628_v25 }
 0x20f   :  { %v1913_v47 = vpop.eup %1912  ;;  %1069 = vmatpush.msra.mxu3 %v2482_v2  ;;  %1050 = vmatpush.msra.mxu2 %v2490_v5  ;;  %vm664_vm14 = vcmp.eq.f32.partialorder %v663_v1, 8.507059e+37 }
 0x210   :  { %v2644_v17 = vadd.f32 1.0, %v1913_v47  ;;  %1010 = vmatpush.msra.mxu0 %v2486_v3  ;;  %1030 = vmatpush.msra.mxu1 %v2488_v4 }
 0x211   :  { %v1915_v52 = vpop.eup %1914  ;;  %1070 = vmatpush.msra.mxu3 %v2494_v6  ;;  %1051 = vmatpush.msra.mxu2 %v2502_v9 }
 0x212   :  { %v1917_v54 = vpop.eup %1916  ;;  %v655_v55 = vmul.f32 %v1915_v52, %v2624_v44  ;;  %1918 = vrcp.f32 %v2644_v17  ;;  %vm660_vm8 = vweird.f32 %v1915_v52  ;;  %1011 = vmatpush.msra.mxu0 %v2498_v7  ;;  %1031 = vmatpush.msra.mxu1 %v2500_v8  ;;  %vm698_vm1 = vweird.f32 %v2644_v17 }
 0x213   :  { %v670_v47 = vmul.f32 %v1917_v54, %v2628_v25  ;;  %1920 = vtanh.f32 %v645_v51  ;;  %vm675_vm9 = vweird.f32 %v1917_v54  ;;  %1071 = vmatpush.msra.mxu3 %v2506_v10  ;;  %vm661_vm12 = vmor %vm659_vm10, %vm660_vm8  ;;  %1052 = vmatpush.msra.mxu2 %v2514_v13 }
 0x214   :  { %v656_v45 = vsub.f32 1.0, %v655_v55  ;;  %1012 = vmatpush.msra.mxu0 %v2510_v11  ;;  %1032 = vmatpush.msra.mxu1 %v2512_v12  ;;  %vm676_vm13 = vmor %vm674_vm11, %vm675_vm9 }
 0x215   :  { %v671_v46 = vsub.f32 1.0, %v670_v47  ;;  %v678_v47 = vand.u32 2147483647, %v2628_v25  ;;  %1072 = vmatpush.msra.mxu3 %v2518_v14  ;;  %1053 = vmatpush.msra.mxu2 %v2526_v0 }
 0x216   :  { %v657_v63 = vmul.f32 %v1915_v52, %v656_v45  ;;  %1013 = vmatpush.msra.mxu0 %v2522_v15  ;;  %1033 = vmatpush.msra.mxu1 %v2524_v16 }
 0x217   :  { %v672_v55 = vmul.f32 %v1917_v54, %v671_v46  ;;  %v666_v46 = vor.u32 1.1754944e-38, %v665_v62  ;;  %vm679_vm15 = vcmp.eq.f32.partialorder %v678_v47, 8.507059e+37  ;;  %1073 = vmatpush.msra.mxu3 %v2530_v19  ;;  %1054 = vmatpush.msra.mxu2 %v2538_v22  ;;  %v3160_v47 = vld [vmem:[#allocation28_spill] sm:$0xff] }
 0x218   :  { %v2669_v51 = vpop.eup %1918  ;;  %v658_v6 = vadd.f32 %v1915_v52, %v657_v63  ;;  %v681_v63 = vor.u32 1.1754944e-38, %v680_v60  ;;  %1014 = vmatpush.msra.mxu0 %v2534_v20  ;;  %1034 = vmatpush.msra.mxu1 %v2536_v21 }
 0x219   :  { %v694_v45 = vmul.f32 %v2669_v51, %v2644_v17  ;;  %v673_v9 = vadd.f32 %v1917_v54, %v672_v55  ;;  %v1921_v25 = vpop.eup %1920  ;;  %1074 = vmatpush.msra.mxu3 %v2542_v23  ;;  %1055 = vmatpush.msra.mxu2 %v2550_v28  ;;  %vm699_vm0 = vweird.f32 %v2669_v51 }
 0x21a   :  { %v662_v44 = vsel %vm661_vm12, %v1915_v52, %v658_v6  ;;  %1015 = vmatpush.msra.mxu0 %v2546_v26  ;;  %1035 = vmatpush.msra.mxu1 %v2548_v27  ;;  %v702_v6 = vand.u32 2147483647, %v2644_v17  ;;  %vm700_vm2 = vmor %vm698_vm1, %vm699_vm0 }
 0x21b   :  { %v695_v12 = vsub.f32 1.0, %v694_v45  ;;  %v667_v11 = vsel %vm664_vm14, %v666_v46, %v662_v44  ;;  %v677_v10 = vsel %vm676_vm13, %v1917_v54, %v673_v9  ;;  %1075 = vmatpush.msra.mxu3 %v2554_v31  ;;  %1056 = vmatpush.msra.mxu2 %v2562_v34  ;;  %v3161_v45 = vld [vmem:[#allocation29_spill] sm:$0xff]  ;;  %v3163_v46 = vld [vmem:[#allocation31_spill] sm:$0xff] }
 0x21c   :  { %v682_v62 = vsel %vm679_vm15, %v681_v63, %v677_v10  ;;  %v687_v55 = vmul.f32 %v1921_v25, %v667_v11  ;;  %1016 = vmatpush.msra.mxu0 %v2558_v32  ;;  %1036 = vmatpush.msra.mxu1 %v2560_v33  ;;  %v3158_v10 = vld [vmem:[#allocation26_spill] sm:$0xff]  ;;  %v3159_v11 = vld [vmem:[#allocation27_spill] sm:$0xff]  ;;  %vm703_vm3 = vcmp.eq.f32.partialorder %v702_v6, 8.507059e+37  ;;  %v3164_v25 = vld [vmem:[#allocation32_spill] sm:$0xff] }
 0x21d   :  { %v696_v52 = vmul.f32 %v2669_v51, %v695_v12  ;;  %v686_v60 = vmul.f32 %v682_v62, %v2435_v41  ;;  %v704_v41 = vand.u32 2147483648, %v2644_v17  ;;  %1076 = vmatpush.msra.mxu3 %v2566_v38  ;;  %1057 = vmatpush.msra.mxu2 %v2574_v42  ;;  %v3162_v17 = vld [vmem:[#allocation30_spill] sm:$0xff]  ;;  %v3165_v62 = vld [vmem:[#allocation13_spill] sm:$0xff] }
 0x21e   :  { %1017 = vmatpush.msra.mxu0 %v2570_v39  ;;  %1037 = vmatpush.msra.mxu1 %v2572_v40 }
 0x21f   :  { %v2693_v54 = vadd.f32 %v687_v55, %v686_v60  ;;  %v697_v1 = vadd.f32 %v2669_v51, %v696_v52  ;;  %1077 = vmatpush.msra.mxu3 %v2578_v43  ;;  %v705_v12 = vor.u32 1.1754944e-38, %v704_v41  ;;  %1058 = vmatpush.msra.mxu2 %v3160_v47  ;;  %v3166_v55 = vld [vmem:[#allocation14_spill] sm:$0xff]  ;;  %v3167_v52 = vld [vmem:[#allocation15_spill] sm:$0xff]  ;;  %v3168_v60 = vld [vmem:[#allocation16_spill] sm:$0xff] }
 0x220   :  { %1018 = vmatpush.msra.mxu0 %v3158_v10  ;;  %1038 = vmatpush.msra.mxu1 %v3159_v11  ;;  %v3171_v41 = vld [vmem:[#allocation19_spill] sm:$0xff] }
 0x221   :  { %1922 = vtanh.f32 %v2693_v54  ;;  %v701_v9 = vsel %vm700_vm2, %v2669_v51, %v697_v1  ;;  %1078 = vmatpush.msra.mxu3 %v3161_v45  ;;  %1059 = vmatpush.msra.mxu2 %v2596_v18  ;;  %v3170_v1 = vld [vmem:[#allocation18_spill] sm:$0xff] }
 0x222   :  { %1019 = vmatpush.msra.mxu0 %v3162_v17  ;;  %1039 = vmatpush.msra.mxu1 %v3163_v46  ;;  %v706_v44 = vsel %vm703_vm3, %v705_v12, %v701_v9 }
 0x223   :  { %1079 = vmatpush.msra.mxu3 %v2598_v24  ;;  %1060 = vmatpush.msra.mxu2 %v2608_v35 }
 0x224   :  { %1020 = vmatpush.msra.mxu0 %v2602_v29  ;;  %1040 = vmatpush.msra.mxu1 %v2604_v30 }
 0x225   :  { %1080 = vmatpush.msra.mxu3 %v2610_v36  ;;  %1061 = vmatpush.msra.mxu2 %v2620_v49 }
 0x226   :  { %1021 = vmatpush.msra.mxu0 %v2614_v37  ;;  %1041 = vmatpush.msra.mxu1 %v2616_v50 }
 0x227   :  { %v1923_v63 = vpop.eup %1922  ;;  %1081 = vmatpush.msra.mxu3 %v3164_v25 }
 0x228   :  { %v709_v51 = vmul.f32 %v1923_v63, %v706_v44 }
 0x22a   :  { %713 = vst [vmem:[#allocation9 + $0x10] sm:$0xff] %v709_v51  ;;  %800 = vmatmul.f32.vlgmr.msrb.gmra.mxu0 %v709_v51  ;;  %820 = vmatmul.f32.vlgmr.msrb.gmra.mxu1 %v709_v51 }
 0x22b   :  { %840 = vmatmul.f32.vlgmr.msrb.gmra.mxu2 %v709_v51  ;;  %860 = vmatmul.f32.vlgmr.msrb.gmra.mxu3 %v709_v51 }
 0x22c   :  { %1228 = vmatpush.msrb.mxu0 %v2438_v48  ;;  %1248 = vmatpush.msrb.mxu1 %v3165_v62  ;;  %v3169_v48 = vld [vmem:[#allocation17_spill] sm:$0xff] }
 0x22d   :  { %1268 = vmatpush.msrb.mxu2 %v3166_v55  ;;  %1288 = vmatpush.msrb.mxu3 %v2446_v53  ;;  %v3172_v53 = vld [vmem:[#allocation20_spill] sm:$0xff] }
 0x22e   :  { %1229 = vmatpush.msrb.mxu0 %v3167_v52  ;;  %1249 = vmatpush.msrb.mxu1 %v3168_v60 }
 0x22f   :  { %1269 = vmatpush.msrb.mxu2 %v2454_v56  ;;  %1289 = vmatpush.msrb.mxu3 %v2458_v57  ;;  %v3173_v56 = vld [vmem:[#allocation21_spill] sm:$0xff]  ;;  %v3174_v57 = vld [vmem:[#allocation22_spill] sm:$0xff] }
 0x230   :  { %1230 = vmatpush.msrb.mxu0 %v2462_v58  ;;  %1250 = vmatpush.msrb.mxu1 %v2464_v59  ;;  %v3175_v58 = vld [vmem:[#allocation23_spill] sm:$0xff]  ;;  %v3176_v59 = vld [vmem:[#allocation24_spill] sm:$0xff] }
 0x231   :  { %1270 = vmatpush.msrb.mxu2 %v2466_v61  ;;  %1290 = vmatpush.msrb.mxu3 %v3169_v48  ;;  %v3177_v61 = vld [vmem:[#allocation25_spill] sm:$0xff] }
 0x232   :  { %1231 = vmatpush.msrb.mxu0 %v3170_v1  ;;  %1251 = vmatpush.msrb.mxu1 %v3171_v41 }
 0x233   :  { %1271 = vmatpush.msrb.mxu2 %v3172_v53  ;;  %1291 = vmatpush.msrb.mxu3 %v2482_v2  ;;  %v715_v2 = vld [vmem:[#allocation4 + $0x60] sm:$0xff]  ;;  %v938_v53 = vld [vmem:[#allocation4 + $0x88] sm:$0xff] }
 0x234   :  { %1232 = vmatpush.msrb.mxu0 %v2486_v3  ;;  %1252 = vmatpush.msrb.mxu1 %v2488_v4  ;;  %v716_v3 = vld [vmem:[#allocation4 + $0x68] sm:$0xff] }
 0x235   :  { %1272 = vmatpush.msrb.mxu2 %v2490_v5  ;;  %1292 = vmatpush.msrb.mxu3 %v3173_v56 }
 0x236   :  { %1233 = vmatpush.msrb.mxu0 %v2498_v7  ;;  %1253 = vmatpush.msrb.mxu1 %v2500_v8 }
 0x237   :  { %1273 = vmatpush.msrb.mxu2 %v3174_v57  ;;  %1293 = vmatpush.msrb.mxu3 %v3175_v58 }
 0x238   :  { %1234 = vmatpush.msrb.mxu0 %v3176_v59  ;;  %1254 = vmatpush.msrb.mxu1 %v3177_v61 }
 0x239   :  { %1274 = vmatpush.msrb.mxu2 %v2514_v13  ;;  %1294 = vmatpush.msrb.mxu3 %v2518_v14 }
 0x23a   :  { %1235 = vmatpush.msrb.mxu0 %v2522_v15  ;;  %1255 = vmatpush.msrb.mxu1 %v2524_v16  ;;  %v717_v15 = vld [vmem:[#allocation4 + $0x70] sm:$0xff] }
 0x23b   :  { %1275 = vmatpush.msrb.mxu2 %v2526_v0  ;;  %1295 = vmatpush.msrb.mxu3 %v2530_v19 }
 0x23c   :  { %1236 = vmatpush.msrb.mxu0 %v2534_v20  ;;  %1256 = vmatpush.msrb.mxu1 %v2536_v21 }
 0x23d   :  { %1276 = vmatpush.msrb.mxu2 %v2538_v22  ;;  %1296 = vmatpush.msrb.mxu3 %v2542_v23 }
 0x23e   :  { %1237 = vmatpush.msrb.mxu0 %v2546_v26  ;;  %1257 = vmatpush.msrb.mxu1 %v2548_v27  ;;  %v718_v26 = vld [vmem:[#allocation4 + $0x78] sm:$0xff] }
 0x23f   :  { %1277 = vmatpush.msrb.mxu2 %v2550_v28  ;;  %1297 = vmatpush.msrb.mxu3 %v2554_v31 }
 0x240   :  { %1238 = vmatpush.msrb.mxu0 %v2558_v32  ;;  %1258 = vmatpush.msrb.mxu1 %v2560_v33 }
 0x241   :  { %1278 = vmatpush.msrb.mxu2 %v2562_v34  ;;  %1298 = vmatpush.msrb.mxu3 %v2566_v38 }
 0x242   :  { %1239 = vmatpush.msrb.mxu0 %v2570_v39  ;;  %1259 = vmatpush.msrb.mxu1 %v2572_v40 }
 0x243   :  { %1279 = vmatpush.msrb.mxu2 %v2574_v42  ;;  %1299 = vmatpush.msrb.mxu3 %v2578_v43 }
 0x244   :  { %1240 = vmatpush.msrb.mxu0 %v3158_v10  ;;  %1260 = vmatpush.msrb.mxu1 %v3159_v11 }
 0x245   :  { %1280 = vmatpush.msrb.mxu2 %v3160_v47  ;;  %1300 = vmatpush.msrb.mxu3 %v3161_v45 }
 0x246   :  { %1241 = vmatpush.msrb.mxu0 %v3162_v17  ;;  %1261 = vmatpush.msrb.mxu1 %v3163_v46 }
 0x247   :  { %1281 = vmatpush.msrb.mxu2 %v2596_v18  ;;  %1301 = vmatpush.msrb.mxu3 %v2598_v24 }
 0x248   :  { %1242 = vmatpush.msrb.mxu0 %v2602_v29  ;;  %1262 = vmatpush.msrb.mxu1 %v2604_v30 }
 0x249   :  { %1282 = vmatpush.msrb.mxu2 %v2608_v35  ;;  %1302 = vmatpush.msrb.mxu3 %v2610_v36 }
 0x24a   :  { %1243 = vmatpush.msrb.mxu0 %v2614_v37  ;;  %1263 = vmatpush.msrb.mxu1 %v2616_v50 }
 0x24b   :  { %1283 = vmatpush.msrb.mxu2 %v2620_v49  ;;  %1303 = vmatpush.msrb.mxu3 %v3164_v25 }
 0x2a7   :  { %v801_v4 = vpop.f32.mrf.mxu0  ;;  %v821_v5 = vpop.f32.mrf.mxu1 }
 0x2a8   :  { %v864_v7 = vadd.f32 %v801_v4, %v715_v2  ;;  %v865_v8 = vadd.f32 %v821_v5, %v716_v3  ;;  %v939_v3 = vld [vmem:[#allocation4 + $0x90] sm:$0xff] }
 0x2aa   :  { %v1853_v13 = vmul.f32 -1.442695, %v864_v7  ;;  %v1854_v14 = vmul.f32 -1.442695, %v865_v8 }
 0x2ac   :  { %1924 = vpow2.f32 %v1853_v13 }
 0x2ad   :  { %1926 = vpow2.f32 %v1854_v14 }
 0x2ae   :  { %v841_v16 = vpop.f32.mrf.mxu2  ;;  %v861_v27 = vpop.f32.mrf.mxu3 }
 0x2af   :  { %v866_v0 = vadd.f32 %v841_v16, %v717_v15  ;;  %v867_v33 = vadd.f32 %v861_v27, %v718_v26  ;;  %v940_v16 = vld [vmem:[#allocation4 + $0x98] sm:$0xff] }
 0x2b1   :  { %v1855_v19 = vmul.f32 -1.442695, %v866_v0 }
 0x2b2   :  { %v1925_v20 = vpop.eup %1924 }
 0x2b3   :  { %v1927_v21 = vpop.eup %1926  ;;  %v874_v22 = vadd.f32 1.0, %v1925_v20  ;;  %1928 = vpow2.f32 %v1855_v19 }
 0x2b4   :  { %v875_v23 = vadd.f32 1.0, %v1927_v21 }
 0x2b5   :  { %1930 = vrcp.f32 %v874_v22  ;;  %v887_v43 = vand.u32 2147483648, %v874_v22  ;;  %v885_v24 = vand.u32 2147483647, %v874_v22  ;;  %vm881_vm6 = vweird.f32 %v874_v22 }
 0x2b6   :  { %1932 = vrcp.f32 %v875_v23  ;;  %v902_v49 = vand.u32 2147483648, %v875_v23  ;;  %v900_v30 = vand.u32 2147483647, %v875_v23  ;;  %vm896_vm7 = vweird.f32 %v875_v23 }
 0x2b7   :  { %v888_v50 = vor.u32 1.1754944e-38, %v887_v43  ;;  %vm886_vm10 = vcmp.eq.f32.partialorder %v885_v24, 8.507059e+37 }
 0x2b8   :  { %v903_v9 = vor.u32 1.1754944e-38, %v902_v49  ;;  %vm901_vm11 = vcmp.eq.f32.partialorder %v900_v30, 8.507059e+37 }
 0x2b9   :  { %v1929_v28 = vpop.eup %1928 }
 0x2ba   :  { %v914_v31 = vadd.f32 1.0, %v1929_v28 }
 0x2bb   :  { %v1931_v32 = vpop.eup %1930 }
 0x2bc   :  { %v1933_v34 = vpop.eup %1932  ;;  %v877_v38 = vmul.f32 %v1931_v32, %v874_v22  ;;  %1934 = vrcp.f32 %v914_v31  ;;  %vm882_vm4 = vweird.f32 %v1931_v32  ;;  %v926_v62 = vand.u32 2147483648, %v914_v31 }
 0x2bd   :  { %v892_v39 = vmul.f32 %v1933_v34, %v875_v23  ;;  %1936 = vtanh.f32 %v867_v33  ;;  %vm897_vm5 = vweird.f32 %v1933_v34  ;;  %vm883_vm8 = vmor %vm881_vm6, %vm882_vm4  ;;  %vm920_vm13 = vweird.f32 %v914_v31 }
 0x2be   :  { %v878_v40 = vsub.f32 1.0, %v877_v38  ;;  %vm898_vm9 = vmor %vm896_vm7, %vm897_vm5  ;;  %v924_v55 = vand.u32 2147483647, %v914_v31  ;;  %v927_v60 = vor.u32 1.1754944e-38, %v926_v62 }
 0x2bf   :  { %v893_v42 = vsub.f32 1.0, %v892_v39 }
 0x2c0   :  { %v879_v18 = vmul.f32 %v1931_v32, %v878_v40  ;;  %vm925_vm15 = vcmp.eq.f32.partialorder %v924_v55, 8.507059e+37  ;;  %v2802_v55 = vld [vmem:[#allocation7 + $0x1e8] sm:$0xff] }
 0x2c1   :  { %v894_v29 = vmul.f32 %v1933_v34, %v893_v42 }
 0x2c2   :  { %v1935_v35 = vpop.eup %1934  ;;  %v880_v36 = vadd.f32 %v1931_v32, %v879_v18 }
 0x2c3   :  { %v916_v37 = vmul.f32 %v1935_v35, %v914_v31  ;;  %v895_v6 = vadd.f32 %v1933_v34, %v894_v29  ;;  %v1937_v11 = vpop.eup %1936  ;;  %vm921_vm12 = vweird.f32 %v1935_v35 }
 0x2c4   :  { %v884_v10 = vsel %vm883_vm8, %v1931_v32, %v880_v36  ;;  %vm922_vm14 = vmor %vm920_vm13, %vm921_vm12 }
 0x2c5   :  { %v917_v12 = vsub.f32 1.0, %v916_v37  ;;  %v889_v47 = vsel %vm886_vm10, %v888_v50, %v884_v10  ;;  %v899_v45 = vsel %vm898_vm9, %v1933_v34, %v895_v6 }
 0x2c6   :  { %v904_v17 = vsel %vm901_vm11, %v903_v9, %v899_v45  ;;  %v909_v46 = vmul.f32 %v1937_v11, %v889_v47 }
 0x2c7   :  { %v918_v63 = vmul.f32 %v1935_v35, %v917_v12  ;;  %v908_v44 = vmul.f32 %v904_v17, %v2693_v54  ;;  %v937_v54 = vld [vmem:[#allocation4 + $0x80] sm:$0xff] }
 0x2c9   :  { %v2793_v51 = vadd.f32 %v909_v46, %v908_v44  ;;  %v919_v25 = vadd.f32 %v1935_v35, %v918_v63 }
 0x2cb   :  { %1938 = vtanh.f32 %v2793_v51  ;;  %v923_v52 = vsel %vm922_vm14, %v1935_v35, %v919_v25 }
 0x2cc   :  { %v928_v1 = vsel %vm925_vm15, %v927_v60, %v923_v52  ;;  %v2804_v52 = vld [vmem:[#allocation7 + $0x1f0] sm:$0xff]  ;;  %v2808_v60 = vld [vmem:[#allocation7 + $0x1f8] sm:$0xff] }
 0x2d1   :  { %v1939_v48 = vpop.eup %1938 }
 0x2d2   :  { %v931_v41 = vmul.f32 %v1939_v48, %v928_v1  ;;  %v2812_v48 = vld [vmem:[#allocation7 + $0x1c0] sm:$0xff]  ;;  %v2814_v1 = vld [vmem:[#allocation7 + $0x1c8] sm:$0xff] }
 0x2d4   :  { %935 = vst [vmem:[#allocation9 + $0x18] sm:$0xff] %v931_v41  ;;  %1022 = vmatmul.f32.vlgmr.msra.gmra.mxu0 %v931_v41  ;;  %1042 = vmatmul.f32.vlgmr.msra.gmra.mxu1 %v931_v41 }
 0x2d5   :  { %1062 = vmatmul.f32.vlgmr.msra.gmra.mxu2 %v931_v41  ;;  %1082 = vmatmul.f32.vlgmr.msra.gmra.mxu3 %v931_v41  ;;  %v2816_v41 = vld [vmem:[#allocation7 + $0x1d0] sm:$0xff] }
 0x2d6   :  { %1470 = vmatpush.msra.mxu1 %v2802_v55  ;;  %1490 = vmatpush.msra.mxu2 %v2804_v52 }
 0x2d7   :  { %1510 = vmatpush.msra.mxu3 %v2808_v60 }
 0x2d8   :  { %1471 = vmatpush.msra.mxu1 %v2814_v1  ;;  %1491 = vmatpush.msra.mxu2 %v2816_v41 }
 0x351   :  { %v1023_v56 = vpop.f32.mrf.mxu0  ;;  %v1043_v57 = vpop.f32.mrf.mxu1 }
 0x352   :  { %v1086_v58 = vadd.f32 %v1023_v56, %v937_v54  ;;  %v1087_v59 = vadd.f32 %v1043_v57, %v938_v53  ;;  %v2820_v54 = vld [vmem:[#allocation7 + $0x1d8] sm:$0xff]  ;;  %v2824_v53 = vld [vmem:[#allocation7 + $0x1a0] sm:$0xff]  ;;  %v2826_v56 = vld [vmem:[#allocation7 + $0x1a8] sm:$0xff] }
 0x353   :  { %1511 = vmatpush.msra.mxu3 %v2820_v54  ;;  %v2828_v57 = vld [vmem:[#allocation7 + $0x1b0] sm:$0xff]  ;;  %1472 = vmatpush.msra.mxu1 %v2826_v56 }
 0x354   :  { %v1856_v61 = vmul.f32 -1.442695, %v1086_v58  ;;  %v1857_v2 = vmul.f32 -1.442695, %v1087_v59  ;;  %v2832_v58 = vld [vmem:[#allocation7 + $0x1b8] sm:$0xff]  ;;  %1492 = vmatpush.msra.mxu2 %v2828_v57  ;;  %v2836_v59 = vld [vmem:[#allocation7 + $0x180] sm:$0xff] }
 0x355   :  { %1512 = vmatpush.msra.mxu3 %v2832_v58 }
 0x356   :  { %1940 = vpow2.f32 %v1856_v61  ;;  %v2838_v61 = vld [vmem:[#allocation7 + $0x188] sm:$0xff] }
 0x357   :  { %1942 = vpow2.f32 %v1857_v2  ;;  %v2840_v2 = vld [vmem:[#allocation7 + $0x190] sm:$0xff]  ;;  %1473 = vmatpush.msra.mxu1 %v2838_v61 }
 0x358   :  { %v1063_v4 = vpop.f32.mrf.mxu2  ;;  %v1083_v0 = vpop.f32.mrf.mxu3  ;;  %1493 = vmatpush.msra.mxu2 %v2840_v2 }
 0x359   :  { %v1088_v5 = vadd.f32 %v1063_v4, %v939_v3  ;;  %v1089_v22 = vadd.f32 %v1083_v0, %v940_v16  ;;  %v2844_v3 = vld [vmem:[#allocation7 + $0x198] sm:$0xff]  ;;  %v2848_v4 = vld [vmem:[#allocation7 + $0x160] sm:$0xff] }
 0x35a   :  { %1513 = vmatpush.msra.mxu3 %v2844_v3  ;;  %v2868_v16 = vld [vmem:[#allocation7 + $0x158] sm:$0xff]  ;;  %v2872_v0 = vld [vmem:[#allocation7 + $0x120] sm:$0xff] }
 0x35b   :  { %v1858_v7 = vmul.f32 -1.442695, %v1088_v5  ;;  %v2850_v5 = vld [vmem:[#allocation7 + $0x168] sm:$0xff] }
 0x35c   :  { %v1941_v8 = vpop.eup %1940  ;;  %1474 = vmatpush.msra.mxu1 %v2850_v5 }
 0x35d   :  { %v1943_v13 = vpop.eup %1942  ;;  %v1096_v14 = vadd.f32 1.0, %v1941_v8  ;;  %1944 = vpow2.f32 %v1858_v7  ;;  %v2852_v7 = vld [vmem:[#allocation7 + $0x170] sm:$0xff]  ;;  %v2856_v8 = vld [vmem:[#allocation7 + $0x178] sm:$0xff] }
 0x35e   :  { %v1097_v15 = vadd.f32 1.0, %v1943_v13  ;;  %1494 = vmatpush.msra.mxu2 %v2852_v7  ;;  %1514 = vmatpush.msra.mxu3 %v2856_v8  ;;  %v2860_v13 = vld [vmem:[#allocation7 + $0x140] sm:$0xff] }
 0x35f   :  { %1946 = vrcp.f32 %v1096_v14  ;;  %v1109_v32 = vand.u32 2147483648, %v1096_v14  ;;  %v1107_v38 = vand.u32 2147483647, %v1096_v14  ;;  %vm1103_vm2 = vweird.f32 %v1096_v14 }
 0x360   :  { %1948 = vrcp.f32 %v1097_v15  ;;  %v1124_v33 = vand.u32 2147483648, %v1097_v15  ;;  %v1122_v40 = vand.u32 2147483647, %v1097_v15  ;;  %vm1118_vm3 = vweird.f32 %v1097_v15  ;;  %1515 = vmatpush.msra.mxu3 %v2868_v16 }
 0x361   :  { %v1110_v18 = vor.u32 1.1754944e-38, %v1109_v32  ;;  %vm1108_vm6 = vcmp.eq.f32.partialorder %v1107_v38, 8.507059e+37  ;;  %v2896_v32 = vld [vmem:[#allocation7 + $0xe0] sm:$0xff]  ;;  %v2904_v38 = vld [vmem:[#allocation7 + $0xf8] sm:$0xff] }
 0x362   :  { %v1125_v29 = vor.u32 1.1754944e-38, %v1124_v33  ;;  %vm1123_vm7 = vcmp.eq.f32.partialorder %v1122_v40, 8.507059e+37  ;;  %v2898_v33 = vld [vmem:[#allocation7 + $0xe8] sm:$0xff] }
 0x363   :  { %v1945_v19 = vpop.eup %1944 }
 0x364   :  { %v1136_v20 = vadd.f32 1.0, %v1945_v19  ;;  %v2874_v19 = vld [vmem:[#allocation7 + $0x128] sm:$0xff] }
 0x365   :  { %v1947_v21 = vpop.eup %1946 }
 0x366   :  { %v1949_v23 = vpop.eup %1948  ;;  %v1099_v26 = vmul.f32 %v1947_v21, %v1096_v14  ;;  %1950 = vrcp.f32 %v1136_v20  ;;  %vm1104_vm0 = vweird.f32 %v1947_v21  ;;  %v1148_v45 = vand.u32 2147483648, %v1136_v20  ;;  %v2862_v14 = vld [vmem:[#allocation7 + $0x148] sm:$0xff] }
 0x367   :  { %v1114_v27 = vmul.f32 %v1949_v23, %v1097_v15  ;;  %1952 = vtanh.f32 %v1089_v22  ;;  %vm1119_vm1 = vweird.f32 %v1949_v23  ;;  %vm1105_vm4 = vmor %vm1103_vm2, %vm1104_vm0  ;;  %vm1142_vm9 = vweird.f32 %v1136_v20  ;;  %v2864_v15 = vld [vmem:[#allocation7 + $0x150] sm:$0xff]  ;;  %1475 = vmatpush.msra.mxu1 %v2862_v14  ;;  %v2884_v22 = vld [vmem:[#allocation7 + $0x100] sm:$0xff] }
 0x368   :  { %v1100_v28 = vsub.f32 1.0, %v1099_v26  ;;  %vm1120_vm5 = vmor %vm1118_vm3, %vm1119_vm1  ;;  %v1146_v17 = vand.u32 2147483647, %v1136_v20  ;;  %v1149_v63 = vor.u32 1.1754944e-38, %v1148_v45  ;;  %1495 = vmatpush.msra.mxu2 %v2864_v15  ;;  %v2888_v26 = vld [vmem:[#allocation7 + $0x110] sm:$0xff]  ;;  %v2940_v45 = vld [vmem:[#allocation7 + $0x98] sm:$0xff] }
 0x369   :  { %v1115_v31 = vsub.f32 1.0, %v1114_v27  ;;  %1476 = vmatpush.msra.mxu1 %v2874_v19  ;;  %v1159_v27 = vld [vmem:[#allocation4 + $0xa0] sm:$0xff] }
 0x36a   :  { %v1101_v34 = vmul.f32 %v1947_v21, %v1100_v28  ;;  %vm1147_vm11 = vcmp.eq.f32.partialorder %v1146_v17, 8.507059e+37  ;;  %v1160_v28 = vld [vmem:[#allocation4 + $0xa8] sm:$0xff]  ;;  %v2942_v17 = vld [vmem:[#allocation7 + $0x60] sm:$0xff] }
 0x36b   :  { %v1116_v39 = vmul.f32 %v1949_v23, %v1115_v31  ;;  %v2892_v31 = vld [vmem:[#allocation7 + $0x118] sm:$0xff]  ;;  %3178 = vst [vmem:[#allocation26_spill] sm:$0xff] %v2942_v17 }
 0x36c   :  { %v1951_v42 = vpop.eup %1950  ;;  %v1102_v43 = vadd.f32 %v1947_v21, %v1101_v34  ;;  %v2900_v34 = vld [vmem:[#allocation7 + $0xf0] sm:$0xff] }
 0x36d   :  { %v1138_v49 = vmul.f32 %v1951_v42, %v1136_v20  ;;  %v1117_v24 = vadd.f32 %v1949_v23, %v1116_v39  ;;  %v1953_v35 = vpop.eup %1952  ;;  %vm1143_vm8 = vweird.f32 %v1951_v42  ;;  %v2876_v20 = vld [vmem:[#allocation7 + $0x130] sm:$0xff] }
 0x36e   :  { %v1106_v30 = vsel %vm1105_vm4, %v1947_v21, %v1102_v43  ;;  %vm1144_vm10 = vmor %vm1142_vm9, %vm1143_vm8  ;;  %v2880_v21 = vld [vmem:[#allocation7 + $0x138] sm:$0xff]  ;;  %1496 = vmatpush.msra.mxu2 %v2876_v20  ;;  %v2910_v43 = vld [vmem:[#allocation7 + $0xc8] sm:$0xff] }
 0x36f   :  { %v1139_v36 = vsub.f32 1.0, %v1138_v49  ;;  %v1111_v37 = vsel %vm1108_vm6, %v1110_v18, %v1106_v30  ;;  %v1121_v50 = vsel %vm1120_vm5, %v1949_v23, %v1117_v24  ;;  %1516 = vmatpush.msra.mxu3 %v2880_v21  ;;  %v2886_v23 = vld [vmem:[#allocation7 + $0x108] sm:$0xff]  ;;  %v2912_v49 = vld [vmem:[#allocation7 + $0xd0] sm:$0xff]  ;;  %v2920_v30 = vld [vmem:[#allocation7 + $0xa0] sm:$0xff] }
 0x370   :  { %v1126_v6 = vsel %vm1123_vm7, %v1125_v29, %v1121_v50  ;;  %v1131_v9 = vmul.f32 %v1953_v35, %v1111_v37  ;;  %1477 = vmatpush.msra.mxu1 %v2886_v23  ;;  %1497 = vmatpush.msra.mxu2 %v2888_v26  ;;  %v2916_v29 = vld [vmem:[#allocation7 + $0xd8] sm:$0xff]  ;;  %v2922_v35 = vld [vmem:[#allocation7 + $0xa8] sm:$0xff] }
 0x371   :  { %v1140_v10 = vmul.f32 %v1951_v42, %v1139_v36  ;;  %v1130_v11 = vmul.f32 %v1126_v6, %v2793_v51  ;;  %v2800_v51 = vld [vmem:[#allocation7 + $0x1e0] sm:$0xff]  ;;  %1517 = vmatpush.msra.mxu3 %v2892_v31  ;;  %v2924_v36 = vld [vmem:[#allocation7 + $0xb0] sm:$0xff] }
 0x372   :  { %1450 = vmatpush.msra.mxu0 %v2800_v51  ;;  %1478 = vmatpush.msra.mxu1 %v2898_v33  ;;  %v1161_v6 = vld [vmem:[#allocation4 + $0xb0] sm:$0xff] }
 0x373   :  { %v2797_v12 = vadd.f32 %v1131_v9, %v1130_v11  ;;  %v1141_v47 = vadd.f32 %v1951_v42, %v1140_v10  ;;  %1498 = vmatpush.msra.mxu2 %v2900_v34  ;;  %1518 = vmatpush.msra.mxu3 %v2904_v38  ;;  %v2928_v9 = vld [vmem:[#allocation7 + $0xb8] sm:$0xff]  ;;  %v2932_v10 = vld [vmem:[#allocation7 + $0x80] sm:$0xff]  ;;  %v2934_v11 = vld [vmem:[#allocation7 + $0x88] sm:$0xff] }
 0x374   :  { %1451 = vmatpush.msra.mxu0 %v2812_v48  ;;  %1479 = vmatpush.msra.mxu1 %v2910_v43 }
 0x375   :  { %1954 = vtanh.f32 %v2797_v12  ;;  %v1145_v46 = vsel %vm1144_vm10, %v1951_v42, %v1141_v47  ;;  %v2908_v42 = vld [vmem:[#allocation7 + $0xc0] sm:$0xff]  ;;  %1499 = vmatpush.msra.mxu2 %v2912_v49  ;;  %1519 = vmatpush.msra.mxu3 %v2916_v29  ;;  %v2936_v47 = vld [vmem:[#allocation7 + $0x90] sm:$0xff] }
 0x376   :  { %v1150_v25 = vsel %vm1147_vm11, %v1149_v63, %v1145_v46  ;;  %1452 = vmatpush.msra.mxu0 %v2824_v53  ;;  %1480 = vmatpush.msra.mxu1 %v2922_v35  ;;  %v2944_v46 = vld [vmem:[#allocation7 + $0x68] sm:$0xff]  ;;  %v2948_v63 = vld [vmem:[#allocation7 + $0x70] sm:$0xff] }
 0x377   :  { %1500 = vmatpush.msra.mxu2 %v2924_v36  ;;  %1520 = vmatpush.msra.mxu3 %v2928_v9  ;;  %3179 = vst [vmem:[#allocation27_spill] sm:$0xff] %v2944_v46 }
 0x378   :  { %1453 = vmatpush.msra.mxu0 %v2836_v59  ;;  %1481 = vmatpush.msra.mxu1 %v2934_v11  ;;  %3180 = vst [vmem:[#allocation28_spill] sm:$0xff] %v2948_v63 }
 0x379   :  { %1501 = vmatpush.msra.mxu2 %v2936_v47  ;;  %1521 = vmatpush.msra.mxu3 %v2940_v45 }
 0x37a   :  { %1454 = vmatpush.msra.mxu0 %v2848_v4  ;;  %1482 = vmatpush.msra.mxu1 %v2944_v46 }
 0x37b   :  { %v1955_v44 = vpop.eup %1954  ;;  %1502 = vmatpush.msra.mxu2 %v2948_v63 }
 0x37c   :  { %v1153_v62 = vmul.f32 %v1955_v44, %v1150_v25  ;;  %1455 = vmatpush.msra.mxu0 %v2860_v13  ;;  %v2950_v44 = vld [vmem:[#allocation7 + $0x78] sm:$0xff]  ;;  %v2952_v25 = vld [vmem:[#allocation7 + $0x40] sm:$0xff] }
 0x37d   :  { %3181 = vst [vmem:[#allocation29_spill] sm:$0xff] %v2950_v44  ;;  %1522 = vmatpush.msra.mxu3 %v2950_v44 }
 0x37e   :  { %1157 = vst [vmem:[#allocation9 + $0x20] sm:$0xff] %v1153_v62  ;;  %1244 = vmatmul.f32.vlgmr.msrb.gmra.mxu0 %v1153_v62  ;;  %1264 = vmatmul.f32.vlgmr.msrb.gmra.mxu1 %v1153_v62 }
 0x37f   :  { %1284 = vmatmul.f32.vlgmr.msrb.gmra.mxu2 %v1153_v62  ;;  %1304 = vmatmul.f32.vlgmr.msrb.gmra.mxu3 %v1153_v62  ;;  %3182 = vst [vmem:[#allocation30_spill] sm:$0xff] %v2952_v25 }
 0x380   :  { %1456 = vmatpush.msra.mxu0 %v2872_v0 }
 0x382   :  { %1457 = vmatpush.msra.mxu0 %v2884_v22 }
 0x384   :  { %1458 = vmatpush.msra.mxu0 %v2896_v32 }
 0x386   :  { %1459 = vmatpush.msra.mxu0 %v2908_v42 }
 0x388   :  { %1460 = vmatpush.msra.mxu0 %v2920_v30 }
 0x38a   :  { %1461 = vmatpush.msra.mxu0 %v2932_v10 }
 0x38c   :  { %1462 = vmatpush.msra.mxu0 %v2942_v17 }
 0x38e   :  { %1463 = vmatpush.msra.mxu0 %v2952_v25  ;;  %v2982_v25 = vld [vmem:[#allocation7 + $0x10] sm:$0xff] }
 0x3fb   :  { %v1245_v39 = vpop.f32.mrf.mxu0  ;;  %v1265_v40 = vpop.f32.mrf.mxu1 }
 0x3fc   :  { %v1308_v18 = vadd.f32 %v1245_v39, %v1159_v27  ;;  %v1309_v24 = vadd.f32 %v1265_v40, %v1160_v28  ;;  %v2956_v27 = vld [vmem:[#allocation7 + $0x48] sm:$0xff]  ;;  %v2958_v28 = vld [vmem:[#allocation7 + $0x50] sm:$0xff]  ;;  %v2960_v39 = vld [vmem:[#allocation7 + $0x58] sm:$0xff] }
 0x3fd   :  { %3183 = vst [vmem:[#allocation31_spill] sm:$0xff] %v2956_v27  ;;  %1483 = vmatpush.msra.mxu1 %v2956_v27  ;;  %1503 = vmatpush.msra.mxu2 %v2958_v28  ;;  %v2984_v27 = vld [vmem:[#allocation7 + $0x18] sm:$0xff] }
 0x3fe   :  { %v1859_v37 = vmul.f32 -1.442695, %v1308_v18  ;;  %v1860_v50 = vmul.f32 -1.442695, %v1309_v24  ;;  %v2964_v18 = vld [vmem:[#allocation7 + $0x20] sm:$0xff]  ;;  %v2966_v24 = vld [vmem:[#allocation7 + $0x28] sm:$0xff]  ;;  %1523 = vmatpush.msra.mxu3 %v2960_v39 }
 0x3ff   :  { %1464 = vmatpush.msra.mxu0 %v2964_v18  ;;  %1484 = vmatpush.msra.mxu1 %v2966_v24  ;;  %3184 = vst [vmem:[#allocation32_spill] sm:$0xff] %v2984_v27 }
 0x400   :  { %1956 = vpow2.f32 %v1859_v37  ;;  %v2970_v37 = vld [vmem:[#allocation7 + $0x30] sm:$0xff] }
 0x401   :  { %1958 = vpow2.f32 %v1860_v50  ;;  %v2972_v50 = vld [vmem:[#allocation7 + $0x38] sm:$0xff]  ;;  %1504 = vmatpush.msra.mxu2 %v2970_v37 }
 0x402   :  { %v1285_v62 = vpop.f32.mrf.mxu2  ;;  %1524 = vmatpush.msra.mxu3 %v2972_v50 }
 0x403   :  { %v1310_v40 = vadd.f32 %v1285_v62, %v1161_v6  ;;  %v2976_v6 = vld [vmem:[#allocation7] sm:$0xff]  ;;  %v2978_v62 = vld [vmem:[#allocation7 + $0x8] sm:$0xff]  ;;  %1505 = vmatpush.msra.mxu2 %v2982_v25 }
 0x404   :  { %1465 = vmatpush.msra.mxu0 %v2976_v6  ;;  %1485 = vmatpush.msra.mxu1 %v2978_v62 }
 0x405   :  { %v1861_v46 = vmul.f32 -1.442695, %v1310_v40  ;;  %1525 = vmatpush.msra.mxu3 %v2984_v27  ;;  %1712 = vmatpush.msrb.mxu2 %v2804_v52 }
 0x406   :  { %v1957_v44 = vpop.eup %1956  ;;  %1672 = vmatpush.msrb.mxu0 %v2800_v51  ;;  %1692 = vmatpush.msrb.mxu1 %v2802_v55 }
 0x407   :  { %v1959_v63 = vpop.eup %1958  ;;  %v2986_v17 = vadd.f32 1.0, %v1957_v44  ;;  %1960 = vpow2.f32 %v1861_v46  ;;  %1732 = vmatpush.msrb.mxu3 %v2808_v60  ;;  %v1162_v46 = vld [vmem:[#allocation4 + $0xb8] sm:$0xff]  ;;  %1713 = vmatpush.msrb.mxu2 %v2816_v41 }
 0x408   :  { %v2990_v40 = vadd.f32 1.0, %v1959_v63  ;;  %v1305_v63 = vpop.f32.mrf.mxu3  ;;  %1673 = vmatpush.msrb.mxu0 %v2812_v48  ;;  %1693 = vmatpush.msrb.mxu1 %v2814_v1 }
 0x409   :  { %1962 = vrcp.f32 %v2986_v17  ;;  %1733 = vmatpush.msrb.mxu3 %v2820_v54  ;;  %v1311_v55 = vadd.f32 %v1305_v63, %v1162_v46  ;;  %1714 = vmatpush.msrb.mxu2 %v2828_v57  ;;  %v1331_v54 = vand.u32 2147483648, %v2986_v17  ;;  %v1329_v57 = vand.u32 2147483647, %v2986_v17 }
 0x40a   :  { %1964 = vrcp.f32 %v2990_v40  ;;  %1674 = vmatpush.msrb.mxu0 %v2824_v53  ;;  %1694 = vmatpush.msrb.mxu1 %v2826_v56  ;;  %v1346_v53 = vand.u32 2147483648, %v2990_v40  ;;  %vm1325_vm14 = vweird.f32 %v2986_v17  ;;  %vm1340_vm15 = vweird.f32 %v2990_v40 }
 0x40b   :  { %1734 = vmatpush.msrb.mxu3 %v2832_v58  ;;  %1715 = vmatpush.msrb.mxu2 %v2840_v2  ;;  %vm1330_vm2 = vcmp.eq.f32.partialorder %v1329_v57, 8.507059e+37 }
 0x40c   :  { %1675 = vmatpush.msrb.mxu0 %v2836_v59  ;;  %1695 = vmatpush.msrb.mxu1 %v2838_v61  ;;  %v1344_v59 = vand.u32 2147483647, %v2990_v40 }
 0x40d   :  { %v1961_v44 = vpop.eup %1960  ;;  %1735 = vmatpush.msrb.mxu3 %v2844_v3  ;;  %1716 = vmatpush.msrb.mxu2 %v2852_v7  ;;  %v1347_v7 = vor.u32 1.1754944e-38, %v1346_v53 }
 0x40e   :  { %v3006_v27 = vadd.f32 1.0, %v1961_v44  ;;  %1676 = vmatpush.msrb.mxu0 %v2848_v4  ;;  %1696 = vmatpush.msrb.mxu1 %v2850_v5  ;;  %v1332_v4 = vor.u32 1.1754944e-38, %v1331_v54  ;;  %vm1345_vm3 = vcmp.eq.f32.partialorder %v1344_v59, 8.507059e+37 }
 0x40f   :  { %v1963_v51 = vpop.eup %1962  ;;  %1736 = vmatpush.msrb.mxu3 %v2856_v8  ;;  %1717 = vmatpush.msrb.mxu2 %v2864_v15 }
 0x410   :  { %v1965_v52 = vpop.eup %1964  ;;  %v1321_v60 = vmul.f32 %v1963_v51, %v2986_v17  ;;  %1966 = vrcp.f32 %v3006_v27  ;;  %vm1326_vm12 = vweird.f32 %v1963_v51  ;;  %1677 = vmatpush.msrb.mxu0 %v2860_v13  ;;  %1697 = vmatpush.msrb.mxu1 %v2862_v14  ;;  %vm1364_vm5 = vweird.f32 %v3006_v27 }
 0x411   :  { %v1336_v48 = vmul.f32 %v1965_v52, %v2990_v40  ;;  %1968 = vtanh.f32 %v1311_v55  ;;  %vm1341_vm13 = vweird.f32 %v1965_v52  ;;  %1737 = vmatpush.msrb.mxu3 %v2868_v16  ;;  %vm1327_vm0 = vmor %vm1325_vm14, %vm1326_vm12  ;;  %1718 = vmatpush.msrb.mxu2 %v2876_v20  ;;  %v1384_v40 = vld [vmem:[#allocation4 + $0xd8] sm:$0xff] }
 0x412   :  { %v1322_v1 = vsub.f32 1.0, %v1321_v60  ;;  %1678 = vmatpush.msrb.mxu0 %v2872_v0  ;;  %1698 = vmatpush.msrb.mxu1 %v2874_v19  ;;  %vm1342_vm1 = vmor %vm1340_vm15, %vm1341_vm13 }
 0x413   :  { %v1337_v41 = vsub.f32 1.0, %v1336_v48  ;;  %1738 = vmatpush.msrb.mxu3 %v2880_v21  ;;  %1719 = vmatpush.msrb.mxu2 %v2888_v26  ;;  %v1368_v26 = vand.u32 2147483647, %v3006_v27 }
 0x414   :  { %v1323_v56 = vmul.f32 %v1963_v51, %v1322_v1  ;;  %1679 = vmatpush.msrb.mxu0 %v2884_v22  ;;  %1699 = vmatpush.msrb.mxu1 %v2886_v23 }
 0x415   :  { %v1338_v58 = vmul.f32 %v1965_v52, %v1337_v41  ;;  %1739 = vmatpush.msrb.mxu3 %v2892_v31  ;;  %1720 = vmatpush.msrb.mxu2 %v2900_v34  ;;  %vm1369_vm7 = vcmp.eq.f32.partialorder %v1368_v26, 8.507059e+37 }
 0x416   :  { %v3031_v61 = vpop.eup %1966  ;;  %v1324_v2 = vadd.f32 %v1963_v51, %v1323_v56  ;;  %1680 = vmatpush.msrb.mxu0 %v2896_v32  ;;  %1700 = vmatpush.msrb.mxu1 %v2898_v33  ;;  %v3185_v32 = vld [vmem:[#allocation26_spill] sm:$0xff]  ;;  %v3186_v33 = vld [vmem:[#allocation27_spill] sm:$0xff] }
 0x417   :  { %v1360_v3 = vmul.f32 %v3031_v61, %v3006_v27  ;;  %v1339_v5 = vadd.f32 %v1965_v52, %v1338_v58  ;;  %v1969_v13 = vpop.eup %1968  ;;  %1740 = vmatpush.msrb.mxu3 %v2904_v38  ;;  %1721 = vmatpush.msrb.mxu2 %v2912_v49  ;;  %vm1365_vm4 = vweird.f32 %v3031_v61  ;;  %v3187_v38 = vld [vmem:[#allocation28_spill] sm:$0xff]  ;;  %v3190_v49 = vld [vmem:[#allocation31_spill] sm:$0xff] }
 0x418   :  { %v1328_v8 = vsel %vm1327_vm0, %v1963_v51, %v1324_v2  ;;  %1681 = vmatpush.msrb.mxu0 %v2908_v42  ;;  %1701 = vmatpush.msrb.mxu1 %v2910_v43  ;;  %vm1366_vm6 = vmor %vm1364_vm5, %vm1365_vm4  ;;  %v3188_v42 = vld [vmem:[#allocation29_spill] sm:$0xff]  ;;  %v3189_v43 = vld [vmem:[#allocation30_spill] sm:$0xff] }
 0x419   :  { %v1361_v14 = vsub.f32 1.0, %v1360_v3  ;;  %v1333_v15 = vsel %vm1330_vm2, %v1332_v4, %v1328_v8  ;;  %v1343_v16 = vsel %vm1342_vm1, %v1965_v52, %v1339_v5  ;;  %1741 = vmatpush.msrb.mxu3 %v2916_v29  ;;  %1722 = vmatpush.msrb.mxu2 %v2924_v36  ;;  %v3191_v36 = vld [vmem:[#allocation32_spill] sm:$0xff] }
 0x41a   :  { %v1348_v0 = vsel %vm1345_vm3, %v1347_v7, %v1343_v16  ;;  %v1353_v19 = vmul.f32 %v1969_v13, %v1333_v15  ;;  %1682 = vmatpush.msrb.mxu0 %v2920_v30  ;;  %1702 = vmatpush.msrb.mxu1 %v2922_v35 }
 0x41b   :  { %v1362_v20 = vmul.f32 %v3031_v61, %v1361_v14  ;;  %v1352_v21 = vmul.f32 %v1348_v0, %v2797_v12  ;;  %v1370_v12 = vand.u32 2147483648, %v3006_v27  ;;  %1742 = vmatpush.msrb.mxu3 %v2928_v9  ;;  %1723 = vmatpush.msrb.mxu2 %v2936_v47  ;;  %v1381_v9 = vld [vmem:[#allocation4 + $0xc0] sm:$0xff] }
 0x41c   :  { %1683 = vmatpush.msrb.mxu0 %v2932_v10  ;;  %1703 = vmatpush.msrb.mxu1 %v2934_v11  ;;  %v1382_v10 = vld [vmem:[#allocation4 + $0xc8] sm:$0xff] }
 0x41d   :  { %v3055_v22 = vadd.f32 %v1353_v19, %v1352_v21  ;;  %v1363_v23 = vadd.f32 %v3031_v61, %v1362_v20  ;;  %1743 = vmatpush.msrb.mxu3 %v2940_v45  ;;  %v1371_v34 = vor.u32 1.1754944e-38, %v1370_v12  ;;  %1724 = vmatpush.msrb.mxu2 %v3187_v38 }
 0x41e   :  { %1684 = vmatpush.msrb.mxu0 %v3185_v32  ;;  %1704 = vmatpush.msrb.mxu1 %v3186_v33 }
 0x41f   :  { %1970 = vtanh.f32 %v3055_v22  ;;  %v1367_v31 = vsel %vm1366_vm6, %v3031_v61, %v1363_v23  ;;  %1744 = vmatpush.msrb.mxu3 %v3188_v42  ;;  %1725 = vmatpush.msrb.mxu2 %v2958_v28 }
 0x420   :  { %1685 = vmatpush.msrb.mxu0 %v3189_v43  ;;  %1705 = vmatpush.msrb.mxu1 %v3190_v49  ;;  %v1372_v30 = vsel %vm1369_vm7, %v1371_v34, %v1367_v31  ;;  %v1604_v43 = vld [vmem:[#allocation4 + $0xe8] sm:$0xff] }
 0x421   :  { %1745 = vmatpush.msrb.mxu3 %v2960_v39  ;;  %1726 = vmatpush.msrb.mxu2 %v2970_v37  ;;  %v1383_v39 = vld [vmem:[#allocation4 + $0xd0] sm:$0xff] }
 0x422   :  { %1686 = vmatpush.msrb.mxu0 %v2964_v18  ;;  %1706 = vmatpush.msrb.mxu1 %v2966_v24 }
 0x423   :  { %1746 = vmatpush.msrb.mxu3 %v2972_v50  ;;  %1727 = vmatpush.msrb.mxu2 %v2982_v25 }
 0x424   :  { %1687 = vmatpush.msrb.mxu0 %v2976_v6  ;;  %1707 = vmatpush.msrb.mxu1 %v2978_v62 }
 0x425   :  { %v1971_v29 = vpop.eup %1970  ;;  %1747 = vmatpush.msrb.mxu3 %v3191_v36 }
 0x426   :  { %v1375_v35 = vmul.f32 %v1971_v29, %v1372_v30 }
 0x428   :  { %1379 = vst [vmem:[#allocation9 + $0x28] sm:$0xff] %v1375_v35  ;;  %1466 = vmatmul.f32.vlgmr.msra.gmra.mxu0 %v1375_v35  ;;  %1486 = vmatmul.f32.vlgmr.msra.gmra.mxu1 %v1375_v35 }
 0x429   :  { %1506 = vmatmul.f32.vlgmr.msra.gmra.mxu2 %v1375_v35  ;;  %1526 = vmatmul.f32.vlgmr.msra.gmra.mxu3 %v1375_v35 }
 0x4a5   :  { %v1467_v11 = vpop.f32.mrf.mxu0  ;;  %v1487_v47 = vpop.f32.mrf.mxu1 }
 0x4a6   :  { %v1530_v45 = vadd.f32 %v1467_v11, %v1381_v9  ;;  %v1531_v17 = vadd.f32 %v1487_v47, %v1382_v10  ;;  %v1605_v10 = vld [vmem:[#allocation4 + $0xf0] sm:$0xff] }
 0x4a8   :  { %v1862_v27 = vmul.f32 -1.442695, %v1530_v45  ;;  %v1863_v28 = vmul.f32 -1.442695, %v1531_v17 }
 0x4aa   :  { %1972 = vpow2.f32 %v1862_v27 }
 0x4ab   :  { %1974 = vpow2.f32 %v1863_v28 }
 0x4ac   :  { %v1507_v18 = vpop.f32.mrf.mxu2  ;;  %v1527_v46 = vpop.f32.mrf.mxu3 }
 0x4ad   :  { %v1532_v24 = vadd.f32 %v1507_v18, %v1383_v39  ;;  %v1533_v55 = vadd.f32 %v1527_v46, %v1384_v40  ;;  %v1606_v18 = vld [vmem:[#allocation4 + $0xf8] sm:$0xff] }
 0x4af   :  { %v1864_v37 = vmul.f32 -1.442695, %v1532_v24 }
 0x4b0   :  { %v1973_v50 = vpop.eup %1972 }
 0x4b1   :  { %v1975_v6 = vpop.eup %1974  ;;  %v1540_v62 = vadd.f32 1.0, %v1973_v50  ;;  %1976 = vpow2.f32 %v1864_v37 }
 0x4b2   :  { %v1541_v25 = vadd.f32 1.0, %v1975_v6 }
 0x4b3   :  { %1978 = vrcp.f32 %v1540_v62  ;;  %v1553_v54 = vand.u32 2147483648, %v1540_v62  ;;  %v1551_v57 = vand.u32 2147483647, %v1540_v62  ;;  %vm1547_vm10 = vweird.f32 %v1540_v62 }
 0x4b4   :  { %1980 = vrcp.f32 %v1541_v25  ;;  %v1568_v53 = vand.u32 2147483648, %v1541_v25  ;;  %v1566_v59 = vand.u32 2147483647, %v1541_v25  ;;  %vm1562_vm11 = vweird.f32 %v1541_v25 }
 0x4b5   :  { %v1554_v4 = vor.u32 1.1754944e-38, %v1553_v54  ;;  %vm1552_vm14 = vcmp.eq.f32.partialorder %v1551_v57, 8.507059e+37 }
 0x4b6   :  { %v1569_v7 = vor.u32 1.1754944e-38, %v1568_v53  ;;  %vm1567_vm15 = vcmp.eq.f32.partialorder %v1566_v59, 8.507059e+37 }
 0x4b7   :  { %v1977_v63 = vpop.eup %1976 }
 0x4b8   :  { %v1580_v44 = vadd.f32 1.0, %v1977_v63 }
 0x4b9   :  { %v1979_v51 = vpop.eup %1978 }
 0x4ba   :  { %v1981_v52 = vpop.eup %1980  ;;  %v1543_v60 = vmul.f32 %v1979_v51, %v1540_v62  ;;  %1982 = vrcp.f32 %v1580_v44  ;;  %vm1548_vm8 = vweird.f32 %v1979_v51  ;;  %v1592_v26 = vand.u32 2147483648, %v1580_v44 }
 0x4bb   :  { %v1558_v48 = vmul.f32 %v1981_v52, %v1541_v25  ;;  %1984 = vtanh.f32 %v1533_v55  ;;  %vm1563_vm9 = vweird.f32 %v1981_v52  ;;  %vm1549_vm12 = vmor %vm1547_vm10, %vm1548_vm8  ;;  %vm1586_vm1 = vweird.f32 %v1580_v44 }
 0x4bc   :  { %v1544_v1 = vsub.f32 1.0, %v1543_v60  ;;  %vm1564_vm13 = vmor %vm1562_vm11, %vm1563_vm9  ;;  %v1590_v31 = vand.u32 2147483647, %v1580_v44  ;;  %v1593_v33 = vor.u32 1.1754944e-38, %v1592_v26 }
 0x4bd   :  { %v1559_v41 = vsub.f32 1.0, %v1558_v48 }
 0x4be   :  { %v1545_v56 = vmul.f32 %v1979_v51, %v1544_v1  ;;  %vm1591_vm3 = vcmp.eq.f32.partialorder %v1590_v31, 8.507059e+37 }
 0x4bf   :  { %v1560_v58 = vmul.f32 %v1981_v52, %v1559_v41 }
 0x4c0   :  { %v1983_v61 = vpop.eup %1982  ;;  %v1546_v2 = vadd.f32 %v1979_v51, %v1545_v56 }
 0x4c1   :  { %v1582_v3 = vmul.f32 %v1983_v61, %v1580_v44  ;;  %v1561_v5 = vadd.f32 %v1981_v52, %v1560_v58  ;;  %v1985_v13 = vpop.eup %1984  ;;  %vm1587_vm0 = vweird.f32 %v1983_v61 }
 0x4c2   :  { %v1550_v8 = vsel %vm1549_vm12, %v1979_v51, %v1546_v2  ;;  %vm1588_vm2 = vmor %vm1586_vm1, %vm1587_vm0 }
 0x4c3   :  { %v1583_v14 = vsub.f32 1.0, %v1582_v3  ;;  %v1555_v15 = vsel %vm1552_vm14, %v1554_v4, %v1550_v8  ;;  %v1565_v16 = vsel %vm1564_vm13, %v1981_v52, %v1561_v5 }
 0x4c4   :  { %v1570_v0 = vsel %vm1567_vm15, %v1569_v7, %v1565_v16  ;;  %v1575_v19 = vmul.f32 %v1985_v13, %v1555_v15 }
 0x4c5   :  { %v1584_v20 = vmul.f32 %v1983_v61, %v1583_v14  ;;  %v1574_v21 = vmul.f32 %v1570_v0, %v3055_v22  ;;  %v1603_v22 = vld [vmem:[#allocation4 + $0xe0] sm:$0xff] }
 0x4c7   :  { %v3091_v23 = vadd.f32 %v1575_v19, %v1574_v21  ;;  %v1585_v12 = vadd.f32 %v1983_v61, %v1584_v20 }
 0x4c9   :  { %1986 = vtanh.f32 %v3091_v23  ;;  %v1589_v32 = vsel %vm1588_vm2, %v1983_v61, %v1585_v12 }
 0x4ca   :  { %v1594_v38 = vsel %vm1591_vm3, %v1593_v33, %v1589_v32 }
 0x4cf   :  { %v1987_v34 = vpop.eup %1986 }
 0x4d0   :  { %v1597_v42 = vmul.f32 %v1987_v34, %v1594_v38 }
 0x4d2   :  { %1601 = vst [vmem:[#allocation9 + $0x30] sm:$0xff] %v1597_v42  ;;  %1688 = vmatmul.f32.vlgmr.msrb.gmra.mxu0 %v1597_v42  ;;  %1708 = vmatmul.f32.vlgmr.msrb.gmra.mxu1 %v1597_v42 }
 0x4d3   :  { %1728 = vmatmul.f32.vlgmr.msrb.gmra.mxu2 %v1597_v42  ;;  %1748 = vmatmul.f32.vlgmr.msrb.gmra.mxu3 %v1597_v42 }
 0x54f   :  { %v1689_v49 = vpop.f32.mrf.mxu0  ;;  %v1709_v29 = vpop.f32.mrf.mxu1 }
 0x550   :  { %v1752_v30 = vadd.f32 %v1689_v49, %v1603_v22  ;;  %v1753_v35 = vadd.f32 %v1709_v29, %v1604_v43 }
 0x552   :  { %v1865_v36 = vmul.f32 -1.442695, %v1752_v30  ;;  %v1866_v9 = vmul.f32 -1.442695, %v1753_v35 }
 0x554   :  { %1988 = vpow2.f32 %v1865_v36 }
 0x555   :  { %1990 = vpow2.f32 %v1866_v9 }
 0x556   :  { %v1729_v11 = vpop.f32.mrf.mxu2  ;;  %v1749_v24 = vpop.f32.mrf.mxu3 }
 0x557   :  { %v1754_v47 = vadd.f32 %v1729_v11, %v1605_v10  ;;  %v1755_v62 = vadd.f32 %v1749_v24, %v1606_v18 }
 0x559   :  { %v1867_v45 = vmul.f32 -1.442695, %v1754_v47 }
 0x55a   :  { %v1989_v17 = vpop.eup %1988 }
 0x55b   :  { %v1991_v27 = vpop.eup %1990  ;;  %v1762_v28 = vadd.f32 1.0, %v1989_v17  ;;  %1992 = vpow2.f32 %v1867_v45 }
 0x55c   :  { %v1763_v39 = vadd.f32 1.0, %v1991_v27 }
 0x55d   :  { %1994 = vrcp.f32 %v1762_v28  ;;  %v1775_v51 = vand.u32 2147483648, %v1762_v28  ;;  %v1773_v60 = vand.u32 2147483647, %v1762_v28  ;;  %vm1769_vm6 = vweird.f32 %v1762_v28 }
 0x55e   :  { %1996 = vrcp.f32 %v1763_v39  ;;  %v1790_v55 = vand.u32 2147483648, %v1763_v39  ;;  %v1788_v1 = vand.u32 2147483647, %v1763_v39  ;;  %vm1784_vm7 = vweird.f32 %v1763_v39 }
 0x55f   :  { %v1776_v56 = vor.u32 1.1754944e-38, %v1775_v51  ;;  %vm1774_vm10 = vcmp.eq.f32.partialorder %v1773_v60, 8.507059e+37 }
 0x560   :  { %v1791_v58 = vor.u32 1.1754944e-38, %v1790_v55  ;;  %vm1789_vm11 = vcmp.eq.f32.partialorder %v1788_v1, 8.507059e+37 }
 0x561   :  { %v1993_v37 = vpop.eup %1992 }
 0x562   :  { %v1802_v50 = vadd.f32 1.0, %v1993_v37 }
 0x563   :  { %v1995_v6 = vpop.eup %1994 }
 0x564   :  { %v1997_v25 = vpop.eup %1996  ;;  %v1765_v40 = vmul.f32 %v1995_v6, %v1762_v28  ;;  %1998 = vrcp.f32 %v1802_v50  ;;  %vm1770_vm4 = vweird.f32 %v1995_v6  ;;  %v1814_v16 = vand.u32 2147483648, %v1802_v50 }
 0x565   :  { %v1780_v46 = vmul.f32 %v1997_v25, %v1763_v39  ;;  %2000 = vtanh.f32 %v1755_v62  ;;  %vm1785_vm5 = vweird.f32 %v1997_v25  ;;  %vm1771_vm8 = vmor %vm1769_vm6, %vm1770_vm4  ;;  %vm1808_vm13 = vweird.f32 %v1802_v50 }
 0x566   :  { %v1766_v63 = vsub.f32 1.0, %v1765_v40  ;;  %vm1786_vm9 = vmor %vm1784_vm7, %vm1785_vm5  ;;  %v1812_v0 = vand.u32 2147483647, %v1802_v50  ;;  %v1815_v20 = vor.u32 1.1754944e-38, %v1814_v16 }
 0x567   :  { %v1781_v44 = vsub.f32 1.0, %v1780_v46 }
 0x568   :  { %v1767_v52 = vmul.f32 %v1995_v6, %v1766_v63  ;;  %vm1813_vm15 = vcmp.eq.f32.partialorder %v1812_v0, 8.507059e+37 }
 0x569   :  { %v1782_v48 = vmul.f32 %v1997_v25, %v1781_v44 }
 0x56a   :  { %v1999_v41 = vpop.eup %1998  ;;  %v1768_v54 = vadd.f32 %v1995_v6, %v1767_v52 }
 0x56b   :  { %v1804_v53 = vmul.f32 %v1999_v41, %v1802_v50  ;;  %v1783_v57 = vadd.f32 %v1997_v25, %v1782_v48  ;;  %v2001_v61 = vpop.eup %2000  ;;  %vm1809_vm12 = vweird.f32 %v1999_v41 }
 0x56c   :  { %v1772_v59 = vsel %vm1771_vm8, %v1995_v6, %v1768_v54  ;;  %vm1810_vm14 = vmor %vm1808_vm13, %vm1809_vm12 }
 0x56d   :  { %v1805_v2 = vsub.f32 1.0, %v1804_v53  ;;  %v1777_v3 = vsel %vm1774_vm10, %v1776_v56, %v1772_v59  ;;  %v1787_v4 = vsel %vm1786_vm9, %v1997_v25, %v1783_v57 }
 0x56e   :  { %v1792_v5 = vsel %vm1789_vm11, %v1791_v58, %v1787_v4  ;;  %v1797_v7 = vmul.f32 %v2001_v61, %v1777_v3 }
 0x56f   :  { %v1806_v8 = vmul.f32 %v1999_v41, %v1805_v2  ;;  %v1796_v13 = vmul.f32 %v1792_v5, %v3091_v23 }
 0x571   :  { %v1798_v14 = vadd.f32 %v1797_v7, %v1796_v13  ;;  %v1807_v15 = vadd.f32 %v1999_v41, %v1806_v8 }
 0x573   :  { %2002 = vtanh.f32 %v1798_v14  ;;  %v1811_v19 = vsel %vm1810_vm14, %v1999_v41, %v1807_v15 }
 0x574   :  { %v1816_v12 = vsel %vm1813_vm15, %v1815_v20, %v1811_v19 }
 0x579   :  { %v2003_v21 = vpop.eup %2002 }
 0x57a   :  { %v1819_v23 = vmul.f32 %v2003_v21, %v1816_v12 }
 0x57c   :  { %1823 = vst [vmem:[#allocation9 + $0x38] sm:$0xff] %v1819_v23 }
 0x57d   :  { %1836 = dma.vmem_to_hbm [thread:$0]  %s1829_s1, 1024, %s1831_s23, [#allocation6], %s2088_s24, %s2088_s24, %s2089_s25  }
 0x57e   :  { %2080 = dma.done.wait [#allocation6], 1024  }
 0x57f   :  { %2081 = vsyncadd [#allocation6], 4294966272 }
 0x580   :  { %1841 = vsyncpa [#allocation5], 1 }
 0x581   :  { %1842 = vsyncpa [#allocation8], 1 }
 0x582   :  { %1843 = vsyncpa [#allocation6], 1 }

// kernel: tpu_custom_call.1
= control target key start
LH: loop header
LB: loop body
LE: loop exit
PB: predicated region body
PF: predicated region fallthrough
CT: control target
= control target key end

     0   :  { %7 = vsyncpa [#allocation5], 0  ;;  %s3098_s0 = inlined_call_operand.hbm [shape: f32[8,8,512], index: 0, kind: input, shape index: {}]   ;;  %s3099_s1 = inlined_call_operand.hbm [shape: f32[128,512], index: 1, kind: input, shape index: {}]   ;;  %s3100_s2 = inlined_call_operand.hbm [shape: f32[8,8,128], index: 2, kind: output, shape index: {}]  }
   0x1   :  { %8 = vsyncpa [#allocation8], 0 }
   0x2   :  { %9 = vsyncpa [#allocation6], 0  ;;  %s14_s11 = sshll.u32 %s3098_s0, 4  ;;  %s2082_s12 = smov [#allocation4]   ;;  %s15_s11 = int_to_ptr.hbm [resolvable:$true] %s14_s11 }
   0x3   :  { %s16_s13 = sshll.u32 %s2082_s12, 4  ;;  %s27_s16 = sshll.u32 %s3099_s1, 4  ;;  %s17_s13 = int_to_ptr.vmem [resolvable:$true] %s16_s13  ;;  %s28_s16 = int_to_ptr.hbm [resolvable:$true] %s27_s16 }
   0x4   :  { %s2083_s17 = smov 512   ;;  %s2084_s18 = smov 32  }
   0x5   :  { %22 = dma.hbm_to_vmem [thread:$0]  %s15_s11, 4096, %s17_s13, [#allocation5], %s2083_s17, %s2083_s17, %s2084_s18  }
   0x6   :  { %s2085_s19 = smov [#allocation7]  }
   0x7   :  { %s29_s20 = sshll.u32 %s2085_s19, 4  ;;  %s30_s20 = int_to_ptr.vmem [resolvable:$true] %s29_s20 }
   0x8   :  { %35 = dma.hbm_to_vmem [thread:$0]  %s28_s16, 8192, %s30_s20, [#allocation8], %s2083_s17, %s2083_s17, %s2084_s18  }
   0x9   :  { %2076 = dma.done.wait [#allocation5], 4096  }
   0xa   :  { %2077 = vsyncadd [#allocation5], 4294963200 }
   0xb   :  { %2078 = dma.done.wait [#allocation8], 8192  }
   0xc   :  { %2079 = vsyncadd [#allocation8], 4294959104  ;;  %v2111_v0 = vld [vmem:[#allocation7 + $0x1e0] sm:$0xff]  ;;  %v2113_v1 = vld [vmem:[#allocation7 + $0x1e8] sm:$0xff]  ;;  %v2086_v60 = vmov 0.0   ;;  %s2087_s0 = smov [#allocation9]  }
   0xd   :  { %3136 = vst [vmem:[#allocation13_spill] sm:$0xff] %v2111_v0  ;;  %v2115_v2 = vld [vmem:[#allocation7 + $0x1f0] sm:$0xff]  ;;  %119 = vmatpush.msra.mxu0 %v2111_v0  ;;  %139 = vmatpush.msra.mxu1 %v2113_v1  ;;  %v2119_v3 = vld [vmem:[#allocation7 + $0x1c0] sm:$0xff]  ;;  %v2121_v4 = vld [vmem:[#allocation7 + $0x1c8] sm:$0xff]  ;;  %s1828_s1 = sshll.u32 %s2087_s0, 4  ;;  %s1830_s23 = sshll.u32 %s3100_s2, 4  ;;  %s1829_s1 = int_to_ptr.vmem [resolvable:$true] %s1828_s1  ;;  %s1831_s23 = int_to_ptr.hbm [resolvable:$true] %s1830_s23 }
   0xe   :  { %v2123_v5 = vld [vmem:[#allocation7 + $0x1d0] sm:$0xff]  ;;  %159 = vmatpush.msra.mxu2 %v2115_v2  ;;  %v2126_v6 = vld [vmem:[#allocation7 + $0x1a0] sm:$0xff]  ;;  %v2128_v7 = vld [vmem:[#allocation7 + $0x1a8] sm:$0xff]  ;;  %s2088_s24 = smov 128   ;;  %s2089_s25 = smov 8  }
   0xf   :  { %120 = vmatpush.msra.mxu0 %v2119_v3  ;;  %140 = vmatpush.msra.mxu1 %v2121_v4  ;;  %v2132_v8 = vld [vmem:[#allocation7 + $0x1b0] sm:$0xff]  ;;  %v2135_v9 = vld [vmem:[#allocation7 + $0x180] sm:$0xff]  ;;  %v2137_v10 = vld [vmem:[#allocation7 + $0x188] sm:$0xff] }
  0x10   :  { %160 = vmatpush.msra.mxu2 %v2123_v5  ;;  %v2141_v11 = vld [vmem:[#allocation7 + $0x190] sm:$0xff]  ;;  %v2144_v12 = vld [vmem:[#allocation7 + $0x160] sm:$0xff]  ;;  %v2146_v13 = vld [vmem:[#allocation7 + $0x168] sm:$0xff] }
  0x11   :  { %121 = vmatpush.msra.mxu0 %v2126_v6  ;;  %141 = vmatpush.msra.mxu1 %v2128_v7  ;;  %v2150_v14 = vld [vmem:[#allocation7 + $0x170] sm:$0xff]  ;;  %v2153_v15 = vld [vmem:[#allocation7 + $0x140] sm:$0xff]  ;;  %v2155_v16 = vld [vmem:[#allocation7 + $0x148] sm:$0xff] }
  0x12   :  { %161 = vmatpush.msra.mxu2 %v2132_v8  ;;  %v2157_v17 = vld [vmem:[#allocation7 + $0x1f8] sm:$0xff]  ;;  %v2161_v18 = vld [vmem:[#allocation7 + $0x150] sm:$0xff]  ;;  %v2166_v20 = vld [vmem:[#allocation7 + $0x120] sm:$0xff] }
  0x13   :  { %122 = vmatpush.msra.mxu0 %v2135_v9  ;;  %142 = vmatpush.msra.mxu1 %v2137_v10  ;;  %v2163_v19 = vld [vmem:[#allocation7 + $0x1d8] sm:$0xff]  ;;  %v2168_v21 = vld [vmem:[#allocation7 + $0x128] sm:$0xff]  ;;  %v2173_v22 = vld [vmem:[#allocation7 + $0x130] sm:$0xff] }
  0x14   :  { %162 = vmatpush.msra.mxu2 %v2141_v11  ;;  %179 = vmatpush.msra.mxu3 %v2157_v17  ;;  %v2175_v23 = vld [vmem:[#allocation7 + $0x1b8] sm:$0xff]  ;;  %v2178_v24 = vld [vmem:[#allocation7 + $0x100] sm:$0xff]  ;;  %v2180_v25 = vld [vmem:[#allocation7 + $0x108] sm:$0xff] }
  0x15   :  { %123 = vmatpush.msra.mxu0 %v2144_v12  ;;  %143 = vmatpush.msra.mxu1 %v2146_v13  ;;  %v2185_v26 = vld [vmem:[#allocation7 + $0x110] sm:$0xff]  ;;  %v2187_v27 = vld [vmem:[#allocation7 + $0x198] sm:$0xff]  ;;  %v2190_v28 = vld [vmem:[#allocation7 + $0xe0] sm:$0xff] }
  0x16   :  { %163 = vmatpush.msra.mxu2 %v2150_v14  ;;  %180 = vmatpush.msra.mxu3 %v2163_v19  ;;  %v2192_v29 = vld [vmem:[#allocation7 + $0xe8] sm:$0xff]  ;;  %v2197_v30 = vld [vmem:[#allocation7 + $0xf0] sm:$0xff]  ;;  %v2199_v31 = vld [vmem:[#allocation7 + $0x178] sm:$0xff] }
  0x17   :  { %124 = vmatpush.msra.mxu0 %v2153_v15  ;;  %144 = vmatpush.msra.mxu1 %v2155_v16  ;;  %v2202_v32 = vld [vmem:[#allocation7 + $0xc0] sm:$0xff]  ;;  %v2204_v33 = vld [vmem:[#allocation7 + $0xc8] sm:$0xff]  ;;  %v2209_v34 = vld [vmem:[#allocation7 + $0xd0] sm:$0xff] }
  0x18   :  { %164 = vmatpush.msra.mxu2 %v2161_v18  ;;  %181 = vmatpush.msra.mxu3 %v2175_v23  ;;  %v2211_v35 = vld [vmem:[#allocation7 + $0x158] sm:$0xff]  ;;  %v2214_v36 = vld [vmem:[#allocation7 + $0xa0] sm:$0xff]  ;;  %v2216_v37 = vld [vmem:[#allocation7 + $0xa8] sm:$0xff] }
  0x19   :  { %125 = vmatpush.msra.mxu0 %v2166_v20  ;;  %145 = vmatpush.msra.mxu1 %v2168_v21  ;;  %v2221_v38 = vld [vmem:[#allocation7 + $0xb0] sm:$0xff]  ;;  %v2223_v39 = vld [vmem:[#allocation7 + $0x138] sm:$0xff]  ;;  %v2226_v40 = vld [vmem:[#allocation7 + $0x80] sm:$0xff] }
  0x1a   :  { %165 = vmatpush.msra.mxu2 %v2173_v22  ;;  %182 = vmatpush.msra.mxu3 %v2187_v27  ;;  %v2228_v41 = vld [vmem:[#allocation7 + $0x88] sm:$0xff]  ;;  %v2233_v42 = vld [vmem:[#allocation7 + $0x90] sm:$0xff]  ;;  %v2235_v43 = vld [vmem:[#allocation7 + $0x118] sm:$0xff] }
  0x1b   :  { %126 = vmatpush.msra.mxu0 %v2178_v24  ;;  %146 = vmatpush.msra.mxu1 %v2180_v25  ;;  %v2238_v44 = vld [vmem:[#allocation7 + $0x60] sm:$0xff]  ;;  %v2240_v45 = vld [vmem:[#allocation7 + $0x68] sm:$0xff]  ;;  %v2245_v46 = vld [vmem:[#allocation7 + $0x70] sm:$0xff] }
  0x1c   :  { %166 = vmatpush.msra.mxu2 %v2185_v26  ;;  %183 = vmatpush.msra.mxu3 %v2199_v31  ;;  %v2247_v47 = vld [vmem:[#allocation7 + $0xf8] sm:$0xff]  ;;  %v2250_v48 = vld [vmem:[#allocation7 + $0x40] sm:$0xff]  ;;  %v2252_v49 = vld [vmem:[#allocation7 + $0x48] sm:$0xff] }
  0x1d   :  { %127 = vmatpush.msra.mxu0 %v2190_v28  ;;  %147 = vmatpush.msra.mxu1 %v2192_v29  ;;  %v2257_v50 = vld [vmem:[#allocation7 + $0x50] sm:$0xff]  ;;  %v2259_v51 = vld [vmem:[#allocation7 + $0xd8] sm:$0xff]  ;;  %v2262_v52 = vld [vmem:[#allocation7 + $0x20] sm:$0xff] }
  0x1e   :  { %167 = vmatpush.msra.mxu2 %v2197_v30  ;;  %184 = vmatpush.msra.mxu3 %v2211_v35  ;;  %v2264_v53 = vld [vmem:[#allocation7 + $0x28] sm:$0xff]  ;;  %v2269_v54 = vld [vmem:[#allocation7 + $0x30] sm:$0xff]  ;;  %v2271_v55 = vld [vmem:[#allocation7 + $0xb8] sm:$0xff] }
  0x1f   :  { %128 = vmatpush.msra.mxu0 %v2202_v32  ;;  %148 = vmatpush.msra.mxu1 %v2204_v33  ;;  %v2274_v56 = vld [vmem:[#allocation7] sm:$0xff]  ;;  %v2276_v57 = vld [vmem:[#allocation7 + $0x8] sm:$0xff]  ;;  %v2281_v58 = vld [vmem:[#allocation7 + $0x10] sm:$0xff] }
  0x20   :  { %168 = vmatpush.msra.mxu2 %v2209_v34  ;;  %185 = vmatpush.msra.mxu3 %v2223_v39  ;;  %v2287_v59 = vld [vmem:[#allocation7 + $0x98] sm:$0xff] }
  0x21   :  { %129 = vmatpush.msra.mxu0 %v2214_v36  ;;  %149 = vmatpush.msra.mxu1 %v2216_v37  ;;  %v2290_v61 = vld [vmem:[#allocation7 + $0x78] sm:$0xff] }
  0x22   :  { %169 = vmatpush.msra.mxu2 %v2221_v38  ;;  %186 = vmatpush.msra.mxu3 %v2235_v43  ;;  %v2294_v62 = vld [vmem:[#allocation7 + $0x58] sm:$0xff] }
  0x23   :  { %130 = vmatpush.msra.mxu0 %v2226_v40  ;;  %150 = vmatpush.msra.mxu1 %v2228_v41  ;;  %v2300_v63 = vld [vmem:[#allocation7 + $0x38] sm:$0xff] }
  0x24   :  { %170 = vmatpush.msra.mxu2 %v2233_v42  ;;  %187 = vmatpush.msra.mxu3 %v2247_v47 }
  0x25   :  { %131 = vmatpush.msra.mxu0 %v2238_v44  ;;  %151 = vmatpush.msra.mxu1 %v2240_v45 }
  0x26   :  { %171 = vmatpush.msra.mxu2 %v2245_v46  ;;  %188 = vmatpush.msra.mxu3 %v2259_v51 }
  0x27   :  { %132 = vmatpush.msra.mxu0 %v2250_v48  ;;  %152 = vmatpush.msra.mxu1 %v2252_v49 }
  0x28   :  { %172 = vmatpush.msra.mxu2 %v2257_v50  ;;  %189 = vmatpush.msra.mxu3 %v2271_v55 }
  0x29   :  { %133 = vmatpush.msra.mxu0 %v2262_v52  ;;  %153 = vmatpush.msra.mxu1 %v2264_v53 }
  0x2a   :  { %173 = vmatpush.msra.mxu2 %v2269_v54  ;;  %190 = vmatpush.msra.mxu3 %v2287_v59 }
  0x2b   :  { %134 = vmatpush.msra.mxu0 %v2274_v56  ;;  %154 = vmatpush.msra.mxu1 %v2276_v57 }
  0x2c   :  { %174 = vmatpush.msra.mxu2 %v2281_v58  ;;  %135 = vmatmul.f32.vlgmr.msra.gmra.mxu0 %v2086_v60 }
  0x2d   :  { %155 = vmatmul.f32.vlgmr.msra.gmra.mxu1 %v2086_v60  ;;  %175 = vmatmul.f32.vlgmr.msra.gmra.mxu2 %v2086_v60 }
  0x2e   :  { %340 = vmatpush.msrb.mxu0 %v2111_v0  ;;  %360 = vmatpush.msrb.mxu1 %v2113_v1  ;;  %v2306_v0 = vld [vmem:[#allocation7 + $0x18] sm:$0xff] }
  0x2f   :  { %380 = vmatpush.msrb.mxu2 %v2115_v2  ;;  %191 = vmatpush.msra.mxu3 %v2290_v61 }
  0x30   :  { %341 = vmatpush.msrb.mxu0 %v2119_v3  ;;  %361 = vmatpush.msrb.mxu1 %v2121_v4 }
  0x31   :  { %381 = vmatpush.msrb.mxu2 %v2123_v5  ;;  %192 = vmatpush.msra.mxu3 %v2294_v62 }
  0x32   :  { %342 = vmatpush.msrb.mxu0 %v2126_v6  ;;  %362 = vmatpush.msrb.mxu1 %v2128_v7 }
  0x33   :  { %382 = vmatpush.msrb.mxu2 %v2132_v8  ;;  %193 = vmatpush.msra.mxu3 %v2300_v63 }
  0x34   :  { %343 = vmatpush.msrb.mxu0 %v2135_v9  ;;  %363 = vmatpush.msrb.mxu1 %v2137_v10 }
  0x35   :  { %383 = vmatpush.msrb.mxu2 %v2141_v11  ;;  %194 = vmatpush.msra.mxu3 %v2306_v0 }
  0x36   :  { %344 = vmatpush.msrb.mxu0 %v2144_v12  ;;  %195 = vmatmul.f32.vlgmr.msra.gmra.mxu3 %v2086_v60  ;;  %v3137_v60 = vld [vmem:[#allocation13_spill] sm:$0xff] }
  0x37   :  { %364 = vmatpush.msrb.mxu1 %v2146_v13  ;;  %400 = vmatpush.msrb.mxu3 %v2157_v17 }
  0x38   :  { %384 = vmatpush.msrb.mxu2 %v2150_v14  ;;  %345 = vmatpush.msrb.mxu0 %v2153_v15 }
  0x39   :  { %365 = vmatpush.msrb.mxu1 %v2155_v16  ;;  %401 = vmatpush.msrb.mxu3 %v2163_v19 }
  0x3a   :  { %385 = vmatpush.msrb.mxu2 %v2161_v18  ;;  %346 = vmatpush.msrb.mxu0 %v2166_v20 }
  0x3b   :  { %366 = vmatpush.msrb.mxu1 %v2168_v21  ;;  %402 = vmatpush.msrb.mxu3 %v2175_v23 }
  0x3c   :  { %386 = vmatpush.msrb.mxu2 %v2173_v22  ;;  %347 = vmatpush.msrb.mxu0 %v2178_v24 }
  0x3d   :  { %367 = vmatpush.msrb.mxu1 %v2180_v25  ;;  %403 = vmatpush.msrb.mxu3 %v2187_v27 }
  0x3e   :  { %387 = vmatpush.msrb.mxu2 %v2185_v26  ;;  %348 = vmatpush.msrb.mxu0 %v2190_v28 }
  0x3f   :  { %368 = vmatpush.msrb.mxu1 %v2192_v29  ;;  %404 = vmatpush.msrb.mxu3 %v2199_v31 }
  0x40   :  { %388 = vmatpush.msrb.mxu2 %v2197_v30  ;;  %349 = vmatpush.msrb.mxu0 %v2202_v32 }
  0x41   :  { %369 = vmatpush.msrb.mxu1 %v2204_v33  ;;  %405 = vmatpush.msrb.mxu3 %v2211_v35 }
  0x42   :  { %389 = vmatpush.msrb.mxu2 %v2209_v34  ;;  %350 = vmatpush.msrb.mxu0 %v2214_v36 }
  0x43   :  { %370 = vmatpush.msrb.mxu1 %v2216_v37  ;;  %406 = vmatpush.msrb.mxu3 %v2223_v39 }
  0x44   :  { %390 = vmatpush.msrb.mxu2 %v2221_v38  ;;  %351 = vmatpush.msrb.mxu0 %v2226_v40 }
  0x45   :  { %371 = vmatpush.msrb.mxu1 %v2228_v41  ;;  %407 = vmatpush.msrb.mxu3 %v2235_v43 }
  0x46   :  { %391 = vmatpush.msrb.mxu2 %v2233_v42  ;;  %352 = vmatpush.msrb.mxu0 %v2238_v44 }
  0x47   :  { %372 = vmatpush.msrb.mxu1 %v2240_v45  ;;  %408 = vmatpush.msrb.mxu3 %v2247_v47 }
  0x48   :  { %392 = vmatpush.msrb.mxu2 %v2245_v46  ;;  %353 = vmatpush.msrb.mxu0 %v2250_v48 }
  0x49   :  { %373 = vmatpush.msrb.mxu1 %v2252_v49  ;;  %409 = vmatpush.msrb.mxu3 %v2259_v51 }
  0x4a   :  { %393 = vmatpush.msrb.mxu2 %v2257_v50  ;;  %354 = vmatpush.msrb.mxu0 %v2262_v52 }
  0x4b   :  { %374 = vmatpush.msrb.mxu1 %v2264_v53  ;;  %410 = vmatpush.msrb.mxu3 %v2271_v55 }
  0x4c   :  { %394 = vmatpush.msrb.mxu2 %v2269_v54  ;;  %355 = vmatpush.msrb.mxu0 %v2274_v56 }
  0x4d   :  { %375 = vmatpush.msrb.mxu1 %v2276_v57  ;;  %411 = vmatpush.msrb.mxu3 %v2287_v59 }
  0x4e   :  { %395 = vmatpush.msrb.mxu2 %v2281_v58  ;;  %562 = vmatpush.msra.mxu0 %v3137_v60 }
  0x4f   :  { %582 = vmatpush.msra.mxu1 %v2113_v1  ;;  %412 = vmatpush.msrb.mxu3 %v2290_v61  ;;  %v50_v1 = vld [vmem:[#allocation4] sm:$0xff] }
  0x50   :  { %602 = vmatpush.msra.mxu2 %v2115_v2  ;;  %563 = vmatpush.msra.mxu0 %v2119_v3  ;;  %v51_v2 = vld [vmem:[#allocation4 + $0x8] sm:$0xff] }
  0x51   :  { %583 = vmatpush.msra.mxu1 %v2121_v4  ;;  %413 = vmatpush.msrb.mxu3 %v2294_v62 }
  0x52   :  { %603 = vmatpush.msra.mxu2 %v2123_v5  ;;  %564 = vmatpush.msra.mxu0 %v2126_v6 }
  0x53   :  { %584 = vmatpush.msra.mxu1 %v2128_v7  ;;  %414 = vmatpush.msrb.mxu3 %v2300_v63 }
  0x54   :  { %604 = vmatpush.msra.mxu2 %v2132_v8  ;;  %565 = vmatpush.msra.mxu0 %v2135_v9  ;;  %v52_v9 = vld [vmem:[#allocation4 + $0x10] sm:$0xff] }
  0x55   :  { %585 = vmatpush.msra.mxu1 %v2137_v10  ;;  %415 = vmatpush.msrb.mxu3 %v2306_v0 }
  0x56   :  { %605 = vmatpush.msra.mxu2 %v2141_v11  ;;  %566 = vmatpush.msra.mxu0 %v2144_v12 }
  0x57   :  { %622 = vmatpush.msra.mxu3 %v2157_v17  ;;  %586 = vmatpush.msra.mxu1 %v2146_v13 }
  0x58   :  { %606 = vmatpush.msra.mxu2 %v2150_v14  ;;  %567 = vmatpush.msra.mxu0 %v2153_v15 }
  0x59   :  { %623 = vmatpush.msra.mxu3 %v2163_v19  ;;  %587 = vmatpush.msra.mxu1 %v2155_v16 }
  0x5a   :  { %607 = vmatpush.msra.mxu2 %v2161_v18  ;;  %568 = vmatpush.msra.mxu0 %v2166_v20 }
  0x5b   :  { %624 = vmatpush.msra.mxu3 %v2175_v23  ;;  %588 = vmatpush.msra.mxu1 %v2168_v21 }
  0x5c   :  { %608 = vmatpush.msra.mxu2 %v2173_v22  ;;  %569 = vmatpush.msra.mxu0 %v2178_v24 }
  0x5d   :  { %625 = vmatpush.msra.mxu3 %v2187_v27  ;;  %589 = vmatpush.msra.mxu1 %v2180_v25 }
  0x5e   :  { %609 = vmatpush.msra.mxu2 %v2185_v26  ;;  %570 = vmatpush.msra.mxu0 %v2190_v28 }
  0x5f   :  { %626 = vmatpush.msra.mxu3 %v2199_v31  ;;  %590 = vmatpush.msra.mxu1 %v2192_v29 }
  0x60   :  { %610 = vmatpush.msra.mxu2 %v2197_v30  ;;  %571 = vmatpush.msra.mxu0 %v2202_v32 }
  0x61   :  { %627 = vmatpush.msra.mxu3 %v2211_v35  ;;  %591 = vmatpush.msra.mxu1 %v2204_v33 }
  0x62   :  { %611 = vmatpush.msra.mxu2 %v2209_v34  ;;  %572 = vmatpush.msra.mxu0 %v2214_v36 }
  0x63   :  { %628 = vmatpush.msra.mxu3 %v2223_v39  ;;  %592 = vmatpush.msra.mxu1 %v2216_v37 }
  0x64   :  { %612 = vmatpush.msra.mxu2 %v2221_v38  ;;  %573 = vmatpush.msra.mxu0 %v2226_v40 }
  0x65   :  { %629 = vmatpush.msra.mxu3 %v2235_v43  ;;  %593 = vmatpush.msra.mxu1 %v2228_v41 }
  0x66   :  { %613 = vmatpush.msra.mxu2 %v2233_v42  ;;  %574 = vmatpush.msra.mxu0 %v2238_v44 }
  0x67   :  { %630 = vmatpush.msra.mxu3 %v2247_v47  ;;  %594 = vmatpush.msra.mxu1 %v2240_v45 }
  0x68   :  { %614 = vmatpush.msra.mxu2 %v2245_v46  ;;  %575 = vmatpush.msra.mxu0 %v2250_v48 }
  0x69   :  { %631 = vmatpush.msra.mxu3 %v2259_v51  ;;  %595 = vmatpush.msra.mxu1 %v2252_v49 }
  0x6a   :  { %615 = vmatpush.msra.mxu2 %v2257_v50  ;;  %576 = vmatpush.msra.mxu0 %v2262_v52 }
  0x6b   :  { %632 = vmatpush.msra.mxu3 %v2271_v55  ;;  %596 = vmatpush.msra.mxu1 %v2264_v53 }
  0x6c   :  { %616 = vmatpush.msra.mxu2 %v2269_v54  ;;  %577 = vmatpush.msra.mxu0 %v2274_v56 }
  0x6d   :  { %633 = vmatpush.msra.mxu3 %v2287_v59  ;;  %597 = vmatpush.msra.mxu1 %v2276_v57  ;;  %v271_v57 = vld [vmem:[#allocation4 + $0x20] sm:$0xff] }
  0x6e   :  { %617 = vmatpush.msra.mxu2 %v2281_v58  ;;  %v272_v58 = vld [vmem:[#allocation4 + $0x28] sm:$0xff] }
  0x6f   :  { %634 = vmatpush.msra.mxu3 %v2290_v61 }
  0x71   :  { %635 = vmatpush.msra.mxu3 %v2294_v62 }
  0x73   :  { %636 = vmatpush.msra.mxu3 %v2300_v63 }
  0x75   :  { %637 = vmatpush.msra.mxu3 %v2306_v0  ;;  %v53_v0 = vld [vmem:[#allocation4 + $0x18] sm:$0xff] }
  0xa9   :  { %v136_v3 = vpop.f32.mrf.mxu0 }
  0xaa   :  { %v199_v4 = vadd.f32 %v136_v3, %v50_v1  ;;  %v156_v5 = vpop.f32.mrf.mxu1 }
  0xab   :  { %v200_v6 = vadd.f32 %v156_v5, %v51_v2  ;;  %v273_v2 = vld [vmem:[#allocation4 + $0x30] sm:$0xff] }
  0xac   :  { %v1844_v7 = vmul.f32 -1.442695, %v199_v4 }
  0xad   :  { %v1845_v8 = vmul.f32 -1.442695, %v200_v6 }
  0xae   :  { %1876 = vpow2.f32 %v1844_v7 }
  0xaf   :  { %1878 = vpow2.f32 %v1845_v8 }
  0xb0   :  { %v176_v10 = vpop.f32.mrf.mxu2 }
  0xb1   :  { %v201_v11 = vadd.f32 %v176_v10, %v52_v9  ;;  %v274_v10 = vld [vmem:[#allocation4 + $0x38] sm:$0xff] }
  0xb3   :  { %v1846_v12 = vmul.f32 -1.442695, %v201_v11 }
  0xb4   :  { %v1877_v13 = vpop.eup %1876 }
  0xb5   :  { %v1879_v14 = vpop.eup %1878  ;;  %v209_v15 = vadd.f32 1.0, %v1877_v13  ;;  %1880 = vpow2.f32 %v1846_v12 }
  0xb6   :  { %v210_v16 = vadd.f32 1.0, %v1879_v14 }
  0xb7   :  { %1882 = vrcp.f32 %v209_v15  ;;  %v222_v27 = vand.u32 2147483648, %v209_v15  ;;  %v220_v30 = vand.u32 2147483647, %v209_v15  ;;  %vm216_vm2 = vweird.f32 %v209_v15 }
  0xb8   :  { %1884 = vrcp.f32 %v210_v16  ;;  %v237_v28 = vand.u32 2147483648, %v210_v16  ;;  %v235_v32 = vand.u32 2147483647, %v210_v16  ;;  %vm231_vm3 = vweird.f32 %v210_v16 }
  0xb9   :  { %v196_v17 = vpop.f32.mrf.mxu3  ;;  %v223_v37 = vor.u32 1.1754944e-38, %v222_v27  ;;  %vm221_vm5 = vcmp.eq.f32.partialorder %v220_v30, 8.507059e+37 }
  0xba   :  { %v202_v19 = vadd.f32 %v196_v17, %v53_v0  ;;  %v238_v39 = vor.u32 1.1754944e-38, %v237_v28  ;;  %vm236_vm7 = vcmp.eq.f32.partialorder %v235_v32, 8.507059e+37 }
  0xbb   :  { %v1881_v18 = vpop.eup %1880 }
  0xbc   :  { %v249_v20 = vadd.f32 1.0, %v1881_v18 }
  0xbd   :  { %v1883_v21 = vpop.eup %1882 }
  0xbe   :  { %v1885_v22 = vpop.eup %1884  ;;  %v212_v23 = vmul.f32 %v1883_v21, %v209_v15  ;;  %1886 = vrcp.f32 %v249_v20  ;;  %vm217_vm0 = vweird.f32 %v1883_v21  ;;  %v261_v50 = vand.u32 2147483648, %v249_v20 }
  0xbf   :  { %v227_v24 = vmul.f32 %v1885_v22, %v210_v16  ;;  %1888 = vtanh.f32 %v202_v19  ;;  %vm232_vm1 = vweird.f32 %v1885_v22  ;;  %vm218_vm4 = vmor %vm216_vm2, %vm217_vm0  ;;  %vm255_vm9 = vweird.f32 %v249_v20 }
  0xc0   :  { %v213_v25 = vsub.f32 1.0, %v212_v23  ;;  %vm233_vm6 = vmor %vm231_vm3, %vm232_vm1  ;;  %v259_v51 = vand.u32 2147483647, %v249_v20  ;;  %v262_v53 = vor.u32 1.1754944e-38, %v261_v50 }
  0xc1   :  { %v228_v26 = vsub.f32 1.0, %v227_v24 }
  0xc2   :  { %v214_v29 = vmul.f32 %v1883_v21, %v213_v25  ;;  %vm260_vm11 = vcmp.eq.f32.partialorder %v259_v51, 8.507059e+37  ;;  %v2440_v51 = vld [vmem:[#allocation7 + $0x1e8] sm:$0xff] }
  0xc3   :  { %v229_v31 = vmul.f32 %v1885_v22, %v228_v26  ;;  %3138 = vst [vmem:[#allocation13_spill] sm:$0xff] %v2440_v51 }
  0xc4   :  { %v1887_v33 = vpop.eup %1886  ;;  %v215_v34 = vadd.f32 %v1883_v21, %v214_v29 }
  0xc5   :  { %v1889_v35 = vpop.eup %1888  ;;  %v251_v36 = vmul.f32 %v1887_v33, %v249_v20  ;;  %v230_v38 = vadd.f32 %v1885_v22, %v229_v31  ;;  %vm256_vm8 = vweird.f32 %v1887_v33 }
  0xc6   :  { %v219_v40 = vsel %vm218_vm4, %v1883_v21, %v215_v34  ;;  %vm257_vm10 = vmor %vm255_vm9, %vm256_vm8 }
  0xc7   :  { %v252_v41 = vsub.f32 1.0, %v251_v36  ;;  %v224_v42 = vsel %vm221_vm5, %v223_v37, %v219_v40  ;;  %v234_v43 = vsel %vm233_vm6, %v1885_v22, %v230_v38 }
  0xc8   :  { %v239_v44 = vsel %vm236_vm7, %v238_v39, %v234_v43  ;;  %v244_v45 = vmul.f32 %v1889_v35, %v224_v42 }
  0xc9   :  { %v253_v46 = vmul.f32 %v1887_v33, %v252_v41  ;;  %v243_v47 = vmul.f32 0.0, %v239_v44 }
  0xcb   :  { %v2431_v48 = vadd.f32 %v244_v45, %v243_v47  ;;  %v254_v49 = vadd.f32 %v1887_v33, %v253_v46 }
  0xcd   :  { %1890 = vtanh.f32 %v2431_v48  ;;  %v258_v52 = vsel %vm257_vm10, %v1887_v33, %v254_v49 }
  0xce   :  { %v263_v55 = vsel %vm260_vm11, %v262_v53, %v258_v52  ;;  %v2442_v52 = vld [vmem:[#allocation7 + $0x1f0] sm:$0xff]  ;;  %v2446_v53 = vld [vmem:[#allocation7 + $0x1f8] sm:$0xff] }
  0xcf   :  { %3139 = vst [vmem:[#allocation14_spill] sm:$0xff] %v2442_v52 }
  0xd3   :  { %v1891_v54 = vpop.eup %1890 }
  0xd4   :  { %v266_v56 = vmul.f32 %v1891_v54, %v263_v55  ;;  %v2450_v54 = vld [vmem:[#allocation7 + $0x1c0] sm:$0xff]  ;;  %v2452_v55 = vld [vmem:[#allocation7 + $0x1c8] sm:$0xff] }
  0xd5   :  { %3140 = vst [vmem:[#allocation15_spill] sm:$0xff] %v2450_v54 }
  0xd6   :  { %269 = vst [vmem:[#allocation9] sm:$0xff] %v266_v56  ;;  %356 = vmatmul.f32.vlgmr.msrb.gmra.mxu0 %v266_v56  ;;  %376 = vmatmul.f32.vlgmr.msrb.gmra.mxu1 %v266_v56 }
  0xd7   :  { %396 = vmatmul.f32.vlgmr.msrb.gmra.mxu2 %v266_v56  ;;  %416 = vmatmul.f32.vlgmr.msrb.gmra.mxu3 %v266_v56  ;;  %3141 = vst [vmem:[#allocation16_spill] sm:$0xff] %v2452_v55  ;;  %v2454_v56 = vld [vmem:[#allocation7 + $0x1d0] sm:$0xff] }
  0xd8   :  { %804 = vmatpush.msrb.mxu1 %v2440_v51  ;;  %824 = vmatpush.msrb.mxu2 %v2442_v52 }
  0xd9   :  { %844 = vmatpush.msrb.mxu3 %v2446_v53 }
  0xda   :  { %805 = vmatpush.msrb.mxu1 %v2452_v55  ;;  %825 = vmatpush.msrb.mxu2 %v2454_v56 }
 0x153   :  { %v357_v59 = vpop.f32.mrf.mxu0  ;;  %v377_v61 = vpop.f32.mrf.mxu1 }
 0x154   :  { %v420_v62 = vadd.f32 %v357_v59, %v271_v57  ;;  %v421_v63 = vadd.f32 %v377_v61, %v272_v58  ;;  %v2458_v57 = vld [vmem:[#allocation7 + $0x1d8] sm:$0xff]  ;;  %v2462_v58 = vld [vmem:[#allocation7 + $0x1a0] sm:$0xff]  ;;  %v2464_v59 = vld [vmem:[#allocation7 + $0x1a8] sm:$0xff] }
 0x155   :  { %845 = vmatpush.msrb.mxu3 %v2458_v57  ;;  %v2466_v61 = vld [vmem:[#allocation7 + $0x1b0] sm:$0xff]  ;;  %806 = vmatpush.msrb.mxu1 %v2464_v59 }
 0x156   :  { %v1847_v60 = vmul.f32 -1.442695, %v420_v62  ;;  %v1848_v1 = vmul.f32 -1.442695, %v421_v63  ;;  %v2470_v62 = vld [vmem:[#allocation7 + $0x1b8] sm:$0xff]  ;;  %826 = vmatpush.msrb.mxu2 %v2466_v61  ;;  %v2474_v63 = vld [vmem:[#allocation7 + $0x180] sm:$0xff] }
 0x157   :  { %3142 = vst [vmem:[#allocation17_spill] sm:$0xff] %v2470_v62  ;;  %846 = vmatpush.msrb.mxu3 %v2470_v62 }
 0x158   :  { %1892 = vpow2.f32 %v1847_v60  ;;  %3143 = vst [vmem:[#allocation18_spill] sm:$0xff] %v2474_v63  ;;  %v2476_v60 = vld [vmem:[#allocation7 + $0x188] sm:$0xff] }
 0x159   :  { %1894 = vpow2.f32 %v1848_v1  ;;  %3144 = vst [vmem:[#allocation19_spill] sm:$0xff] %v2476_v60  ;;  %v2478_v1 = vld [vmem:[#allocation7 + $0x190] sm:$0xff]  ;;  %807 = vmatpush.msrb.mxu1 %v2476_v60 }
 0x15a   :  { %v397_v3 = vpop.f32.mrf.mxu2  ;;  %v417_v11 = vpop.f32.mrf.mxu3  ;;  %3145 = vst [vmem:[#allocation20_spill] sm:$0xff] %v2478_v1  ;;  %827 = vmatpush.msrb.mxu2 %v2478_v1 }
 0x15b   :  { %v422_v4 = vadd.f32 %v397_v3, %v273_v2  ;;  %v423_v15 = vadd.f32 %v417_v11, %v274_v10  ;;  %v2482_v2 = vld [vmem:[#allocation7 + $0x198] sm:$0xff]  ;;  %v2486_v3 = vld [vmem:[#allocation7 + $0x160] sm:$0xff] }
 0x15c   :  { %847 = vmatpush.msrb.mxu3 %v2482_v2  ;;  %v2506_v10 = vld [vmem:[#allocation7 + $0x158] sm:$0xff]  ;;  %v2510_v11 = vld [vmem:[#allocation7 + $0x120] sm:$0xff] }
 0x15d   :  { %v1849_v5 = vmul.f32 -1.442695, %v422_v4  ;;  %v2488_v4 = vld [vmem:[#allocation7 + $0x168] sm:$0xff]  ;;  %3148 = vst [vmem:[#allocation23_spill] sm:$0xff] %v2506_v10 }
 0x15e   :  { %v1893_v6 = vpop.eup %1892  ;;  %808 = vmatpush.msrb.mxu1 %v2488_v4  ;;  %3149 = vst [vmem:[#allocation24_spill] sm:$0xff] %v2510_v11 }
 0x15f   :  { %v1895_v7 = vpop.eup %1894  ;;  %v430_v8 = vadd.f32 1.0, %v1893_v6  ;;  %1896 = vpow2.f32 %v1849_v5  ;;  %v2490_v5 = vld [vmem:[#allocation7 + $0x170] sm:$0xff]  ;;  %v2494_v6 = vld [vmem:[#allocation7 + $0x178] sm:$0xff] }
 0x160   :  { %v431_v9 = vadd.f32 1.0, %v1895_v7  ;;  %3146 = vst [vmem:[#allocation21_spill] sm:$0xff] %v2494_v6  ;;  %828 = vmatpush.msrb.mxu2 %v2490_v5  ;;  %848 = vmatpush.msrb.mxu3 %v2494_v6  ;;  %v2498_v7 = vld [vmem:[#allocation7 + $0x140] sm:$0xff] }
 0x161   :  { %1898 = vrcp.f32 %v430_v8  ;;  %v443_v20 = vand.u32 2147483648, %v430_v8  ;;  %v441_v23 = vand.u32 2147483647, %v430_v8  ;;  %vm437_vm14 = vweird.f32 %v430_v8 }
 0x162   :  { %1900 = vrcp.f32 %v431_v9  ;;  %v458_v21 = vand.u32 2147483648, %v431_v9  ;;  %v456_v25 = vand.u32 2147483647, %v431_v9  ;;  %vm452_vm15 = vweird.f32 %v431_v9  ;;  %849 = vmatpush.msrb.mxu3 %v2506_v10 }
 0x163   :  { %v444_v29 = vor.u32 1.1754944e-38, %v443_v20  ;;  %vm442_vm2 = vcmp.eq.f32.partialorder %v441_v23, 8.507059e+37  ;;  %v2534_v20 = vld [vmem:[#allocation7 + $0xe0] sm:$0xff]  ;;  %v2542_v23 = vld [vmem:[#allocation7 + $0xf8] sm:$0xff] }
 0x164   :  { %v459_v31 = vor.u32 1.1754944e-38, %v458_v21  ;;  %vm457_vm3 = vcmp.eq.f32.partialorder %v456_v25, 8.507059e+37  ;;  %v2536_v21 = vld [vmem:[#allocation7 + $0xe8] sm:$0xff] }
 0x165   :  { %v1897_v12 = vpop.eup %1896 }
 0x166   :  { %v470_v13 = vadd.f32 1.0, %v1897_v12  ;;  %v2512_v12 = vld [vmem:[#allocation7 + $0x128] sm:$0xff] }
 0x167   :  { %v1899_v14 = vpop.eup %1898  ;;  %3150 = vst [vmem:[#allocation25_spill] sm:$0xff] %v2512_v12 }
 0x168   :  { %v1901_v16 = vpop.eup %1900  ;;  %v433_v0 = vmul.f32 %v1899_v14, %v430_v8  ;;  %1902 = vrcp.f32 %v470_v13  ;;  %vm438_vm12 = vweird.f32 %v1899_v14  ;;  %v482_v43 = vand.u32 2147483648, %v470_v13  ;;  %v2500_v8 = vld [vmem:[#allocation7 + $0x148] sm:$0xff] }
 0x169   :  { %v448_v17 = vmul.f32 %v1901_v16, %v431_v9  ;;  %1904 = vtanh.f32 %v423_v15  ;;  %vm453_vm13 = vweird.f32 %v1901_v16  ;;  %vm439_vm0 = vmor %vm437_vm14, %vm438_vm12  ;;  %vm476_vm5 = vweird.f32 %v470_v13  ;;  %v2502_v9 = vld [vmem:[#allocation7 + $0x150] sm:$0xff]  ;;  %809 = vmatpush.msrb.mxu1 %v2500_v8  ;;  %v2522_v15 = vld [vmem:[#allocation7 + $0x100] sm:$0xff] }
 0x16a   :  { %v434_v18 = vsub.f32 1.0, %v433_v0  ;;  %vm454_vm1 = vmor %vm452_vm15, %vm453_vm13  ;;  %v480_v44 = vand.u32 2147483647, %v470_v13  ;;  %v483_v46 = vor.u32 1.1754944e-38, %v482_v43  ;;  %3147 = vst [vmem:[#allocation22_spill] sm:$0xff] %v2502_v9  ;;  %829 = vmatpush.msrb.mxu2 %v2502_v9  ;;  %v2526_v0 = vld [vmem:[#allocation7 + $0x110] sm:$0xff] }
 0x16b   :  { %v449_v19 = vsub.f32 1.0, %v448_v17  ;;  %810 = vmatpush.msrb.mxu1 %v2512_v12  ;;  %v493_v17 = vld [vmem:[#allocation4 + $0x40] sm:$0xff]  ;;  %v2578_v43 = vld [vmem:[#allocation7 + $0x98] sm:$0xff] }
 0x16c   :  { %v435_v22 = vmul.f32 %v1899_v14, %v434_v18  ;;  %vm481_vm7 = vcmp.eq.f32.partialorder %v480_v44, 8.507059e+37  ;;  %v494_v18 = vld [vmem:[#allocation4 + $0x48] sm:$0xff]  ;;  %v2580_v44 = vld [vmem:[#allocation7 + $0x60] sm:$0xff] }
 0x16d   :  { %v450_v24 = vmul.f32 %v1901_v16, %v449_v19  ;;  %v2530_v19 = vld [vmem:[#allocation7 + $0x118] sm:$0xff]  ;;  %3151 = vst [vmem:[#allocation26_spill] sm:$0xff] %v2580_v44 }
 0x16e   :  { %v1903_v26 = vpop.eup %1902  ;;  %v436_v27 = vadd.f32 %v1899_v14, %v435_v22  ;;  %v2538_v22 = vld [vmem:[#allocation7 + $0xf0] sm:$0xff] }
 0x16f   :  { %v472_v28 = vmul.f32 %v1903_v26, %v470_v13  ;;  %v451_v30 = vadd.f32 %v1901_v16, %v450_v24  ;;  %v1905_v33 = vpop.eup %1904  ;;  %vm477_vm4 = vweird.f32 %v1903_v26  ;;  %v2514_v13 = vld [vmem:[#allocation7 + $0x130] sm:$0xff] }
 0x170   :  { %v440_v32 = vsel %vm439_vm0, %v1899_v14, %v436_v27  ;;  %vm478_vm6 = vmor %vm476_vm5, %vm477_vm4  ;;  %v2518_v14 = vld [vmem:[#allocation7 + $0x138] sm:$0xff]  ;;  %830 = vmatpush.msrb.mxu2 %v2514_v13  ;;  %v2548_v27 = vld [vmem:[#allocation7 + $0xc8] sm:$0xff] }
 0x171   :  { %v473_v34 = vsub.f32 1.0, %v472_v28  ;;  %v445_v35 = vsel %vm442_vm2, %v444_v29, %v440_v32  ;;  %v455_v36 = vsel %vm454_vm1, %v1901_v16, %v451_v30  ;;  %850 = vmatpush.msrb.mxu3 %v2518_v14  ;;  %v2524_v16 = vld [vmem:[#allocation7 + $0x108] sm:$0xff]  ;;  %v2550_v28 = vld [vmem:[#allocation7 + $0xd0] sm:$0xff]  ;;  %v2558_v32 = vld [vmem:[#allocation7 + $0xa0] sm:$0xff] }
 0x172   :  { %v460_v37 = vsel %vm457_vm3, %v459_v31, %v455_v36  ;;  %v465_v38 = vmul.f32 %v1905_v33, %v445_v35  ;;  %811 = vmatpush.msrb.mxu1 %v2524_v16  ;;  %831 = vmatpush.msrb.mxu2 %v2526_v0  ;;  %v2554_v31 = vld [vmem:[#allocation7 + $0xd8] sm:$0xff]  ;;  %v2560_v33 = vld [vmem:[#allocation7 + $0xa8] sm:$0xff] }
 0x173   :  { %v474_v39 = vmul.f32 %v1903_v26, %v473_v34  ;;  %v464_v40 = vmul.f32 %v460_v37, %v2431_v48  ;;  %v2438_v48 = vld [vmem:[#allocation7 + $0x1e0] sm:$0xff]  ;;  %851 = vmatpush.msrb.mxu3 %v2530_v19  ;;  %v2562_v34 = vld [vmem:[#allocation7 + $0xb0] sm:$0xff] }
 0x174   :  { %784 = vmatpush.msrb.mxu0 %v2438_v48  ;;  %812 = vmatpush.msrb.mxu1 %v2536_v21  ;;  %v495_v37 = vld [vmem:[#allocation4 + $0x50] sm:$0xff] }
 0x175   :  { %v2435_v41 = vadd.f32 %v465_v38, %v464_v40  ;;  %v475_v42 = vadd.f32 %v1903_v26, %v474_v39  ;;  %832 = vmatpush.msrb.mxu2 %v2538_v22  ;;  %852 = vmatpush.msrb.mxu3 %v2542_v23  ;;  %v2566_v38 = vld [vmem:[#allocation7 + $0xb8] sm:$0xff]  ;;  %v2570_v39 = vld [vmem:[#allocation7 + $0x80] sm:$0xff]  ;;  %v2572_v40 = vld [vmem:[#allocation7 + $0x88] sm:$0xff] }
 0x176   :  { %785 = vmatpush.msrb.mxu0 %v2450_v54  ;;  %813 = vmatpush.msrb.mxu1 %v2548_v27 }
 0x177   :  { %1906 = vtanh.f32 %v2435_v41  ;;  %v479_v45 = vsel %vm478_vm6, %v1903_v26, %v475_v42  ;;  %v2546_v26 = vld [vmem:[#allocation7 + $0xc0] sm:$0xff]  ;;  %833 = vmatpush.msrb.mxu2 %v2550_v28  ;;  %853 = vmatpush.msrb.mxu3 %v2554_v31  ;;  %v2574_v42 = vld [vmem:[#allocation7 + $0x90] sm:$0xff] }
 0x178   :  { %v484_v49 = vsel %vm481_vm7, %v483_v46, %v479_v45  ;;  %786 = vmatpush.msrb.mxu0 %v2462_v58  ;;  %814 = vmatpush.msrb.mxu1 %v2560_v33  ;;  %v2582_v45 = vld [vmem:[#allocation7 + $0x68] sm:$0xff]  ;;  %v2586_v46 = vld [vmem:[#allocation7 + $0x70] sm:$0xff] }
 0x179   :  { %834 = vmatpush.msrb.mxu2 %v2562_v34  ;;  %854 = vmatpush.msrb.mxu3 %v2566_v38  ;;  %3152 = vst [vmem:[#allocation27_spill] sm:$0xff] %v2582_v45 }
 0x17a   :  { %787 = vmatpush.msrb.mxu0 %v2474_v63  ;;  %815 = vmatpush.msrb.mxu1 %v2572_v40  ;;  %3153 = vst [vmem:[#allocation28_spill] sm:$0xff] %v2586_v46 }
 0x17b   :  { %835 = vmatpush.msrb.mxu2 %v2574_v42  ;;  %855 = vmatpush.msrb.mxu3 %v2578_v43 }
 0x17c   :  { %788 = vmatpush.msrb.mxu0 %v2486_v3  ;;  %816 = vmatpush.msrb.mxu1 %v2582_v45 }
 0x17d   :  { %v1907_v47 = vpop.eup %1906  ;;  %836 = vmatpush.msrb.mxu2 %v2586_v46 }
 0x17e   :  { %v487_v50 = vmul.f32 %v1907_v47, %v484_v49  ;;  %789 = vmatpush.msrb.mxu0 %v2498_v7  ;;  %v2588_v47 = vld [vmem:[#allocation7 + $0x78] sm:$0xff]  ;;  %v2590_v49 = vld [vmem:[#allocation7 + $0x40] sm:$0xff] }
 0x17f   :  { %3154 = vst [vmem:[#allocation29_spill] sm:$0xff] %v2588_v47  ;;  %856 = vmatpush.msrb.mxu3 %v2588_v47 }
 0x180   :  { %491 = vst [vmem:[#allocation9 + $0x8] sm:$0xff] %v487_v50  ;;  %578 = vmatmul.f32.vlgmr.msra.gmra.mxu0 %v487_v50  ;;  %598 = vmatmul.f32.vlgmr.msra.gmra.mxu1 %v487_v50 }
 0x181   :  { %618 = vmatmul.f32.vlgmr.msra.gmra.mxu2 %v487_v50  ;;  %638 = vmatmul.f32.vlgmr.msra.gmra.mxu3 %v487_v50  ;;  %3155 = vst [vmem:[#allocation30_spill] sm:$0xff] %v2590_v49 }
 0x182   :  { %790 = vmatpush.msrb.mxu0 %v2510_v11 }
 0x184   :  { %791 = vmatpush.msrb.mxu0 %v2522_v15 }
 0x186   :  { %792 = vmatpush.msrb.mxu0 %v2534_v20 }
 0x188   :  { %793 = vmatpush.msrb.mxu0 %v2546_v26 }
 0x18a   :  { %794 = vmatpush.msrb.mxu0 %v2558_v32 }
 0x18c   :  { %795 = vmatpush.msrb.mxu0 %v2570_v39 }
 0x18e   :  { %796 = vmatpush.msrb.mxu0 %v2580_v44 }
 0x190   :  { %797 = vmatpush.msrb.mxu0 %v2590_v49  ;;  %v2620_v49 = vld [vmem:[#allocation7 + $0x10] sm:$0xff] }
 0x1fd   :  { %v579_v24 = vpop.f32.mrf.mxu0  ;;  %v599_v25 = vpop.f32.mrf.mxu1 }
 0x1fe   :  { %v642_v29 = vadd.f32 %v579_v24, %v493_v17  ;;  %v643_v30 = vadd.f32 %v599_v25, %v494_v18  ;;  %v2594_v17 = vld [vmem:[#allocation7 + $0x48] sm:$0xff]  ;;  %v2596_v18 = vld [vmem:[#allocation7 + $0x50] sm:$0xff]  ;;  %v2598_v24 = vld [vmem:[#allocation7 + $0x58] sm:$0xff] }
 0x1ff   :  { %3156 = vst [vmem:[#allocation31_spill] sm:$0xff] %v2594_v17  ;;  %817 = vmatpush.msrb.mxu1 %v2594_v17  ;;  %837 = vmatpush.msrb.mxu2 %v2596_v18  ;;  %v2622_v17 = vld [vmem:[#allocation7 + $0x18] sm:$0xff] }
 0x200   :  { %v1850_v35 = vmul.f32 -1.442695, %v642_v29  ;;  %v1851_v36 = vmul.f32 -1.442695, %v643_v30  ;;  %v2602_v29 = vld [vmem:[#allocation7 + $0x20] sm:$0xff]  ;;  %v2604_v30 = vld [vmem:[#allocation7 + $0x28] sm:$0xff]  ;;  %857 = vmatpush.msrb.mxu3 %v2598_v24 }
 0x201   :  { %798 = vmatpush.msrb.mxu0 %v2602_v29  ;;  %818 = vmatpush.msrb.mxu1 %v2604_v30  ;;  %3157 = vst [vmem:[#allocation32_spill] sm:$0xff] %v2622_v17 }
 0x202   :  { %1908 = vpow2.f32 %v1850_v35  ;;  %v2608_v35 = vld [vmem:[#allocation7 + $0x30] sm:$0xff] }
 0x203   :  { %1910 = vpow2.f32 %v1851_v36  ;;  %v2610_v36 = vld [vmem:[#allocation7 + $0x38] sm:$0xff]  ;;  %838 = vmatpush.msrb.mxu2 %v2608_v35 }
 0x204   :  { %v619_v50 = vpop.f32.mrf.mxu2  ;;  %858 = vmatpush.msrb.mxu3 %v2610_v36 }
 0x205   :  { %v644_v25 = vadd.f32 %v619_v50, %v495_v37  ;;  %v2614_v37 = vld [vmem:[#allocation7] sm:$0xff]  ;;  %v2616_v50 = vld [vmem:[#allocation7 + $0x8] sm:$0xff]  ;;  %839 = vmatpush.msrb.mxu2 %v2620_v49 }
 0x206   :  { %799 = vmatpush.msrb.mxu0 %v2614_v37  ;;  %819 = vmatpush.msrb.mxu1 %v2616_v50 }
 0x207   :  { %v1852_v45 = vmul.f32 -1.442695, %v644_v25  ;;  %859 = vmatpush.msrb.mxu3 %v2622_v17  ;;  %1046 = vmatpush.msra.mxu2 %v2442_v52 }
 0x208   :  { %v1909_v47 = vpop.eup %1908  ;;  %1006 = vmatpush.msra.mxu0 %v2438_v48  ;;  %1026 = vmatpush.msra.mxu1 %v2440_v51 }
 0x209   :  { %v1911_v46 = vpop.eup %1910  ;;  %v2624_v44 = vadd.f32 1.0, %v1909_v47  ;;  %1912 = vpow2.f32 %v1852_v45  ;;  %1066 = vmatpush.msra.mxu3 %v2446_v53  ;;  %v496_v45 = vld [vmem:[#allocation4 + $0x58] sm:$0xff]  ;;  %1047 = vmatpush.msra.mxu2 %v2454_v56 }
 0x20a   :  { %v2628_v25 = vadd.f32 1.0, %v1911_v46  ;;  %v639_v46 = vpop.f32.mrf.mxu3  ;;  %1007 = vmatpush.msra.mxu0 %v2450_v54  ;;  %1027 = vmatpush.msra.mxu1 %v2452_v55 }
 0x20b   :  { %1914 = vrcp.f32 %v2624_v44  ;;  %1067 = vmatpush.msra.mxu3 %v2458_v57  ;;  %v645_v51 = vadd.f32 %v639_v46, %v496_v45  ;;  %1048 = vmatpush.msra.mxu2 %v2466_v61  ;;  %vm659_vm10 = vweird.f32 %v2624_v44 }
 0x20c   :  { %1916 = vrcp.f32 %v2628_v25  ;;  %1008 = vmatpush.msra.mxu0 %v2462_v58  ;;  %1028 = vmatpush.msra.mxu1 %v2464_v59  ;;  %vm674_vm11 = vweird.f32 %v2628_v25 }
 0x20d   :  { %1068 = vmatpush.msra.mxu3 %v2470_v62  ;;  %1049 = vmatpush.msra.mxu2 %v2478_v1  ;;  %v665_v62 = vand.u32 2147483648, %v2624_v44  ;;  %v663_v1 = vand.u32 2147483647, %v2624_v44 }
 0x20e   :  { %1009 = vmatpush.msra.mxu0 %v2474_v63  ;;  %1029 = vmatpush.msra.mxu1 %v2476_v60  ;;  %v680_v60 = vand.u32 2147483648, %v2628_v25 }
 0x20f   :  { %v1913_v47 = vpop.eup %1912  ;;  %1069 = vmatpush.msra.mxu3 %v2482_v2  ;;  %1050 = vmatpush.msra.mxu2 %v2490_v5  ;;  %vm664_vm14 = vcmp.eq.f32.partialorder %v663_v1, 8.507059e+37 }
 0x210   :  { %v2644_v17 = vadd.f32 1.0, %v1913_v47  ;;  %1010 = vmatpush.msra.mxu0 %v2486_v3  ;;  %1030 = vmatpush.msra.mxu1 %v2488_v4 }
 0x211   :  { %v1915_v52 = vpop.eup %1914  ;;  %1070 = vmatpush.msra.mxu3 %v2494_v6  ;;  %1051 = vmatpush.msra.mxu2 %v2502_v9 }
 0x212   :  { %v1917_v54 = vpop.eup %1916  ;;  %v655_v55 = vmul.f32 %v1915_v52, %v2624_v44  ;;  %1918 = vrcp.f32 %v2644_v17  ;;  %vm660_vm8 = vweird.f32 %v1915_v52  ;;  %1011 = vmatpush.msra.mxu0 %v2498_v7  ;;  %1031 = vmatpush.msra.mxu1 %v2500_v8  ;;  %vm698_vm1 = vweird.f32 %v2644_v17 }
 0x213   :  { %v670_v47 = vmul.f32 %v1917_v54, %v2628_v25  ;;  %1920 = vtanh.f32 %v645_v51  ;;  %vm675_vm9 = vweird.f32 %v1917_v54  ;;  %1071 = vmatpush.msra.mxu3 %v2506_v10  ;;  %vm661_vm12 = vmor %vm659_vm10, %vm660_vm8  ;;  %1052 = vmatpush.msra.mxu2 %v2514_v13 }
 0x214   :  { %v656_v45 = vsub.f32 1.0, %v655_v55  ;;  %1012 = vmatpush.msra.mxu0 %v2510_v11  ;;  %1032 = vmatpush.msra.mxu1 %v2512_v12  ;;  %vm676_vm13 = vmor %vm674_vm11, %vm675_vm9 }
 0x215   :  { %v671_v46 = vsub.f32 1.0, %v670_v47  ;;  %v678_v47 = vand.u32 2147483647, %v2628_v25  ;;  %1072 = vmatpush.msra.mxu3 %v2518_v14  ;;  %1053 = vmatpush.msra.mxu2 %v2526_v0 }
 0x216   :  { %v657_v63 = vmul.f32 %v1915_v52, %v656_v45  ;;  %1013 = vmatpush.msra.mxu0 %v2522_v15  ;;  %1033 = vmatpush.msra.mxu1 %v2524_v16 }
 0x217   :  { %v672_v55 = vmul.f32 %v1917_v54, %v671_v46  ;;  %v666_v46 = vor.u32 1.1754944e-38, %v665_v62  ;;  %vm679_vm15 = vcmp.eq.f32.partialorder %v678_v47, 8.507059e+37  ;;  %1073 = vmatpush.msra.mxu3 %v2530_v19  ;;  %1054 = vmatpush.msra.mxu2 %v2538_v22  ;;  %v3160_v47 = vld [vmem:[#allocation28_spill] sm:$0xff] }
 0x218   :  { %v2669_v51 = vpop.eup %1918  ;;  %v658_v6 = vadd.f32 %v1915_v52, %v657_v63  ;;  %v681_v63 = vor.u32 1.1754944e-38, %v680_v60  ;;  %1014 = vmatpush.msra.mxu0 %v2534_v20  ;;  %1034 = vmatpush.msra.mxu1 %v2536_v21 }
 0x219   :  { %v694_v45 = vmul.f32 %v2669_v51, %v2644_v17  ;;  %v673_v9 = vadd.f32 %v1917_v54, %v672_v55  ;;  %v1921_v25 = vpop.eup %1920  ;;  %1074 = vmatpush.msra.mxu3 %v2542_v23  ;;  %1055 = vmatpush.msra.mxu2 %v2550_v28  ;;  %vm699_vm0 = vweird.f32 %v2669_v51 }
 0x21a   :  { %v662_v44 = vsel %vm661_vm12, %v1915_v52, %v658_v6  ;;  %1015 = vmatpush.msra.mxu0 %v2546_v26  ;;  %1035 = vmatpush.msra.mxu1 %v2548_v27  ;;  %v702_v6 = vand.u32 2147483647, %v2644_v17  ;;  %vm700_vm2 = vmor %vm698_vm1, %vm699_vm0 }
 0x21b   :  { %v695_v12 = vsub.f32 1.0, %v694_v45  ;;  %v667_v11 = vsel %vm664_vm14, %v666_v46, %v662_v44  ;;  %v677_v10 = vsel %vm676_vm13, %v1917_v54, %v673_v9  ;;  %1075 = vmatpush.msra.mxu3 %v2554_v31  ;;  %1056 = vmatpush.msra.mxu2 %v2562_v34  ;;  %v3161_v45 = vld [vmem:[#allocation29_spill] sm:$0xff]  ;;  %v3163_v46 = vld [vmem:[#allocation31_spill] sm:$0xff] }
 0x21c   :  { %v682_v62 = vsel %vm679_vm15, %v681_v63, %v677_v10  ;;  %v687_v55 = vmul.f32 %v1921_v25, %v667_v11  ;;  %1016 = vmatpush.msra.mxu0 %v2558_v32  ;;  %1036 = vmatpush.msra.mxu1 %v2560_v33  ;;  %v3158_v10 = vld [vmem:[#allocation26_spill] sm:$0xff]  ;;  %v3159_v11 = vld [vmem:[#allocation27_spill] sm:$0xff]  ;;  %vm703_vm3 = vcmp.eq.f32.partialorder %v702_v6, 8.507059e+37  ;;  %v3164_v25 = vld [vmem:[#allocation32_spill] sm:$0xff] }
 0x21d   :  { %v696_v52 = vmul.f32 %v2669_v51, %v695_v12  ;;  %v686_v60 = vmul.f32 %v682_v62, %v2435_v41  ;;  %v704_v41 = vand.u32 2147483648, %v2644_v17  ;;  %1076 = vmatpush.msra.mxu3 %v2566_v38  ;;  %1057 = vmatpush.msra.mxu2 %v2574_v42  ;;  %v3162_v17 = vld [vmem:[#allocation30_spill] sm:$0xff]  ;;  %v3165_v62 = vld [vmem:[#allocation13_spill] sm:$0xff] }
 0x21e   :  { %1017 = vmatpush.msra.mxu0 %v2570_v39  ;;  %1037 = vmatpush.msra.mxu1 %v2572_v40 }
 0x21f   :  { %v2693_v54 = vadd.f32 %v687_v55, %v686_v60  ;;  %v697_v1 = vadd.f32 %v2669_v51, %v696_v52  ;;  %1077 = vmatpush.msra.mxu3 %v2578_v43  ;;  %v705_v12 = vor.u32 1.1754944e-38, %v704_v41  ;;  %1058 = vmatpush.msra.mxu2 %v3160_v47  ;;  %v3166_v55 = vld [vmem:[#allocation14_spill] sm:$0xff]  ;;  %v3167_v52 = vld [vmem:[#allocation15_spill] sm:$0xff]  ;;  %v3168_v60 = vld [vmem:[#allocation16_spill] sm:$0xff] }
 0x220   :  { %1018 = vmatpush.msra.mxu0 %v3158_v10  ;;  %1038 = vmatpush.msra.mxu1 %v3159_v11  ;;  %v3171_v41 = vld [vmem:[#allocation19_spill] sm:$0xff] }
 0x221   :  { %1922 = vtanh.f32 %v2693_v54  ;;  %v701_v9 = vsel %vm700_vm2, %v2669_v51, %v697_v1  ;;  %1078 = vmatpush.msra.mxu3 %v3161_v45  ;;  %1059 = vmatpush.msra.mxu2 %v2596_v18  ;;  %v3170_v1 = vld [vmem:[#allocation18_spill] sm:$0xff] }
 0x222   :  { %1019 = vmatpush.msra.mxu0 %v3162_v17  ;;  %1039 = vmatpush.msra.mxu1 %v3163_v46  ;;  %v706_v44 = vsel %vm703_vm3, %v705_v12, %v701_v9 }
 0x223   :  { %1079 = vmatpush.msra.mxu3 %v2598_v24  ;;  %1060 = vmatpush.msra.mxu2 %v2608_v35 }
 0x224   :  { %1020 = vmatpush.msra.mxu0 %v2602_v29  ;;  %1040 = vmatpush.msra.mxu1 %v2604_v30 }
 0x225   :  { %1080 = vmatpush.msra.mxu3 %v2610_v36  ;;  %1061 = vmatpush.msra.mxu2 %v2620_v49 }
 0x226   :  { %1021 = vmatpush.msra.mxu0 %v2614_v37  ;;  %1041 = vmatpush.msra.mxu1 %v2616_v50 }
 0x227   :  { %v1923_v63 = vpop.eup %1922  ;;  %1081 = vmatpush.msra.mxu3 %v3164_v25 }
 0x228   :  { %v709_v51 = vmul.f32 %v1923_v63, %v706_v44 }
 0x22a   :  { %713 = vst [vmem:[#allocation9 + $0x10] sm:$0xff] %v709_v51  ;;  %800 = vmatmul.f32.vlgmr.msrb.gmra.mxu0 %v709_v51  ;;  %820 = vmatmul.f32.vlgmr.msrb.gmra.mxu1 %v709_v51 }
 0x22b   :  { %840 = vmatmul.f32.vlgmr.msrb.gmra.mxu2 %v709_v51  ;;  %860 = vmatmul.f32.vlgmr.msrb.gmra.mxu3 %v709_v51 }
 0x22c   :  { %1228 = vmatpush.msrb.mxu0 %v2438_v48  ;;  %1248 = vmatpush.msrb.mxu1 %v3165_v62  ;;  %v3169_v48 = vld [vmem:[#allocation17_spill] sm:$0xff] }
 0x22d   :  { %1268 = vmatpush.msrb.mxu2 %v3166_v55  ;;  %1288 = vmatpush.msrb.mxu3 %v2446_v53  ;;  %v3172_v53 = vld [vmem:[#allocation20_spill] sm:$0xff] }
 0x22e   :  { %1229 = vmatpush.msrb.mxu0 %v3167_v52  ;;  %1249 = vmatpush.msrb.mxu1 %v3168_v60 }
 0x22f   :  { %1269 = vmatpush.msrb.mxu2 %v2454_v56  ;;  %1289 = vmatpush.msrb.mxu3 %v2458_v57  ;;  %v3173_v56 = vld [vmem:[#allocation21_spill] sm:$0xff]  ;;  %v3174_v57 = vld [vmem:[#allocation22_spill] sm:$0xff] }
 0x230   :  { %1230 = vmatpush.msrb.mxu0 %v2462_v58  ;;  %1250 = vmatpush.msrb.mxu1 %v2464_v59  ;;  %v3175_v58 = vld [vmem:[#allocation23_spill] sm:$0xff]  ;;  %v3176_v59 = vld [vmem:[#allocation24_spill] sm:$0xff] }
 0x231   :  { %1270 = vmatpush.msrb.mxu2 %v2466_v61  ;;  %1290 = vmatpush.msrb.mxu3 %v3169_v48  ;;  %v3177_v61 = vld [vmem:[#allocation25_spill] sm:$0xff] }
 0x232   :  { %1231 = vmatpush.msrb.mxu0 %v3170_v1  ;;  %1251 = vmatpush.msrb.mxu1 %v3171_v41 }
 0x233   :  { %1271 = vmatpush.msrb.mxu2 %v3172_v53  ;;  %1291 = vmatpush.msrb.mxu3 %v2482_v2  ;;  %v715_v2 = vld [vmem:[#allocation4 + $0x60] sm:$0xff]  ;;  %v938_v53 = vld [vmem:[#allocation4 + $0x88] sm:$0xff] }
 0x234   :  { %1232 = vmatpush.msrb.mxu0 %v2486_v3  ;;  %1252 = vmatpush.msrb.mxu1 %v2488_v4  ;;  %v716_v3 = vld [vmem:[#allocation4 + $0x68] sm:$0xff] }
 0x235   :  { %1272 = vmatpush.msrb.mxu2 %v2490_v5  ;;  %1292 = vmatpush.msrb.mxu3 %v3173_v56 }
 0x236   :  { %1233 = vmatpush.msrb.mxu0 %v2498_v7  ;;  %1253 = vmatpush.msrb.mxu1 %v2500_v8 }
 0x237   :  { %1273 = vmatpush.msrb.mxu2 %v3174_v57  ;;  %1293 = vmatpush.msrb.mxu3 %v3175_v58 }
 0x238   :  { %1234 = vmatpush.msrb.mxu0 %v3176_v59  ;;  %1254 = vmatpush.msrb.mxu1 %v3177_v61 }
 0x239   :  { %1274 = vmatpush.msrb.mxu2 %v2514_v13  ;;  %1294 = vmatpush.msrb.mxu3 %v2518_v14 }
 0x23a   :  { %1235 = vmatpush.msrb.mxu0 %v2522_v15  ;;  %1255 = vmatpush.msrb.mxu1 %v2524_v16  ;;  %v717_v15 = vld [vmem:[#allocation4 + $0x70] sm:$0xff] }
 0x23b   :  { %1275 = vmatpush.msrb.mxu2 %v2526_v0  ;;  %1295 = vmatpush.msrb.mxu3 %v2530_v19 }
 0x23c   :  { %1236 = vmatpush.msrb.mxu0 %v2534_v20  ;;  %1256 = vmatpush.msrb.mxu1 %v2536_v21 }
 0x23d   :  { %1276 = vmatpush.msrb.mxu2 %v2538_v22  ;;  %1296 = vmatpush.msrb.mxu3 %v2542_v23 }
 0x23e   :  { %1237 = vmatpush.msrb.mxu0 %v2546_v26  ;;  %1257 = vmatpush.msrb.mxu1 %v2548_v27  ;;  %v718_v26 = vld [vmem:[#allocation4 + $0x78] sm:$0xff] }
 0x23f   :  { %1277 = vmatpush.msrb.mxu2 %v2550_v28  ;;  %1297 = vmatpush.msrb.mxu3 %v2554_v31 }
 0x240   :  { %1238 = vmatpush.msrb.mxu0 %v2558_v32  ;;  %1258 = vmatpush.msrb.mxu1 %v2560_v33 }
 0x241   :  { %1278 = vmatpush.msrb.mxu2 %v2562_v34  ;;  %1298 = vmatpush.msrb.mxu3 %v2566_v38 }
 0x242   :  { %1239 = vmatpush.msrb.mxu0 %v2570_v39  ;;  %1259 = vmatpush.msrb.mxu1 %v2572_v40 }
 0x243   :  { %1279 = vmatpush.msrb.mxu2 %v2574_v42  ;;  %1299 = vmatpush.msrb.mxu3 %v2578_v43 }
 0x244   :  { %1240 = vmatpush.msrb.mxu0 %v3158_v10  ;;  %1260 = vmatpush.msrb.mxu1 %v3159_v11 }
 0x245   :  { %1280 = vmatpush.msrb.mxu2 %v3160_v47  ;;  %1300 = vmatpush.msrb.mxu3 %v3161_v45 }
 0x246   :  { %1241 = vmatpush.msrb.mxu0 %v3162_v17  ;;  %1261 = vmatpush.msrb.mxu1 %v3163_v46 }
 0x247   :  { %1281 = vmatpush.msrb.mxu2 %v2596_v18  ;;  %1301 = vmatpush.msrb.mxu3 %v2598_v24 }
 0x248   :  { %1242 = vmatpush.msrb.mxu0 %v2602_v29  ;;  %1262 = vmatpush.msrb.mxu1 %v2604_v30 }
 0x249   :  { %1282 = vmatpush.msrb.mxu2 %v2608_v35  ;;  %1302 = vmatpush.msrb.mxu3 %v2610_v36 }
 0x24a   :  { %1243 = vmatpush.msrb.mxu0 %v2614_v37  ;;  %1263 = vmatpush.msrb.mxu1 %v2616_v50 }
 0x24b   :  { %1283 = vmatpush.msrb.mxu2 %v2620_v49  ;;  %1303 = vmatpush.msrb.mxu3 %v3164_v25 }
 0x2a7   :  { %v801_v4 = vpop.f32.mrf.mxu0  ;;  %v821_v5 = vpop.f32.mrf.mxu1 }
 0x2a8   :  { %v864_v7 = vadd.f32 %v801_v4, %v715_v2  ;;  %v865_v8 = vadd.f32 %v821_v5, %v716_v3  ;;  %v939_v3 = vld [vmem:[#allocation4 + $0x90] sm:$0xff] }
 0x2aa   :  { %v1853_v13 = vmul.f32 -1.442695, %v864_v7  ;;  %v1854_v14 = vmul.f32 -1.442695, %v865_v8 }
 0x2ac   :  { %1924 = vpow2.f32 %v1853_v13 }
 0x2ad   :  { %1926 = vpow2.f32 %v1854_v14 }
 0x2ae   :  { %v841_v16 = vpop.f32.mrf.mxu2  ;;  %v861_v27 = vpop.f32.mrf.mxu3 }
 0x2af   :  { %v866_v0 = vadd.f32 %v841_v16, %v717_v15  ;;  %v867_v33 = vadd.f32 %v861_v27, %v718_v26  ;;  %v940_v16 = vld [vmem:[#allocation4 + $0x98] sm:$0xff] }
 0x2b1   :  { %v1855_v19 = vmul.f32 -1.442695, %v866_v0 }
 0x2b2   :  { %v1925_v20 = vpop.eup %1924 }
 0x2b3   :  { %v1927_v21 = vpop.eup %1926  ;;  %v874_v22 = vadd.f32 1.0, %v1925_v20  ;;  %1928 = vpow2.f32 %v1855_v19 }
 0x2b4   :  { %v875_v23 = vadd.f32 1.0, %v1927_v21 }
 0x2b5   :  { %1930 = vrcp.f32 %v874_v22  ;;  %v887_v43 = vand.u32 2147483648, %v874_v22  ;;  %v885_v24 = vand.u32 2147483647, %v874_v22  ;;  %vm881_vm6 = vweird.f32 %v874_v22 }
 0x2b6   :  { %1932 = vrcp.f32 %v875_v23  ;;  %v902_v49 = vand.u32 2147483648, %v875_v23  ;;  %v900_v30 = vand.u32 2147483647, %v875_v23  ;;  %vm896_vm7 = vweird.f32 %v875_v23 }
 0x2b7   :  { %v888_v50 = vor.u32 1.1754944e-38, %v887_v43  ;;  %vm886_vm10 = vcmp.eq.f32.partialorder %v885_v24, 8.507059e+37 }
 0x2b8   :  { %v903_v9 = vor.u32 1.1754944e-38, %v902_v49  ;;  %vm901_vm11 = vcmp.eq.f32.partialorder %v900_v30, 8.507059e+37 }
 0x2b9   :  { %v1929_v28 = vpop.eup %1928 }
 0x2ba   :  { %v914_v31 = vadd.f32 1.0, %v1929_v28 }
 0x2bb   :  { %v1931_v32 = vpop.eup %1930 }
 0x2bc   :  { %v1933_v34 = vpop.eup %1932  ;;  %v877_v38 = vmul.f32 %v1931_v32, %v874_v22  ;;  %1934 = vrcp.f32 %v914_v31  ;;  %vm882_vm4 = vweird.f32 %v1931_v32  ;;  %v926_v62 = vand.u32 2147483648, %v914_v31 }
 0x2bd   :  { %v892_v39 = vmul.f32 %v1933_v34, %v875_v23  ;;  %1936 = vtanh.f32 %v867_v33  ;;  %vm897_vm5 = vweird.f32 %v1933_v34  ;;  %vm883_vm8 = vmor %vm881_vm6, %vm882_vm4  ;;  %vm920_vm13 = vweird.f32 %v914_v31 }
 0x2be   :  { %v878_v40 = vsub.f32 1.0, %v877_v38  ;;  %vm898_vm9 = vmor %vm896_vm7, %vm897_vm5  ;;  %v924_v55 = vand.u32 2147483647, %v914_v31  ;;  %v927_v60 = vor.u32 1.1754944e-38, %v926_v62 }
 0x2bf   :  { %v893_v42 = vsub.f32 1.0, %v892_v39 }
 0x2c0   :  { %v879_v18 = vmul.f32 %v1931_v32, %v878_v40  ;;  %vm925_vm15 = vcmp.eq.f32.partialorder %v924_v55, 8.507059e+37  ;;  %v2802_v55 = vld [vmem:[#allocation7 + $0x1e8] sm:$0xff] }
 0x2c1   :  { %v894_v29 = vmul.f32 %v1933_v34, %v893_v42 }
 0x2c2   :  { %v1935_v35 = vpop.eup %1934  ;;  %v880_v36 = vadd.f32 %v1931_v32, %v879_v18 }
 0x2c3   :  { %v916_v37 = vmul.f32 %v1935_v35, %v914_v31  ;;  %v895_v6 = vadd.f32 %v1933_v34, %v894_v29  ;;  %v1937_v11 = vpop.eup %1936  ;;  %vm921_vm12 = vweird.f32 %v1935_v35 }
 0x2c4   :  { %v884_v10 = vsel %vm883_vm8, %v1931_v32, %v880_v36  ;;  %vm922_vm14 = vmor %vm920_vm13, %vm921_vm12 }
 0x2c5   :  { %v917_v12 = vsub.f32 1.0, %v916_v37  ;;  %v889_v47 = vsel %vm886_vm10, %v888_v50, %v884_v10  ;;  %v899_v45 = vsel %vm898_vm9, %v1933_v34, %v895_v6 }
 0x2c6   :  { %v904_v17 = vsel %vm901_vm11, %v903_v9, %v899_v45  ;;  %v909_v46 = vmul.f32 %v1937_v11, %v889_v47 }
 0x2c7   :  { %v918_v63 = vmul.f32 %v1935_v35, %v917_v12  ;;  %v908_v44 = vmul.f32 %v904_v17, %v2693_v54  ;;  %v937_v54 = vld [vmem:[#allocation4 + $0x80] sm:$0xff] }
 0x2c9   :  { %v2793_v51 = vadd.f32 %v909_v46, %v908_v44  ;;  %v919_v25 = vadd.f32 %v1935_v35, %v918_v63 }
 0x2cb   :  { %1938 = vtanh.f32 %v2793_v51  ;;  %v923_v52 = vsel %vm922_vm14, %v1935_v35, %v919_v25 }
 0x2cc   :  { %v928_v1 = vsel %vm925_vm15, %v927_v60, %v923_v52  ;;  %v2804_v52 = vld [vmem:[#allocation7 + $0x1f0] sm:$0xff]  ;;  %v2808_v60 = vld [vmem:[#allocation7 + $0x1f8] sm:$0xff] }
 0x2d1   :  { %v1939_v48 = vpop.eup %1938 }
 0x2d2   :  { %v931_v41 = vmul.f32 %v1939_v48, %v928_v1  ;;  %v2812_v48 = vld [vmem:[#allocation7 + $0x1c0] sm:$0xff]  ;;  %v2814_v1 = vld [vmem:[#allocation7 + $0x1c8] sm:$0xff] }
 0x2d4   :  { %935 = vst [vmem:[#allocation9 + $0x18] sm:$0xff] %v931_v41  ;;  %1022 = vmatmul.f32.vlgmr.msra.gmra.mxu0 %v931_v41  ;;  %1042 = vmatmul.f32.vlgmr.msra.gmra.mxu1 %v931_v41 }
 0x2d5   :  { %1062 = vmatmul.f32.vlgmr.msra.gmra.mxu2 %v931_v41  ;;  %1082 = vmatmul.f32.vlgmr.msra.gmra.mxu3 %v931_v41  ;;  %v2816_v41 = vld [vmem:[#allocation7 + $0x1d0] sm:$0xff] }
 0x2d6   :  { %1470 = vmatpush.msra.mxu1 %v2802_v55  ;;  %1490 = vmatpush.msra.mxu2 %v2804_v52 }
 0x2d7   :  { %1510 = vmatpush.msra.mxu3 %v2808_v60 }
 0x2d8   :  { %1471 = vmatpush.msra.mxu1 %v2814_v1  ;;  %1491 = vmatpush.msra.mxu2 %v2816_v41 }
 0x351   :  { %v1023_v56 = vpop.f32.mrf.mxu0  ;;  %v1043_v57 = vpop.f32.mrf.mxu1 }
 0x352   :  { %v1086_v58 = vadd.f32 %v1023_v56, %v937_v54  ;;  %v1087_v59 = vadd.f32 %v1043_v57, %v938_v53  ;;  %v2820_v54 = vld [vmem:[#allocation7 + $0x1d8] sm:$0xff]  ;;  %v2824_v53 = vld [vmem:[#allocation7 + $0x1a0] sm:$0xff]  ;;  %v2826_v56 = vld [vmem:[#allocation7 + $0x1a8] sm:$0xff] }
 0x353   :  { %1511 = vmatpush.msra.mxu3 %v2820_v54  ;;  %v2828_v57 = vld [vmem:[#allocation7 + $0x1b0] sm:$0xff]  ;;  %1472 = vmatpush.msra.mxu1 %v2826_v56 }
 0x354   :  { %v1856_v61 = vmul.f32 -1.442695, %v1086_v58  ;;  %v1857_v2 = vmul.f32 -1.442695, %v1087_v59  ;;  %v2832_v58 = vld [vmem:[#allocation7 + $0x1b8] sm:$0xff]  ;;  %1492 = vmatpush.msra.mxu2 %v2828_v57  ;;  %v2836_v59 = vld [vmem:[#allocation7 + $0x180] sm:$0xff] }
 0x355   :  { %1512 = vmatpush.msra.mxu3 %v2832_v58 }
 0x356   :  { %1940 = vpow2.f32 %v1856_v61  ;;  %v2838_v61 = vld [vmem:[#allocation7 + $0x188] sm:$0xff] }
 0x357   :  { %1942 = vpow2.f32 %v1857_v2  ;;  %v2840_v2 = vld [vmem:[#allocation7 + $0x190] sm:$0xff]  ;;  %1473 = vmatpush.msra.mxu1 %v2838_v61 }
 0x358   :  { %v1063_v4 = vpop.f32.mrf.mxu2  ;;  %v1083_v0 = vpop.f32.mrf.mxu3  ;;  %1493 = vmatpush.msra.mxu2 %v2840_v2 }
 0x359   :  { %v1088_v5 = vadd.f32 %v1063_v4, %v939_v3  ;;  %v1089_v22 = vadd.f32 %v1083_v0, %v940_v16  ;;  %v2844_v3 = vld [vmem:[#allocation7 + $0x198] sm:$0xff]  ;;  %v2848_v4 = vld [vmem:[#allocation7 + $0x160] sm:$0xff] }
 0x35a   :  { %1513 = vmatpush.msra.mxu3 %v2844_v3  ;;  %v2868_v16 = vld [vmem:[#allocation7 + $0x158] sm:$0xff]  ;;  %v2872_v0 = vld [vmem:[#allocation7 + $0x120] sm:$0xff] }
 0x35b   :  { %v1858_v7 = vmul.f32 -1.442695, %v1088_v5  ;;  %v2850_v5 = vld [vmem:[#allocation7 + $0x168] sm:$0xff] }
 0x35c   :  { %v1941_v8 = vpop.eup %1940  ;;  %1474 = vmatpush.msra.mxu1 %v2850_v5 }
 0x35d   :  { %v1943_v13 = vpop.eup %1942  ;;  %v1096_v14 = vadd.f32 1.0, %v1941_v8  ;;  %1944 = vpow2.f32 %v1858_v7  ;;  %v2852_v7 = vld [vmem:[#allocation7 + $0x170] sm:$0xff]  ;;  %v2856_v8 = vld [vmem:[#allocation7 + $0x178] sm:$0xff] }
 0x35e   :  { %v1097_v15 = vadd.f32 1.0, %v1943_v13  ;;  %1494 = vmatpush.msra.mxu2 %v2852_v7  ;;  %1514 = vmatpush.msra.mxu3 %v2856_v8  ;;  %v2860_v13 = vld [vmem:[#allocation7 + $0x140] sm:$0xff] }
 0x35f   :  { %1946 = vrcp.f32 %v1096_v14  ;;  %v1109_v32 = vand.u32 2147483648, %v1096_v14  ;;  %v1107_v38 = vand.u32 2147483647, %v1096_v14  ;;  %vm1103_vm2 = vweird.f32 %v1096_v14 }
 0x360   :  { %1948 = vrcp.f32 %v1097_v15  ;;  %v1124_v33 = vand.u32 2147483648, %v1097_v15  ;;  %v1122_v40 = vand.u32 2147483647, %v1097_v15  ;;  %vm1118_vm3 = vweird.f32 %v1097_v15  ;;  %1515 = vmatpush.msra.mxu3 %v2868_v16 }
 0x361   :  { %v1110_v18 = vor.u32 1.1754944e-38, %v1109_v32  ;;  %vm1108_vm6 = vcmp.eq.f32.partialorder %v1107_v38, 8.507059e+37  ;;  %v2896_v32 = vld [vmem:[#allocation7 + $0xe0] sm:$0xff]  ;;  %v2904_v38 = vld [vmem:[#allocation7 + $0xf8] sm:$0xff] }
 0x362   :  { %v1125_v29 = vor.u32 1.1754944e-38, %v1124_v33  ;;  %vm1123_vm7 = vcmp.eq.f32.partialorder %v1122_v40, 8.507059e+37  ;;  %v2898_v33 = vld [vmem:[#allocation7 + $0xe8] sm:$0xff] }
 0x363   :  { %v1945_v19 = vpop.eup %1944 }
 0x364   :  { %v1136_v20 = vadd.f32 1.0, %v1945_v19  ;;  %v2874_v19 = vld [vmem:[#allocation7 + $0x128] sm:$0xff] }
 0x365   :  { %v1947_v21 = vpop.eup %1946 }
 0x366   :  { %v1949_v23 = vpop.eup %1948  ;;  %v1099_v26 = vmul.f32 %v1947_v21, %v1096_v14  ;;  %1950 = vrcp.f32 %v1136_v20  ;;  %vm1104_vm0 = vweird.f32 %v1947_v21  ;;  %v1148_v45 = vand.u32 2147483648, %v1136_v20  ;;  %v2862_v14 = vld [vmem:[#allocation7 + $0x148] sm:$0xff] }
 0x367   :  { %v1114_v27 = vmul.f32 %v1949_v23, %v1097_v15  ;;  %1952 = vtanh.f32 %v1089_v22  ;;  %vm1119_vm1 = vweird.f32 %v1949_v23  ;;  %vm1105_vm4 = vmor %vm1103_vm2, %vm1104_vm0  ;;  %vm1142_vm9 = vweird.f32 %v1136_v20  ;;  %v2864_v15 = vld [vmem:[#allocation7 + $0x150] sm:$0xff]  ;;  %1475 = vmatpush.msra.mxu1 %v2862_v14  ;;  %v2884_v22 = vld [vmem:[#allocation7 + $0x100] sm:$0xff] }
 0x368   :  { %v1100_v28 = vsub.f32 1.0, %v1099_v26  ;;  %vm1120_vm5 = vmor %vm1118_vm3, %vm1119_vm1  ;;  %v1146_v17 = vand.u32 2147483647, %v1136_v20  ;;  %v1149_v63 = vor.u32 1.1754944e-38, %v1148_v45  ;;  %1495 = vmatpush.msra.mxu2 %v2864_v15  ;;  %v2888_v26 = vld [vmem:[#allocation7 + $0x110] sm:$0xff]  ;;  %v2940_v45 = vld [vmem:[#allocation7 + $0x98] sm:$0xff] }
 0x369   :  { %v1115_v31 = vsub.f32 1.0, %v1114_v27  ;;  %1476 = vmatpush.msra.mxu1 %v2874_v19  ;;  %v1159_v27 = vld [vmem:[#allocation4 + $0xa0] sm:$0xff] }
 0x36a   :  { %v1101_v34 = vmul.f32 %v1947_v21, %v1100_v28  ;;  %vm1147_vm11 = vcmp.eq.f32.partialorder %v1146_v17, 8.507059e+37  ;;  %v1160_v28 = vld [vmem:[#allocation4 + $0xa8] sm:$0xff]  ;;  %v2942_v17 = vld [vmem:[#allocation7 + $0x60] sm:$0xff] }
 0x36b   :  { %v1116_v39 = vmul.f32 %v1949_v23, %v1115_v31  ;;  %v2892_v31 = vld [vmem:[#allocation7 + $0x118] sm:$0xff]  ;;  %3178 = vst [vmem:[#allocation26_spill] sm:$0xff] %v2942_v17 }
 0x36c   :  { %v1951_v42 = vpop.eup %1950  ;;  %v1102_v43 = vadd.f32 %v1947_v21, %v1101_v34  ;;  %v2900_v34 = vld [vmem:[#allocation7 + $0xf0] sm:$0xff] }
 0x36d   :  { %v1138_v49 = vmul.f32 %v1951_v42, %v1136_v20  ;;  %v1117_v24 = vadd.f32 %v1949_v23, %v1116_v39  ;;  %v1953_v35 = vpop.eup %1952  ;;  %vm1143_vm8 = vweird.f32 %v1951_v42  ;;  %v2876_v20 = vld [vmem:[#allocation7 + $0x130] sm:$0xff] }
 0x36e   :  { %v1106_v30 = vsel %vm1105_vm4, %v1947_v21, %v1102_v43  ;;  %vm1144_vm10 = vmor %vm1142_vm9, %vm1143_vm8  ;;  %v2880_v21 = vld [vmem:[#allocation7 + $0x138] sm:$0xff]  ;;  %1496 = vmatpush.msra.mxu2 %v2876_v20  ;;  %v2910_v43 = vld [vmem:[#allocation7 + $0xc8] sm:$0xff] }
 0x36f   :  { %v1139_v36 = vsub.f32 1.0, %v1138_v49  ;;  %v1111_v37 = vsel %vm1108_vm6, %v1110_v18, %v1106_v30  ;;  %v1121_v50 = vsel %vm1120_vm5, %v1949_v23, %v1117_v24  ;;  %1516 = vmatpush.msra.mxu3 %v2880_v21  ;;  %v2886_v23 = vld [vmem:[#allocation7 + $0x108] sm:$0xff]  ;;  %v2912_v49 = vld [vmem:[#allocation7 + $0xd0] sm:$0xff]  ;;  %v2920_v30 = vld [vmem:[#allocation7 + $0xa0] sm:$0xff] }
 0x370   :  { %v1126_v6 = vsel %vm1123_vm7, %v1125_v29, %v1121_v50  ;;  %v1131_v9 = vmul.f32 %v1953_v35, %v1111_v37  ;;  %1477 = vmatpush.msra.mxu1 %v2886_v23  ;;  %1497 = vmatpush.msra.mxu2 %v2888_v26  ;;  %v2916_v29 = vld [vmem:[#allocation7 + $0xd8] sm:$0xff]  ;;  %v2922_v35 = vld [vmem:[#allocation7 + $0xa8] sm:$0xff] }
 0x371   :  { %v1140_v10 = vmul.f32 %v1951_v42, %v1139_v36  ;;  %v1130_v11 = vmul.f32 %v1126_v6, %v2793_v51  ;;  %v2800_v51 = vld [vmem:[#allocation7 + $0x1e0] sm:$0xff]  ;;  %1517 = vmatpush.msra.mxu3 %v2892_v31  ;;  %v2924_v36 = vld [vmem:[#allocation7 + $0xb0] sm:$0xff] }
 0x372   :  { %1450 = vmatpush.msra.mxu0 %v2800_v51  ;;  %1478 = vmatpush.msra.mxu1 %v2898_v33  ;;  %v1161_v6 = vld [vmem:[#allocation4 + $0xb0] sm:$0xff] }
 0x373   :  { %v2797_v12 = vadd.f32 %v1131_v9, %v1130_v11  ;;  %v1141_v47 = vadd.f32 %v1951_v42, %v1140_v10  ;;  %1498 = vmatpush.msra.mxu2 %v2900_v34  ;;  %1518 = vmatpush.msra.mxu3 %v2904_v38  ;;  %v2928_v9 = vld [vmem:[#allocation7 + $0xb8] sm:$0xff]  ;;  %v2932_v10 = vld [vmem:[#allocation7 + $0x80] sm:$0xff]  ;;  %v2934_v11 = vld [vmem:[#allocation7 + $0x88] sm:$0xff] }
 0x374   :  { %1451 = vmatpush.msra.mxu0 %v2812_v48  ;;  %1479 = vmatpush.msra.mxu1 %v2910_v43 }
 0x375   :  { %1954 = vtanh.f32 %v2797_v12  ;;  %v1145_v46 = vsel %vm1144_vm10, %v1951_v42, %v1141_v47  ;;  %v2908_v42 = vld [vmem:[#allocation7 + $0xc0] sm:$0xff]  ;;  %1499 = vmatpush.msra.mxu2 %v2912_v49  ;;  %1519 = vmatpush.msra.mxu3 %v2916_v29  ;;  %v2936_v47 = vld [vmem:[#allocation7 + $0x90] sm:$0xff] }
 0x376   :  { %v1150_v25 = vsel %vm1147_vm11, %v1149_v63, %v1145_v46  ;;  %1452 = vmatpush.msra.mxu0 %v2824_v53  ;;  %1480 = vmatpush.msra.mxu1 %v2922_v35  ;;  %v2944_v46 = vld [vmem:[#allocation7 + $0x68] sm:$0xff]  ;;  %v2948_v63 = vld [vmem:[#allocation7 + $0x70] sm:$0xff] }
 0x377   :  { %1500 = vmatpush.msra.mxu2 %v2924_v36  ;;  %1520 = vmatpush.msra.mxu3 %v2928_v9  ;;  %3179 = vst [vmem:[#allocation27_spill] sm:$0xff] %v2944_v46 }
 0x378   :  { %1453 = vmatpush.msra.mxu0 %v2836_v59  ;;  %1481 = vmatpush.msra.mxu1 %v2934_v11  ;;  %3180 = vst [vmem:[#allocation28_spill] sm:$0xff] %v2948_v63 }
 0x379   :  { %1501 = vmatpush.msra.mxu2 %v2936_v47  ;;  %1521 = vmatpush.msra.mxu3 %v2940_v45 }
 0x37a   :  { %1454 = vmatpush.msra.mxu0 %v2848_v4  ;;  %1482 = vmatpush.msra.mxu1 %v2944_v46 }
 0x37b   :  { %v1955_v44 = vpop.eup %1954  ;;  %1502 = vmatpush.msra.mxu2 %v2948_v63 }
 0x37c   :  { %v1153_v62 = vmul.f32 %v1955_v44, %v1150_v25  ;;  %1455 = vmatpush.msra.mxu0 %v2860_v13  ;;  %v2950_v44 = vld [vmem:[#allocation7 + $0x78] sm:$0xff]  ;;  %v2952_v25 = vld [vmem:[#allocation7 + $0x40] sm:$0xff] }
 0x37d   :  { %3181 = vst [vmem:[#allocation29_spill] sm:$0xff] %v2950_v44  ;;  %1522 = vmatpush.msra.mxu3 %v2950_v44 }
 0x37e   :  { %1157 = vst [vmem:[#allocation9 + $0x20] sm:$0xff] %v1153_v62  ;;  %1244 = vmatmul.f32.vlgmr.msrb.gmra.mxu0 %v1153_v62  ;;  %1264 = vmatmul.f32.vlgmr.msrb.gmra.mxu1 %v1153_v62 }
 0x37f   :  { %1284 = vmatmul.f32.vlgmr.msrb.gmra.mxu2 %v1153_v62  ;;  %1304 = vmatmul.f32.vlgmr.msrb.gmra.mxu3 %v1153_v62  ;;  %3182 = vst [vmem:[#allocation30_spill] sm:$0xff] %v2952_v25 }
 0x380   :  { %1456 = vmatpush.msra.mxu0 %v2872_v0 }
 0x382   :  { %1457 = vmatpush.msra.mxu0 %v2884_v22 }
 0x384   :  { %1458 = vmatpush.msra.mxu0 %v2896_v32 }
 0x386   :  { %1459 = vmatpush.msra.mxu0 %v2908_v42 }
 0x388   :  { %1460 = vmatpush.msra.mxu0 %v2920_v30 }
 0x38a   :  { %1461 = vmatpush.msra.mxu0 %v2932_v10 }
 0x38c   :  { %1462 = vmatpush.msra.mxu0 %v2942_v17 }
 0x38e   :  { %1463 = vmatpush.msra.mxu0 %v2952_v25  ;;  %v2982_v25 = vld [vmem:[#allocation7 + $0x10] sm:$0xff] }
 0x3fb   :  { %v1245_v39 = vpop.f32.mrf.mxu0  ;;  %v1265_v40 = vpop.f32.mrf.mxu1 }
 0x3fc   :  { %v1308_v18 = vadd.f32 %v1245_v39, %v1159_v27  ;;  %v1309_v24 = vadd.f32 %v1265_v40, %v1160_v28  ;;  %v2956_v27 = vld [vmem:[#allocation7 + $0x48] sm:$0xff]  ;;  %v2958_v28 = vld [vmem:[#allocation7 + $0x50] sm:$0xff]  ;;  %v2960_v39 = vld [vmem:[#allocation7 + $0x58] sm:$0xff] }
 0x3fd   :  { %3183 = vst [vmem:[#allocation31_spill] sm:$0xff] %v2956_v27  ;;  %1483 = vmatpush.msra.mxu1 %v2956_v27  ;;  %1503 = vmatpush.msra.mxu2 %v2958_v28  ;;  %v2984_v27 = vld [vmem:[#allocation7 + $0x18] sm:$0xff] }
 0x3fe   :  { %v1859_v37 = vmul.f32 -1.442695, %v1308_v18  ;;  %v1860_v50 = vmul.f32 -1.442695, %v1309_v24  ;;  %v2964_v18 = vld [vmem:[#allocation7 + $0x20] sm:$0xff]  ;;  %v2966_v24 = vld [vmem:[#allocation7 + $0x28] sm:$0xff]  ;;  %1523 = vmatpush.msra.mxu3 %v2960_v39 }
 0x3ff   :  { %1464 = vmatpush.msra.mxu0 %v2964_v18  ;;  %1484 = vmatpush.msra.mxu1 %v2966_v24  ;;  %3184 = vst [vmem:[#allocation32_spill] sm:$0xff] %v2984_v27 }
 0x400   :  { %1956 = vpow2.f32 %v1859_v37  ;;  %v2970_v37 = vld [vmem:[#allocation7 + $0x30] sm:$0xff] }
 0x401   :  { %1958 = vpow2.f32 %v1860_v50  ;;  %v2972_v50 = vld [vmem:[#allocation7 + $0x38] sm:$0xff]  ;;  %1504 = vmatpush.msra.mxu2 %v2970_v37 }
 0x402   :  { %v1285_v62 = vpop.f32.mrf.mxu2  ;;  %1524 = vmatpush.msra.mxu3 %v2972_v50 }
 0x403   :  { %v1310_v40 = vadd.f32 %v1285_v62, %v1161_v6  ;;  %v2976_v6 = vld [vmem:[#allocation7] sm:$0xff]  ;;  %v2978_v62 = vld [vmem:[#allocation7 + $0x8] sm:$0xff]  ;;  %1505 = vmatpush.msra.mxu2 %v2982_v25 }
 0x404   :  { %1465 = vmatpush.msra.mxu0 %v2976_v6  ;;  %1485 = vmatpush.msra.mxu1 %v2978_v62 }
 0x405   :  { %v1861_v46 = vmul.f32 -1.442695, %v1310_v40  ;;  %1525 = vmatpush.msra.mxu3 %v2984_v27  ;;  %1712 = vmatpush.msrb.mxu2 %v2804_v52 }
 0x406   :  { %v1957_v44 = vpop.eup %1956  ;;  %1672 = vmatpush.msrb.mxu0 %v2800_v51  ;;  %1692 = vmatpush.msrb.mxu1 %v2802_v55 }
 0x407   :  { %v1959_v63 = vpop.eup %1958  ;;  %v2986_v17 = vadd.f32 1.0, %v1957_v44  ;;  %1960 = vpow2.f32 %v1861_v46  ;;  %1732 = vmatpush.msrb.mxu3 %v2808_v60  ;;  %v1162_v46 = vld [vmem:[#allocation4 + $0xb8] sm:$0xff]  ;;  %1713 = vmatpush.msrb.mxu2 %v2816_v41 }
 0x408   :  { %v2990_v40 = vadd.f32 1.0, %v1959_v63  ;;  %v1305_v63 = vpop.f32.mrf.mxu3  ;;  %1673 = vmatpush.msrb.mxu0 %v2812_v48  ;;  %1693 = vmatpush.msrb.mxu1 %v2814_v1 }
 0x409   :  { %1962 = vrcp.f32 %v2986_v17  ;;  %1733 = vmatpush.msrb.mxu3 %v2820_v54  ;;  %v1311_v55 = vadd.f32 %v1305_v63, %v1162_v46  ;;  %1714 = vmatpush.msrb.mxu2 %v2828_v57  ;;  %v1331_v54 = vand.u32 2147483648, %v2986_v17  ;;  %v1329_v57 = vand.u32 2147483647, %v2986_v17 }
 0x40a   :  { %1964 = vrcp.f32 %v2990_v40  ;;  %1674 = vmatpush.msrb.mxu0 %v2824_v53  ;;  %1694 = vmatpush.msrb.mxu1 %v2826_v56  ;;  %v1346_v53 = vand.u32 2147483648, %v2990_v40  ;;  %vm1325_vm14 = vweird.f32 %v2986_v17  ;;  %vm1340_vm15 = vweird.f32 %v2990_v40 }
 0x40b   :  { %1734 = vmatpush.msrb.mxu3 %v2832_v58  ;;  %1715 = vmatpush.msrb.mxu2 %v2840_v2  ;;  %vm1330_vm2 = vcmp.eq.f32.partialorder %v1329_v57, 8.507059e+37 }
 0x40c   :  { %1675 = vmatpush.msrb.mxu0 %v2836_v59  ;;  %1695 = vmatpush.msrb.mxu1 %v2838_v61  ;;  %v1344_v59 = vand.u32 2147483647, %v2990_v40 }
 0x40d   :  { %v1961_v44 = vpop.eup %1960  ;;  %1735 = vmatpush.msrb.mxu3 %v2844_v3  ;;  %1716 = vmatpush.msrb.mxu2 %v2852_v7  ;;  %v1347_v7 = vor.u32 1.1754944e-38, %v1346_v53 }
 0x40e   :  { %v3006_v27 = vadd.f32 1.0, %v1961_v44  ;;  %1676 = vmatpush.msrb.mxu0 %v2848_v4  ;;  %1696 = vmatpush.msrb.mxu1 %v2850_v5  ;;  %v1332_v4 = vor.u32 1.1754944e-38, %v1331_v54  ;;  %vm1345_vm3 = vcmp.eq.f32.partialorder %v1344_v59, 8.507059e+37 }
 0x40f   :  { %v1963_v51 = vpop.eup %1962  ;;  %1736 = vmatpush.msrb.mxu3 %v2856_v8  ;;  %1717 = vmatpush.msrb.mxu2 %v2864_v15 }
 0x410   :  { %v1965_v52 = vpop.eup %1964  ;;  %v1321_v60 = vmul.f32 %v1963_v51, %v2986_v17  ;;  %1966 = vrcp.f32 %v3006_v27  ;;  %vm1326_vm12 = vweird.f32 %v1963_v51  ;;  %1677 = vmatpush.msrb.mxu0 %v2860_v13  ;;  %1697 = vmatpush.msrb.mxu1 %v2862_v14  ;;  %vm1364_vm5 = vweird.f32 %v3006_v27 }
 0x411   :  { %v1336_v48 = vmul.f32 %v1965_v52, %v2990_v40  ;;  %1968 = vtanh.f32 %v1311_v55  ;;  %vm1341_vm13 = vweird.f32 %v1965_v52  ;;  %1737 = vmatpush.msrb.mxu3 %v2868_v16  ;;  %vm1327_vm0 = vmor %vm1325_vm14, %vm1326_vm12  ;;  %1718 = vmatpush.msrb.mxu2 %v2876_v20  ;;  %v1384_v40 = vld [vmem:[#allocation4 + $0xd8] sm:$0xff] }
 0x412   :  { %v1322_v1 = vsub.f32 1.0, %v1321_v60  ;;  %1678 = vmatpush.msrb.mxu0 %v2872_v0  ;;  %1698 = vmatpush.msrb.mxu1 %v2874_v19  ;;  %vm1342_vm1 = vmor %vm1340_vm15, %vm1341_vm13 }
 0x413   :  { %v1337_v41 = vsub.f32 1.0, %v1336_v48  ;;  %1738 = vmatpush.msrb.mxu3 %v2880_v21  ;;  %1719 = vmatpush.msrb.mxu2 %v2888_v26  ;;  %v1368_v26 = vand.u32 2147483647, %v3006_v27 }
 0x414   :  { %v1323_v56 = vmul.f32 %v1963_v51, %v1322_v1  ;;  %1679 = vmatpush.msrb.mxu0 %v2884_v22  ;;  %1699 = vmatpush.msrb.mxu1 %v2886_v23 }
 0x415   :  { %v1338_v58 = vmul.f32 %v1965_v52, %v1337_v41  ;;  %1739 = vmatpush.msrb.mxu3 %v2892_v31  ;;  %1720 = vmatpush.msrb.mxu2 %v2900_v34  ;;  %vm1369_vm7 = vcmp.eq.f32.partialorder %v1368_v26, 8.507059e+37 }
 0x416   :  { %v3031_v61 = vpop.eup %1966  ;;  %v1324_v2 = vadd.f32 %v1963_v51, %v1323_v56  ;;  %1680 = vmatpush.msrb.mxu0 %v2896_v32  ;;  %1700 = vmatpush.msrb.mxu1 %v2898_v33  ;;  %v3185_v32 = vld [vmem:[#allocation26_spill] sm:$0xff]  ;;  %v3186_v33 = vld [vmem:[#allocation27_spill] sm:$0xff] }
 0x417   :  { %v1360_v3 = vmul.f32 %v3031_v61, %v3006_v27  ;;  %v1339_v5 = vadd.f32 %v1965_v52, %v1338_v58  ;;  %v1969_v13 = vpop.eup %1968  ;;  %1740 = vmatpush.msrb.mxu3 %v2904_v38  ;;  %1721 = vmatpush.msrb.mxu2 %v2912_v49  ;;  %vm1365_vm4 = vweird.f32 %v3031_v61  ;;  %v3187_v38 = vld [vmem:[#allocation28_spill] sm:$0xff]  ;;  %v3190_v49 = vld [vmem:[#allocation31_spill] sm:$0xff] }
 0x418   :  { %v1328_v8 = vsel %vm1327_vm0, %v1963_v51, %v1324_v2  ;;  %1681 = vmatpush.msrb.mxu0 %v2908_v42  ;;  %1701 = vmatpush.msrb.mxu1 %v2910_v43  ;;  %vm1366_vm6 = vmor %vm1364_vm5, %vm1365_vm4  ;;  %v3188_v42 = vld [vmem:[#allocation29_spill] sm:$0xff]  ;;  %v3189_v43 = vld [vmem:[#allocation30_spill] sm:$0xff] }
 0x419   :  { %v1361_v14 = vsub.f32 1.0, %v1360_v3  ;;  %v1333_v15 = vsel %vm1330_vm2, %v1332_v4, %v1328_v8  ;;  %v1343_v16 = vsel %vm1342_vm1, %v1965_v52, %v1339_v5  ;;  %1741 = vmatpush.msrb.mxu3 %v2916_v29  ;;  %1722 = vmatpush.msrb.mxu2 %v2924_v36  ;;  %v3191_v36 = vld [vmem:[#allocation32_spill] sm:$0xff] }
 0x41a   :  { %v1348_v0 = vsel %vm1345_vm3, %v1347_v7, %v1343_v16  ;;  %v1353_v19 = vmul.f32 %v1969_v13, %v1333_v15  ;;  %1682 = vmatpush.msrb.mxu0 %v2920_v30  ;;  %1702 = vmatpush.msrb.mxu1 %v2922_v35 }
 0x41b   :  { %v1362_v20 = vmul.f32 %v3031_v61, %v1361_v14  ;;  %v1352_v21 = vmul.f32 %v1348_v0, %v2797_v12  ;;  %v1370_v12 = vand.u32 2147483648, %v3006_v27  ;;  %1742 = vmatpush.msrb.mxu3 %v2928_v9  ;;  %1723 = vmatpush.msrb.mxu2 %v2936_v47  ;;  %v1381_v9 = vld [vmem:[#allocation4 + $0xc0] sm:$0xff] }
 0x41c   :  { %1683 = vmatpush.msrb.mxu0 %v2932_v10  ;;  %1703 = vmatpush.msrb.mxu1 %v2934_v11  ;;  %v1382_v10 = vld [vmem:[#allocation4 + $0xc8] sm:$0xff] }
 0x41d   :  { %v3055_v22 = vadd.f32 %v1353_v19, %v1352_v21  ;;  %v1363_v23 = vadd.f32 %v3031_v61, %v1362_v20  ;;  %1743 = vmatpush.msrb.mxu3 %v2940_v45  ;;  %v1371_v34 = vor.u32 1.1754944e-38, %v1370_v12  ;;  %1724 = vmatpush.msrb.mxu2 %v3187_v38 }
 0x41e   :  { %1684 = vmatpush.msrb.mxu0 %v3185_v32  ;;  %1704 = vmatpush.msrb.mxu1 %v3186_v33 }
 0x41f   :  { %1970 = vtanh.f32 %v3055_v22  ;;  %v1367_v31 = vsel %vm1366_vm6, %v3031_v61, %v1363_v23  ;;  %1744 = vmatpush.msrb.mxu3 %v3188_v42  ;;  %1725 = vmatpush.msrb.mxu2 %v2958_v28 }
 0x420   :  { %1685 = vmatpush.msrb.mxu0 %v3189_v43  ;;  %1705 = vmatpush.msrb.mxu1 %v3190_v49  ;;  %v1372_v30 = vsel %vm1369_vm7, %v1371_v34, %v1367_v31  ;;  %v1604_v43 = vld [vmem:[#allocation4 + $0xe8] sm:$0xff] }
 0x421   :  { %1745 = vmatpush.msrb.mxu3 %v2960_v39  ;;  %1726 = vmatpush.msrb.mxu2 %v2970_v37  ;;  %v1383_v39 = vld [vmem:[#allocation4 + $0xd0] sm:$0xff] }
 0x422   :  { %1686 = vmatpush.msrb.mxu0 %v2964_v18  ;;  %1706 = vmatpush.msrb.mxu1 %v2966_v24 }
 0x423   :  { %1746 = vmatpush.msrb.mxu3 %v2972_v50  ;;  %1727 = vmatpush.msrb.mxu2 %v2982_v25 }
 0x424   :  { %1687 = vmatpush.msrb.mxu0 %v2976_v6  ;;  %1707 = vmatpush.msrb.mxu1 %v2978_v62 }
 0x425   :  { %v1971_v29 = vpop.eup %1970  ;;  %1747 = vmatpush.msrb.mxu3 %v3191_v36 }
 0x426   :  { %v1375_v35 = vmul.f32 %v1971_v29, %v1372_v30 }
 0x428   :  { %1379 = vst [vmem:[#allocation9 + $0x28] sm:$0xff] %v1375_v35  ;;  %1466 = vmatmul.f32.vlgmr.msra.gmra.mxu0 %v1375_v35  ;;  %1486 = vmatmul.f32.vlgmr.msra.gmra.mxu1 %v1375_v35 }
 0x429   :  { %1506 = vmatmul.f32.vlgmr.msra.gmra.mxu2 %v1375_v35  ;;  %1526 = vmatmul.f32.vlgmr.msra.gmra.mxu3 %v1375_v35 }
 0x4a5   :  { %v1467_v11 = vpop.f32.mrf.mxu0  ;;  %v1487_v47 = vpop.f32.mrf.mxu1 }
 0x4a6   :  { %v1530_v45 = vadd.f32 %v1467_v11, %v1381_v9  ;;  %v1531_v17 = vadd.f32 %v1487_v47, %v1382_v10  ;;  %v1605_v10 = vld [vmem:[#allocation4 + $0xf0] sm:$0xff] }
 0x4a8   :  { %v1862_v27 = vmul.f32 -1.442695, %v1530_v45  ;;  %v1863_v28 = vmul.f32 -1.442695, %v1531_v17 }
 0x4aa   :  { %1972 = vpow2.f32 %v1862_v27 }
 0x4ab   :  { %1974 = vpow2.f32 %v1863_v28 }
 0x4ac   :  { %v1507_v18 = vpop.f32.mrf.mxu2  ;;  %v1527_v46 = vpop.f32.mrf.mxu3 }
 0x4ad   :  { %v1532_v24 = vadd.f32 %v1507_v18, %v1383_v39  ;;  %v1533_v55 = vadd.f32 %v1527_v46, %v1384_v40  ;;  %v1606_v18 = vld [vmem:[#allocation4 + $0xf8] sm:$0xff] }
 0x4af   :  { %v1864_v37 = vmul.f32 -1.442695, %v1532_v24 }
 0x4b0   :  { %v1973_v50 = vpop.eup %1972 }
 0x4b1   :  { %v1975_v6 = vpop.eup %1974  ;;  %v1540_v62 = vadd.f32 1.0, %v1973_v50  ;;  %1976 = vpow2.f32 %v1864_v37 }
 0x4b2   :  { %v1541_v25 = vadd.f32 1.0, %v1975_v6 }
 0x4b3   :  { %1978 = vrcp.f32 %v1540_v62  ;;  %v1553_v54 = vand.u32 2147483648, %v1540_v62  ;;  %v1551_v57 = vand.u32 2147483647, %v1540_v62  ;;  %vm1547_vm10 = vweird.f32 %v1540_v62 }
 0x4b4   :  { %1980 = vrcp.f32 %v1541_v25  ;;  %v1568_v53 = vand.u32 2147483648, %v1541_v25  ;;  %v1566_v59 = vand.u32 2147483647, %v1541_v25  ;;  %vm1562_vm11 = vweird.f32 %v1541_v25 }
 0x4b5   :  { %v1554_v4 = vor.u32 1.1754944e-38, %v1553_v54  ;;  %vm1552_vm14 = vcmp.eq.f32.partialorder %v1551_v57, 8.507059e+37 }
 0x4b6   :  { %v1569_v7 = vor.u32 1.1754944e-38, %v1568_v53  ;;  %vm1567_vm15 = vcmp.eq.f32.partialorder %v1566_v59, 8.507059e+37 }
 0x4b7   :  { %v1977_v63 = vpop.eup %1976 }
 0x4b8   :  { %v1580_v44 = vadd.f32 1.0, %v1977_v63 }
 0x4b9   :  { %v1979_v51 = vpop.eup %1978 }
 0x4ba   :  { %v1981_v52 = vpop.eup %1980  ;;  %v1543_v60 = vmul.f32 %v1979_v51, %v1540_v62  ;;  %1982 = vrcp.f32 %v1580_v44  ;;  %vm1548_vm8 = vweird.f32 %v1979_v51  ;;  %v1592_v26 = vand.u32 2147483648, %v1580_v44 }
 0x4bb   :  { %v1558_v48 = vmul.f32 %v1981_v52, %v1541_v25  ;;  %1984 = vtanh.f32 %v1533_v55  ;;  %vm1563_vm9 = vweird.f32 %v1981_v52  ;;  %vm1549_vm12 = vmor %vm1547_vm10, %vm1548_vm8  ;;  %vm1586_vm1 = vweird.f32 %v1580_v44 }
 0x4bc   :  { %v1544_v1 = vsub.f32 1.0, %v1543_v60  ;;  %vm1564_vm13 = vmor %vm1562_vm11, %vm1563_vm9  ;;  %v1590_v31 = vand.u32 2147483647, %v1580_v44  ;;  %v1593_v33 = vor.u32 1.1754944e-38, %v1592_v26 }
 0x4bd   :  { %v1559_v41 = vsub.f32 1.0, %v1558_v48 }
 0x4be   :  { %v1545_v56 = vmul.f32 %v1979_v51, %v1544_v1  ;;  %vm1591_vm3 = vcmp.eq.f32.partialorder %v1590_v31, 8.507059e+37 }
 0x4bf   :  { %v1560_v58 = vmul.f32 %v1981_v52, %v1559_v41 }
 0x4c0   :  { %v1983_v61 = vpop.eup %1982  ;;  %v1546_v2 = vadd.f32 %v1979_v51, %v1545_v56 }
 0x4c1   :  { %v1582_v3 = vmul.f32 %v1983_v61, %v1580_v44  ;;  %v1561_v5 = vadd.f32 %v1981_v52, %v1560_v58  ;;  %v1985_v13 = vpop.eup %1984  ;;  %vm1587_vm0 = vweird.f32 %v1983_v61 }
 0x4c2   :  { %v1550_v8 = vsel %vm1549_vm12, %v1979_v51, %v1546_v2  ;;  %vm1588_vm2 = vmor %vm1586_vm1, %vm1587_vm0 }
 0x4c3   :  { %v1583_v14 = vsub.f32 1.0, %v1582_v3  ;;  %v1555_v15 = vsel %vm1552_vm14, %v1554_v4, %v1550_v8  ;;  %v1565_v16 = vsel %vm1564_vm13, %v1981_v52, %v1561_v5 }
 0x4c4   :  { %v1570_v0 = vsel %vm1567_vm15, %v1569_v7, %v1565_v16  ;;  %v1575_v19 = vmul.f32 %v1985_v13, %v1555_v15 }
 0x4c5   :  { %v1584_v20 = vmul.f32 %v1983_v61, %v1583_v14  ;;  %v1574_v21 = vmul.f32 %v1570_v0, %v3055_v22  ;;  %v1603_v22 = vld [vmem:[#allocation4 + $0xe0] sm:$0xff] }
 0x4c7   :  { %v3091_v23 = vadd.f32 %v1575_v19, %v1574_v21  ;;  %v1585_v12 = vadd.f32 %v1983_v61, %v1584_v20 }
 0x4c9   :  { %1986 = vtanh.f32 %v3091_v23  ;;  %v1589_v32 = vsel %vm1588_vm2, %v1983_v61, %v1585_v12 }
 0x4ca   :  { %v1594_v38 = vsel %vm1591_vm3, %v1593_v33, %v1589_v32 }
 0x4cf   :  { %v1987_v34 = vpop.eup %1986 }
 0x4d0   :  { %v1597_v42 = vmul.f32 %v1987_v34, %v1594_v38 }
 0x4d2   :  { %1601 = vst [vmem:[#allocation9 + $0x30] sm:$0xff] %v1597_v42  ;;  %1688 = vmatmul.f32.vlgmr.msrb.gmra.mxu0 %v1597_v42  ;;  %1708 = vmatmul.f32.vlgmr.msrb.gmra.mxu1 %v1597_v42 }
 0x4d3   :  { %1728 = vmatmul.f32.vlgmr.msrb.gmra.mxu2 %v1597_v42  ;;  %1748 = vmatmul.f32.vlgmr.msrb.gmra.mxu3 %v1597_v42 }
 0x54f   :  { %v1689_v49 = vpop.f32.mrf.mxu0  ;;  %v1709_v29 = vpop.f32.mrf.mxu1 }
 0x550   :  { %v1752_v30 = vadd.f32 %v1689_v49, %v1603_v22  ;;  %v1753_v35 = vadd.f32 %v1709_v29, %v1604_v43 }
 0x552   :  { %v1865_v36 = vmul.f32 -1.442695, %v1752_v30  ;;  %v1866_v9 = vmul.f32 -1.442695, %v1753_v35 }
 0x554   :  { %1988 = vpow2.f32 %v1865_v36 }
 0x555   :  { %1990 = vpow2.f32 %v1866_v9 }
 0x556   :  { %v1729_v11 = vpop.f32.mrf.mxu2  ;;  %v1749_v24 = vpop.f32.mrf.mxu3 }
 0x557   :  { %v1754_v47 = vadd.f32 %v1729_v11, %v1605_v10  ;;  %v1755_v62 = vadd.f32 %v1749_v24, %v1606_v18 }
 0x559   :  { %v1867_v45 = vmul.f32 -1.442695, %v1754_v47 }
 0x55a   :  { %v1989_v17 = vpop.eup %1988 }
 0x55b   :  { %v1991_v27 = vpop.eup %1990  ;;  %v1762_v28 = vadd.f32 1.0, %v1989_v17  ;;  %1992 = vpow2.f32 %v1867_v45 }
 0x55c   :  { %v1763_v39 = vadd.f32 1.0, %v1991_v27 }
 0x55d   :  { %1994 = vrcp.f32 %v1762_v28  ;;  %v1775_v51 = vand.u32 2147483648, %v1762_v28  ;;  %v1773_v60 = vand.u32 2147483647, %v1762_v28  ;;  %vm1769_vm6 = vweird.f32 %v1762_v28 }
 0x55e   :  { %1996 = vrcp.f32 %v1763_v39  ;;  %v1790_v55 = vand.u32 2147483648, %v1763_v39  ;;  %v1788_v1 = vand.u32 2147483647, %v1763_v39  ;;  %vm1784_vm7 = vweird.f32 %v1763_v39 }
 0x55f   :  { %v1776_v56 = vor.u32 1.1754944e-38, %v1775_v51  ;;  %vm1774_vm10 = vcmp.eq.f32.partialorder %v1773_v60, 8.507059e+37 }
 0x560   :  { %v1791_v58 = vor.u32 1.1754944e-38, %v1790_v55  ;;  %vm1789_vm11 = vcmp.eq.f32.partialorder %v1788_v1, 8.507059e+37 }
 0x561   :  { %v1993_v37 = vpop.eup %1992 }
 0x562   :  { %v1802_v50 = vadd.f32 1.0, %v1993_v37 }
 0x563   :  { %v1995_v6 = vpop.eup %1994 }
 0x564   :  { %v1997_v25 = vpop.eup %1996  ;;  %v1765_v40 = vmul.f32 %v1995_v6, %v1762_v28  ;;  %1998 = vrcp.f32 %v1802_v50  ;;  %vm1770_vm4 = vweird.f32 %v1995_v6  ;;  %v1814_v16 = vand.u32 2147483648, %v1802_v50 }
 0x565   :  { %v1780_v46 = vmul.f32 %v1997_v25, %v1763_v39  ;;  %2000 = vtanh.f32 %v1755_v62  ;;  %vm1785_vm5 = vweird.f32 %v1997_v25  ;;  %vm1771_vm8 = vmor %vm1769_vm6, %vm1770_vm4  ;;  %vm1808_vm13 = vweird.f32 %v1802_v50 }
 0x566   :  { %v1766_v63 = vsub.f32 1.0, %v1765_v40  ;;  %vm1786_vm9 = vmor %vm1784_vm7, %vm1785_vm5  ;;  %v1812_v0 = vand.u32 2147483647, %v1802_v50  ;;  %v1815_v20 = vor.u32 1.1754944e-38, %v1814_v16 }
 0x567   :  { %v1781_v44 = vsub.f32 1.0, %v1780_v46 }
 0x568   :  { %v1767_v52 = vmul.f32 %v1995_v6, %v1766_v63  ;;  %vm1813_vm15 = vcmp.eq.f32.partialorder %v1812_v0, 8.507059e+37 }
 0x569   :  { %v1782_v48 = vmul.f32 %v1997_v25, %v1781_v44 }
 0x56a   :  { %v1999_v41 = vpop.eup %1998  ;;  %v1768_v54 = vadd.f32 %v1995_v6, %v1767_v52 }
 0x56b   :  { %v1804_v53 = vmul.f32 %v1999_v41, %v1802_v50  ;;  %v1783_v57 = vadd.f32 %v1997_v25, %v1782_v48  ;;  %v2001_v61 = vpop.eup %2000  ;;  %vm1809_vm12 = vweird.f32 %v1999_v41 }
 0x56c   :  { %v1772_v59 = vsel %vm1771_vm8, %v1995_v6, %v1768_v54  ;;  %vm1810_vm14 = vmor %vm1808_vm13, %vm1809_vm12 }
 0x56d   :  { %v1805_v2 = vsub.f32 1.0, %v1804_v53  ;;  %v1777_v3 = vsel %vm1774_vm10, %v1776_v56, %v1772_v59  ;;  %v1787_v4 = vsel %vm1786_vm9, %v1997_v25, %v1783_v57 }
 0x56e   :  { %v1792_v5 = vsel %vm1789_vm11, %v1791_v58, %v1787_v4  ;;  %v1797_v7 = vmul.f32 %v2001_v61, %v1777_v3 }
 0x56f   :  { %v1806_v8 = vmul.f32 %v1999_v41, %v1805_v2  ;;  %v1796_v13 = vmul.f32 %v1792_v5, %v3091_v23 }
 0x571   :  { %v1798_v14 = vadd.f32 %v1797_v7, %v1796_v13  ;;  %v1807_v15 = vadd.f32 %v1999_v41, %v1806_v8 }
 0x573   :  { %2002 = vtanh.f32 %v1798_v14  ;;  %v1811_v19 = vsel %vm1810_vm14, %v1999_v41, %v1807_v15 }
 0x574   :  { %v1816_v12 = vsel %vm1813_vm15, %v1815_v20, %v1811_v19 }
 0x579   :  { %v2003_v21 = vpop.eup %2002 }
 0x57a   :  { %v1819_v23 = vmul.f32 %v2003_v21, %v1816_v12 }
 0x57c   :  { %1823 = vst [vmem:[#allocation9 + $0x38] sm:$0xff] %v1819_v23 }
 0x57d   :  { %1836 = dma.vmem_to_hbm [thread:$0]  %s1829_s1, 1024, %s1831_s23, [#allocation6], %s2088_s24, %s2088_s24, %s2089_s25  }
 0x57e   :  { %2080 = dma.done.wait [#allocation6], 1024  }
 0x57f   :  { %2081 = vsyncadd [#allocation6], 4294966272 }
 0x580   :  { %1841 = vsyncpa [#allocation5], 1 }
 0x581   :  { %1842 = vsyncpa [#allocation8], 1 }
 0x582   :  { %1843 = vsyncpa [#allocation6], 1 }

</bundles_post_ra>
